<compile_context>
chip_gen: v6e
topology: v6e:2x2x1
jax: 0.10.0
libtpu: 0.0.40
codegen_flags: <defaults>
</compile_context>

<pallas_src>
import functools
import math

import numpy as np
import jax
import jax.numpy as jnp
from jax import lax
from jax.experimental import pallas as pl
from jax.experimental.pallas import tpu as pltpu

WINDOW_SIZE = 11
IN_CHANNELS = 3
LEVELS = 5
_WEIGHTS = (0.0448, 0.2856, 0.3001, 0.2363, 0.1333)


# ---------------------------------------------------------------------------
# Host-side constant construction (numpy, done once per shape at trace time)
# ---------------------------------------------------------------------------
def _align(n, m):
    return ((n + m - 1) // m) * m


def _gaussian_taps(window_size, sigma):
    # NOTE: reproduces the reference exactly, including its *positive*
    # exponent in gaussian_window, computed in float32.
    k = np.array(
        [math.exp((x - window_size // 2) ** 2 / (2 * sigma ** 2))
         for x in range(window_size)],
        dtype=np.float32)
    return (k / k.sum(dtype=np.float32)).astype(np.float32)


def _band(n, taps, pad):
    """(n, n) matrix B so that (B @ x) is the zero-padded 1-D conv along rows."""
    ws = len(taps)
    m = np.zeros((n, n), np.float32)
    for o in range(n):
        for t in range(ws):
            i = o + t - pad
            if 0 <= i < n:
                m[o, i] = taps[t]
    return m


def _pool(n, level):
    """(n >> level, n) matrix averaging 2**level consecutive entries
    (== `level` composed 2x avg-pools); level 0 is the identity."""
    k = 1 << level
    m = np.zeros((n >> level, n), np.float32)
    for o in range(n >> level):
        m[o, o * k:(o + 1) * k] = 1.0 / k
    return m


@functools.lru_cache(maxsize=None)
def _build_constants(N, C, H, W, window_size):
    NC = N * C
    pad = window_size // 2
    taps = _gaussian_taps(window_size, 1.5)

    hs = [H >> l for l in range(LEVELS)]          # per-level heights
    ws = [W >> l for l in range(LEVELS)]          # per-level widths
    ncw = [NC * w for w in ws]                    # per-level packed lane widths

    img_rows = _align(sum(hs), 8)                 # per-image row extent (levels stacked)
    lanes = _align(sum(ncw), 128)                 # lane extent (levels side by side)

    vrow, vcol = [], []
    r = c = 0
    for l in range(LEVELS):
        vrow.append(r)
        vcol.append(c)
        r += hs[l]
        c += ncw[l]

    # PL (2*img_rows, 2H): per-image vertical [identity ; composed row pools].
    pl_img = np.zeros((img_rows, H), np.float32)
    for l in range(LEVELS):
        pl_img[vrow[l]:vrow[l] + hs[l], :] = _pool(H, l)
    PL = np.zeros((2 * img_rows, 2 * H), np.float32)
    PL[:img_rows, :H] = pl_img
    PL[img_rows:, H:] = pl_img

    # PR (NC*W, lanes): horizontal [identity | composed column pools], block-
    # diagonal per packed image inside every level's column group.
    PR = np.zeros((NC * W, lanes), np.float32)
    for l in range(LEVELS):
        blk = _pool(W, l).T                        # (W, W>>l)
        for img in range(NC):
            PR[img * W:(img + 1) * W,
               vcol[l] + img * ws[l]: vcol[l] + (img + 1) * ws[l]] = blk

    # BH (5*img_rows, 5*img_rows): vertical gaussian band, block-diag per level
    # inside an image block, replicated for the 5 stacked maps.
    bh_img = np.zeros((img_rows, img_rows), np.float32)
    for l in range(LEVELS):
        bh_img[vrow[l]:vrow[l] + hs[l],
               vrow[l]:vrow[l] + hs[l]] = _band(hs[l], taps, pad)
    BH = np.zeros((5 * img_rows, 5 * img_rows), np.float32)
    for k in range(5):
        BH[k * img_rows:(k + 1) * img_rows,
           k * img_rows:(k + 1) * img_rows] = bh_img

    # BW (lanes, lanes): horizontal gaussian band, block-diag per (level, image).
    BW = np.zeros((lanes, lanes), np.float32)
    for l in range(LEVELS):
        blk = _band(ws[l], taps, pad).T
        for img in range(NC):
            o = vcol[l] + img * ws[l]
            BW[o:o + ws[l], o:o + ws[l]] = blk

    # MASK (img_rows, lanes): 1 on the valid (level-diagonal) blocks only.
    MASK = np.zeros((img_rows, lanes), np.float32)
    for l in range(LEVELS):
        MASK[vrow[l]:vrow[l] + hs[l], vcol[l]:vcol[l] + ncw[l]] = 1.0

    # Fuse everything into ONE constant slab (single DMA).
    pieces = [PL, PR, BH, BW, MASK]
    slab_w = max(p.shape[1] for p in pieces)
    offs, r = [], 0
    for p in pieces:
        offs.append(r)
        r = _align(r + p.shape[0], 8)
    slab = np.zeros((_align(r, 8), slab_w), np.float32)
    for off, p in zip(offs, pieces):
        slab[off:off + p.shape[0], :p.shape[1]] = p

    # Wrapper-side lane-group -> per-level-mean reduction matrix.
    segw = np.zeros((lanes, LEVELS), np.float32)
    for l in range(LEVELS):
        segw[vcol[l]:vcol[l] + ncw[l], l] = 1.0 / float(NC * hs[l] * ws[l])

    return dict(slab=slab, segw=segw, offs=tuple(offs),
                img_rows=img_rows, lanes=lanes)


# ---------------------------------------------------------------------------
# Fused kernel: pool pyramid + gaussian convs + ssim/cs maps, 4 matmuls total
# ---------------------------------------------------------------------------
def _mssim_kernel(x_ref, c_ref, out_ref, *, img_rows, lanes, x_rows, x_cols,
                  off_pl, off_pr, off_bh, off_bw, off_mask):
    C1 = 0.01 ** 2
    C2 = 0.03 ** 2

    # Static slices into the fused constant slab (free ref views -> loads).
    pl_mat = c_ref[off_pl:off_pl + 2 * img_rows, 0:x_rows]
    pr_mat = c_ref[off_pr:off_pr + x_cols, 0:lanes]
    bh_mat = c_ref[off_bh:off_bh + 5 * img_rows, 0:5 * img_rows]
    bw_mat = c_ref[off_bw:off_bw + lanes, 0:lanes]
    mask = c_ref[off_mask:off_mask + img_rows, 0:lanes]

    x = x_ref[...]                                  # (2H, NC*W): [img1 ; img2]

    # Stage 1: ONE matmul pair produces both images at ALL 5 pyramid levels
    # (level 0 passes through the identity blocks of PL / PR).  Only the
    # level-diagonal blocks of y are meaningful; the rest is masked later.
    y = jnp.dot(pl_mat,
                jnp.dot(x, pr_mat, preferred_element_type=jnp.float32),
                preferred_element_type=jnp.float32)  # (2*img_rows, lanes)
    y1 = y[0:img_rows]
    y2 = y[img_rows:2 * img_rows]

    # Stage 2: stack the 5 SSIM maps along sublanes and run the separable
    # 11-tap gaussian conv of every map at every level as ONE matmul pair.
    s = jnp.concatenate([y, y * y, y1 * y2], axis=0)  # (5*img_rows, lanes)
    g = jnp.dot(bh_mat,
                jnp.dot(s, bw_mat, preferred_element_type=jnp.float32),
                preferred_element_type=jnp.float32)   # (5*img_rows, lanes)

    mu1 = g[0:img_rows]
    mu2 = g[img_rows:2 * img_rows]
    s11 = g[2 * img_rows:3 * img_rows]
    s22 = g[3 * img_rows:4 * img_rows]
    s12 = g[4 * img_rows:5 * img_rows]

    mu1_sq = mu1 * mu1
    mu2_sq = mu2 * mu2
    mu12 = mu1 * mu2
    sigma1_sq = s11 - mu1_sq
    sigma2_sq = s22 - mu2_sq
    sigma12 = s12 - mu12

    v1 = 2.0 * sigma12 + C2
    v2 = sigma1_sq + sigma2_sq + C2
    cs_map = v1 / v2                                          # exact f32 divide
    ssim_map = ((2.0 * mu12 + C1) * v1) / ((mu1_sq + mu2_sq + C1) * v2)

    # Stage 3: mask the don't-care (cross-level) blocks and reduce along
    # sublanes only; the tiny cross-lane reduction happens in the wrapper.
    ssim_row = jnp.sum(ssim_map * mask, axis=0, keepdims=True)
    cs_row = jnp.sum(cs_map * mask, axis=0, keepdims=True)
    out_ref[...] = jnp.concatenate([ssim_row, cs_row], axis=0)  # (2, lanes)


# ---------------------------------------------------------------------------
# Wrapper (forward pass of MSSIM, size_average=True)
# ---------------------------------------------------------------------------
def mssim_loss(img1, img2, window_size=WINDOW_SIZE):
    N, C, H, W = img1.shape
    assert img2.shape == img1.shape
    assert H % 16 == 0 and W % 16 == 0, "need 5 valid 2x downsampling levels"
    NC = N * C

    cst = _build_constants(N, C, H, W, window_size)
    img_rows, lanes = cst["img_rows"], cst["lanes"]
    off_pl, off_pr, off_bh, off_bw, off_mask = cst["offs"]

    def to2d(x):
        # (N, C, H, W) -> (H, N*C*W): H on sublanes, images packed along lanes.
        return jnp.transpose(x.reshape(NC, H, W).astype(jnp.float32),
                             (1, 0, 2)).reshape(H, NC * W)

    x = jnp.concatenate([to2d(img1), to2d(img2)], axis=0)     # (2H, NC*W)

    out = pl.pallas_call(
        functools.partial(
            _mssim_kernel, img_rows=img_rows, lanes=lanes,
            x_rows=2 * H, x_cols=NC * W,
            off_pl=off_pl, off_pr=off_pr, off_bh=off_bh, off_bw=off_bw,
            off_mask=off_mask),
        out_shape=jax.ShapeDtypeStruct((2, lanes), jnp.float32),
        in_specs=[pl.BlockSpec(memory_space=pltpu.MemorySpace.VMEM)] * 2,
        out_specs=pl.BlockSpec(memory_space=pltpu.MemorySpace.VMEM),
        compiler_params=pltpu.CompilerParams(vmem_limit_bytes=32 * 1024 * 1024),
    )(x, jnp.asarray(cst["slab"]))

    # Per-level means (tiny): lane groups -> 5 ssim means + 5 cs means.
    means = out @ jnp.asarray(cst["segw"])                    # (2, LEVELS)
    mssim = means[0]
    mcs = means[1]

    weights = jnp.asarray(_WEIGHTS, jnp.float32)
    pow1 = mcs ** weights
    pow2 = mssim ** weights
    # NOTE: reproduces the reference exactly: prod(pow1[:-1] * pow2[-1]).
    output = jnp.prod(pow1[:-1] * pow2[-1])
    return 1.0 - output


# ---------------------------------------------------------------------------
# Pure-JAX reference (mirrors the PyTorch module) for a tolerance self-check
# ---------------------------------------------------------------------------
def _mssim_reference(img1, img2, window_size=WINDOW_SIZE):
    N, C, H, W = img1.shape
    pad = window_size // 2
    taps = jnp.asarray(_gaussian_taps(window_size, 1.5))
    win = jnp.broadcast_to(jnp.outer(taps, taps),
                           (C, 1, window_size, window_size))
    C1, C2 = 0.01 ** 2, 0.03 ** 2

    def conv(z):
        return lax.conv_general_dilated(
            z, win, window_strides=(1, 1), padding=[(pad, pad), (pad, pad)],
            dimension_numbers=("NCHW", "OIHW", "NCHW"), feature_group_count=C)

    def ssim(a, b):
        mu1, mu2 = conv(a), conv(b)
        mu1_sq, mu2_sq, mu12 = mu1 * mu1, mu2 * mu2, mu1 * mu2
        s1 = conv(a * a) - mu1_sq
        s2 = conv(b * b) - mu2_sq
        s12 = conv(a * b) - mu12
        v1 = 2.0 * s12 + C2
        v2 = s1 + s2 + C2
        cs = jnp.mean(v1 / v2)
        sm = ((2.0 * mu12 + C1) * v1) / ((mu1_sq + mu2_sq + C1) * v2)
        return jnp.mean(sm), cs

    def pool(z):
        return lax.reduce_window(z, 0.0, lax.add, (1, 1, 2, 2), (1, 1, 2, 2),
                                 "VALID") * 0.25

    a = img1.astype(jnp.float32)
    b = img2.astype(jnp.float32)
    ms, cs_l = [], []
    for _ in range(LEVELS):
        s, cs = ssim(a, b)
        ms.append(s)
        cs_l.append(cs)
        a, b = pool(a), pool(b)
    ms = jnp.stack(ms)
    cs_l = jnp.stack(cs_l)
    weights = jnp.asarray(_WEIGHTS, jnp.float32)
    pow1 = cs_l ** weights
    pow2 = ms ** weights
    return 1.0 - jnp.prod(pow1[:-1] * pow2[-1])


if __name__ == "__main__":
    key = jax.random.PRNGKey(0)
    k1, k2 = jax.random.split(key)
    # batch=2, channels=3 (module default), spatial=32 so all 5 pyramid levels
    # (32, 16, 8, 4, 2) are valid, matching the PyTorch forward.
    img1 = jax.random.uniform(k1, (2, IN_CHANNELS, 32, 32), dtype=jnp.float32)
    img2 = jnp.clip(
        img1 + 0.05 * jax.random.normal(k2, img1.shape, dtype=jnp.float32),
        0.0, 1.0)

    loss = jax.jit(mssim_loss)(img1, img2)
    jax.block_until_ready(loss)

    ref = jax.jit(_mssim_reference)(img1, img2)
    jax.block_until_ready(ref)

    assert bool(jnp.isfinite(loss)), f"non-finite loss: {loss}"
    diff = abs(float(loss) - float(ref))
    assert diff < 5e-3, f"kernel={float(loss)} ref={float(ref)} diff={diff}"
    print("KERNEL_OK")
</pallas_src>

<mosaic_0001>
module attributes {stable_mosaic.version = 11 : i64} {
  func.func @_mssim_kernel(%arg0: memref<64x192xf32, #tpu.memory_space<vmem>>, %arg1: memref<1088x384xf32, #tpu.memory_space<vmem>>, %arg2: memref<2x384xf32, #tpu.memory_space<vmem>>) attributes {dimension_semantics = [], scalar_prefetch = 0 : i64, scratch_operands = 0 : i64, tpu.core_type = #tpu.core_type<tc>} {
    %c0 = arith.constant 0 : index
    %c0_0 = arith.constant 0 : index
    %0 = vector.load %arg1[%c0, %c0_0] : memref<1088x384xf32, #tpu.memory_space<vmem>>, vector<128x64xf32>
    %c128 = arith.constant 128 : index
    %c0_1 = arith.constant 0 : index
    %1 = vector.load %arg1[%c128, %c0_1] : memref<1088x384xf32, #tpu.memory_space<vmem>>, vector<192x384xf32>
    %c320 = arith.constant 320 : index
    %c0_2 = arith.constant 0 : index
    %2 = vector.load %arg1[%c320, %c0_2] : memref<1088x384xf32, #tpu.memory_space<vmem>>, vector<320x320xf32>
    %c640 = arith.constant 640 : index
    %c0_3 = arith.constant 0 : index
    %3 = vector.load %arg1[%c640, %c0_3] : memref<1088x384xf32, #tpu.memory_space<vmem>>, vector<384x384xf32>
    %c1024 = arith.constant 1024 : index
    %c0_4 = arith.constant 0 : index
    %4 = vector.load %arg1[%c1024, %c0_4] : memref<1088x384xf32, #tpu.memory_space<vmem>>, vector<64x384xf32>
    %c0_5 = arith.constant 0 : index
    %c0_6 = arith.constant 0 : index
    %5 = vector.load %arg0[%c0_5, %c0_6] : memref<64x192xf32, #tpu.memory_space<vmem>>, vector<64x192xf32>
    %cst = arith.constant dense<0.000000e+00> : vector<64x384xf32>
    %6 = tpu.matmul %5, %1, %cst {dimension_numbers = #tpu.dot_dimension_numbers<[1], [0], [0], [1], [0, 0, 1, 1], [], []>} : vector<64x192xf32>, vector<192x384xf32>, vector<64x384xf32> -> vector<64x384xf32>
    %cst_7 = arith.constant dense<0.000000e+00> : vector<128x384xf32>
    %7 = tpu.matmul %0, %6, %cst_7 {dimension_numbers = #tpu.dot_dimension_numbers<[1], [0], [0], [1], [0, 0, 1, 1], [], []>} : vector<128x64xf32>, vector<64x384xf32>, vector<128x384xf32> -> vector<128x384xf32>
    %8 = vector.extract_strided_slice %7 {offsets = [0, 0], sizes = [64, 384], strides = [1, 1]} : vector<128x384xf32> to vector<64x384xf32>
    %9 = vector.extract_strided_slice %7 {offsets = [64, 0], sizes = [64, 384], strides = [1, 1]} : vector<128x384xf32> to vector<64x384xf32>
    %10 = arith.mulf %7, %7 : vector<128x384xf32>
    %11 = arith.mulf %8, %9 : vector<64x384xf32>
    %12 = tpu.concatenate %7, %10, %11 in 0 : vector<128x384xf32>, vector<128x384xf32>, vector<64x384xf32> -> vector<320x384xf32>
    %cst_8 = arith.constant dense<0.000000e+00> : vector<320x384xf32>
    %13 = tpu.matmul %12, %3, %cst_8 {dimension_numbers = #tpu.dot_dimension_numbers<[1], [0], [0], [1], [0, 0, 1, 1], [], []>} : vector<320x384xf32>, vector<384x384xf32>, vector<320x384xf32> -> vector<320x384xf32>
    %cst_9 = arith.constant dense<0.000000e+00> : vector<320x384xf32>
    %14 = tpu.matmul %2, %13, %cst_9 {dimension_numbers = #tpu.dot_dimension_numbers<[1], [0], [0], [1], [0, 0, 1, 1], [], []>} : vector<320x320xf32>, vector<320x384xf32>, vector<320x384xf32> -> vector<320x384xf32>
    %15 = vector.extract_strided_slice %14 {offsets = [0, 0], sizes = [64, 384], strides = [1, 1]} : vector<320x384xf32> to vector<64x384xf32>
    %16 = vector.extract_strided_slice %14 {offsets = [64, 0], sizes = [64, 384], strides = [1, 1]} : vector<320x384xf32> to vector<64x384xf32>
    %17 = vector.extract_strided_slice %14 {offsets = [128, 0], sizes = [64, 384], strides = [1, 1]} : vector<320x384xf32> to vector<64x384xf32>
    %18 = vector.extract_strided_slice %14 {offsets = [192, 0], sizes = [64, 384], strides = [1, 1]} : vector<320x384xf32> to vector<64x384xf32>
    %19 = vector.extract_strided_slice %14 {offsets = [256, 0], sizes = [64, 384], strides = [1, 1]} : vector<320x384xf32> to vector<64x384xf32>
    %20 = arith.mulf %15, %15 : vector<64x384xf32>
    %21 = arith.mulf %16, %16 : vector<64x384xf32>
    %22 = arith.mulf %15, %16 : vector<64x384xf32>
    %23 = arith.subf %17, %20 : vector<64x384xf32>
    %24 = arith.subf %18, %21 : vector<64x384xf32>
    %25 = arith.subf %19, %22 : vector<64x384xf32>
    %cst_10 = arith.constant 2.000000e+00 : f32
    %26 = vector.broadcast %cst_10 : f32 to vector<64x384xf32>
    %27 = arith.mulf %26, %25 : vector<64x384xf32>
    %cst_11 = arith.constant 8.99999984E-4 : f32
    %28 = vector.broadcast %cst_11 : f32 to vector<64x384xf32>
    %29 = arith.addf %27, %28 : vector<64x384xf32>
    %30 = arith.addf %23, %24 : vector<64x384xf32>
    %cst_12 = arith.constant 8.99999984E-4 : f32
    %31 = vector.broadcast %cst_12 : f32 to vector<64x384xf32>
    %32 = arith.addf %30, %31 : vector<64x384xf32>
    %33 = arith.divf %29, %32 : vector<64x384xf32>
    %cst_13 = arith.constant 2.000000e+00 : f32
    %34 = vector.broadcast %cst_13 : f32 to vector<64x384xf32>
    %35 = arith.mulf %34, %22 : vector<64x384xf32>
    %cst_14 = arith.constant 9.99999974E-5 : f32
    %36 = vector.broadcast %cst_14 : f32 to vector<64x384xf32>
    %37 = arith.addf %35, %36 : vector<64x384xf32>
    %38 = arith.mulf %37, %29 : vector<64x384xf32>
    %39 = arith.addf %20, %21 : vector<64x384xf32>
    %cst_15 = arith.constant 9.99999974E-5 : f32
    %40 = vector.broadcast %cst_15 : f32 to vector<64x384xf32>
    %41 = arith.addf %39, %40 : vector<64x384xf32>
    %42 = arith.mulf %41, %32 : vector<64x384xf32>
    %43 = arith.divf %38, %42 : vector<64x384xf32>
    %44 = arith.mulf %43, %4 : vector<64x384xf32>
    %cst_16 = arith.constant dense<0.000000e+00> : vector<384xf32>
    %45 = vector.multi_reduction <add>, %44, %cst_16 [0] : vector<64x384xf32> to vector<384xf32>
    %46 = vector.shape_cast %45 : vector<384xf32> to vector<1x384xf32>
    %47 = arith.mulf %33, %4 : vector<64x384xf32>
    %cst_17 = arith.constant dense<0.000000e+00> : vector<384xf32>
    %48 = vector.multi_reduction <add>, %47, %cst_17 [0] : vector<64x384xf32> to vector<384xf32>
    %49 = vector.shape_cast %48 : vector<384xf32> to vector<1x384xf32>
    %50 = tpu.concatenate %46, %49 in 0 : vector<1x384xf32>, vector<1x384xf32> -> vector<2x384xf32>
    %c0_18 = arith.constant 0 : index
    %c0_19 = arith.constant 0 : index
    %51 = vector.load %arg2[%c0_18, %c0_19] : memref<2x384xf32, #tpu.memory_space<vmem>>, vector<2x384xf32>
    tpu.vector_store %arg2[%c0_18, %c0_19], %50 {strides = array<i32>} : memref<2x384xf32, #tpu.memory_space<vmem>>, vector<2x384xf32>,
    return
  }
}

</mosaic_0001>

<bundles_post_ra>
// kernel: mssim_loss.1
= control target key start
LH: loop header
LB: loop body
LE: loop exit
PB: predicated region body
PF: predicated region fallthrough
CT: control target
= control target key end

     0   :  { %7 = vsyncpa [#allocation3], 0  ;;  %s4742_s9 = smov [#allocation2]   ;;  %s7760_s0 = inlined_call_operand.vmem [shape: f32[64,192], index: 0, kind: input, shape index: {}]   ;;  %s7761_s1 = inlined_call_operand.hbm [shape: f32[1088,384], index: 1, kind: input, shape index: {}]   ;;  %s7762_s2 = inlined_call_operand.vmem [shape: f32[2,384], index: 2, kind: output, shape index: {}]  }
   0x1   :  { %s15_s10 = sshll.u32 %s4742_s9, 4  ;;  %s16_s10 = int_to_ptr.vmem [resolvable:$true] %s15_s10 }
   0x2   :  { %s4728_s11 = scalar_lea.vmem %s16_s10, 52224  ;;  %p4733_p1 = scmp.lt.s32.totalorder %s16_s10, %s16_s10 }
   0x3   :  { %p4729_p0 = scmp.ne.s32.totalorder %s16_s10, %s4728_s11  ;;  %p4734_p2 = scmp.lt.s32.totalorder %s4728_s11, %s4728_s11 }
   0x5   :  { %p4735_p3 = por %p4734_p2, %p4733_p1 }
   0x7   :  { %p4736_p4 = pnand %p4735_p3, %p4729_p0 }
   0x9   :  { %4739 = shalt.err (!%p4736_p4)
}
   0xa   :  { %s4743_s12 = smov 384   ;;  %s4744_s13 = smov 24  }
   0xb   :  { %21 = dma.hbm_to_vmem [thread:$0]  %s7761_s1, 52224, %s16_s10, [#allocation3], %s4743_s12, %s4743_s12, %s4744_s13  }
   0xc   :  { %4740 = dma.done.wait [#allocation3], 52224  }
   0xd   :  { %4741 = vsyncadd [#allocation3], 4294915072  ;;  %v7844_v0 = vmov 0.0   ;;  %v87_v1 = vld [vmem:[#allocation2 + $0x2f0] sm:$0xff]  ;;  %v88_v2 = vld [vmem:[#allocation2 + $0x2f8] sm:$0xff]  ;;  %vm417_vm0 = vcmask 523264  }
   0xe   :  { %555 = vmatprep.subr.mxu1 %v7844_v0  ;;  %v86_v3 = vld [vmem:[#allocation2 + $0x2e8] sm:$0xff]  ;;  %442 = vmatprep.subr.mxu0 %v87_v1  ;;  %v84_v4 = vld [vmem:[#allocation2 + $0x2d8] sm:$0xff]  ;;  %v85_v5 = vld [vmem:[#allocation2 + $0x2e0] sm:$0xff]  ;;  %vm4092_vm1 = vcmask 1040384  }
   0xf   :  { %556 = vmatpush1.msra.mxu1 %v88_v2  ;;  %v83_v6 = vld [vmem:[#allocation2 + $0x2d0] sm:$0xff]  ;;  %443 = vmatpush1.msra.mxu0 %v86_v3  ;;  %v81_v7 = vld [vmem:[#allocation2 + $0x2c0] sm:$0xff]  ;;  %v82_v8 = vld [vmem:[#allocation2 + $0x2c8] sm:$0xff] }
  0x10   :  { %557 = vmatprep.subr.mxu1 %v7844_v0  ;;  %444 = vmatprep.subr.mxu0 %v84_v4  ;;  %v80_v9 = vld [vmem:[#allocation2 + $0x2b8] sm:$0xff]  ;;  %v78_v10 = vld [vmem:[#allocation2 + $0x2a8] sm:$0xff]  ;;  %v79_v11 = vld [vmem:[#allocation2 + $0x2b0] sm:$0xff] }
  0x11   :  { %558 = vmatpush1.msra.mxu1 %v85_v5  ;;  %445 = vmatpush1.msra.mxu0 %v83_v6  ;;  %v77_v12 = vld [vmem:[#allocation2 + $0x2a0] sm:$0xff]  ;;  %v75_v13 = vld [vmem:[#allocation2 + $0x290] sm:$0xff]  ;;  %v76_v14 = vld [vmem:[#allocation2 + $0x298] sm:$0xff] }
  0x12   :  { %559 = vmatprep.subr.mxu1 %v7844_v0  ;;  %446 = vmatprep.subr.mxu0 %v81_v7  ;;  %v74_v15 = vld [vmem:[#allocation2 + $0x288] sm:$0xff]  ;;  %v72_v16 = vld [vmem:[#allocation2 + $0x278] sm:$0xff]  ;;  %v73_v17 = vld [vmem:[#allocation2 + $0x280] sm:$0xff] }
  0x13   :  { %560 = vmatpush1.msra.mxu1 %v82_v8  ;;  %447 = vmatpush1.msra.mxu0 %v80_v9  ;;  %v71_v18 = vld [vmem:[#allocation2 + $0x270] sm:$0xff]  ;;  %v69_v19 = vld [vmem:[#allocation2 + $0x260] sm:$0xff]  ;;  %v70_v20 = vld [vmem:[#allocation2 + $0x268] sm:$0xff] }
  0x14   :  { %561 = vmatprep.subr.mxu1 %v7844_v0  ;;  %448 = vmatprep.subr.mxu0 %v78_v10  ;;  %v68_v21 = vld [vmem:[#allocation2 + $0x258] sm:$0xff]  ;;  %v66_v22 = vld [vmem:[#allocation2 + $0x248] sm:$0xff]  ;;  %v67_v23 = vld [vmem:[#allocation2 + $0x250] sm:$0xff] }
  0x15   :  { %562 = vmatpush1.msra.mxu1 %v79_v11  ;;  %449 = vmatpush1.msra.mxu0 %v77_v12  ;;  %v65_v24 = vld [vmem:[#allocation2 + $0x240] sm:$0xff]  ;;  %v63_v25 = vld [vmem:[#allocation2 + $0x230] sm:$0xff]  ;;  %v64_v26 = vld [vmem:[#allocation2 + $0x238] sm:$0xff] }
  0x16   :  { %563 = vmatprep.subr.mxu1 %v7844_v0  ;;  %450 = vmatprep.subr.mxu0 %v75_v13  ;;  %v62_v27 = vld [vmem:[#allocation2 + $0x228] sm:$0xff]  ;;  %v60_v28 = vld [vmem:[#allocation2 + $0x218] sm:$0xff]  ;;  %v61_v29 = vld [vmem:[#allocation2 + $0x220] sm:$0xff] }
  0x17   :  { %564 = vmatpush1.msra.mxu1 %v76_v14  ;;  %451 = vmatpush1.msra.mxu0 %v74_v15  ;;  %v59_v30 = vld [vmem:[#allocation2 + $0x210] sm:$0xff]  ;;  %v57_v31 = vld [vmem:[#allocation2 + $0x200] sm:$0xff]  ;;  %v58_v32 = vld [vmem:[#allocation2 + $0x208] sm:$0xff] }
  0x18   :  { %565 = vmatprep.subr.mxu1 %v7844_v0  ;;  %452 = vmatprep.subr.mxu0 %v72_v16  ;;  %v56_v33 = vld [vmem:[#allocation2 + $0x1f8] sm:$0xff]  ;;  %v54_v34 = vld [vmem:[#allocation2 + $0x1e8] sm:$0xff]  ;;  %v55_v35 = vld [vmem:[#allocation2 + $0x1f0] sm:$0xff] }
  0x19   :  { %566 = vmatpush1.msra.mxu1 %v73_v17  ;;  %453 = vmatpush1.msra.mxu0 %v71_v18  ;;  %v53_v36 = vld [vmem:[#allocation2 + $0x1e0] sm:$0xff]  ;;  %v51_v37 = vld [vmem:[#allocation2 + $0x1d0] sm:$0xff]  ;;  %v52_v38 = vld [vmem:[#allocation2 + $0x1d8] sm:$0xff] }
  0x1a   :  { %567 = vmatprep.subr.mxu1 %v7844_v0  ;;  %454 = vmatprep.subr.mxu0 %v69_v19  ;;  %v50_v39 = vld [vmem:[#allocation2 + $0x1c8] sm:$0xff]  ;;  %v48_v40 = vld [vmem:[#allocation2 + $0x1b8] sm:$0xff]  ;;  %v49_v41 = vld [vmem:[#allocation2 + $0x1c0] sm:$0xff] }
  0x1b   :  { %568 = vmatpush1.msra.mxu1 %v70_v20  ;;  %455 = vmatpush1.msra.mxu0 %v68_v21  ;;  %v47_v42 = vld [vmem:[#allocation2 + $0x1b0] sm:$0xff]  ;;  %v45_v43 = vld [vmem:[#allocation2 + $0x1a0] sm:$0xff]  ;;  %v46_v44 = vld [vmem:[#allocation2 + $0x1a8] sm:$0xff] }
  0x1c   :  { %569 = vmatprep.subr.mxu1 %v7844_v0  ;;  %456 = vmatprep.subr.mxu0 %v66_v22  ;;  %v44_v45 = vld [vmem:[#allocation2 + $0x198] sm:$0xff]  ;;  %v42_v46 = vld [vmem:[#allocation2 + $0x188] sm:$0xff]  ;;  %v43_v47 = vld [vmem:[#allocation2 + $0x190] sm:$0xff] }
  0x1d   :  { %570 = vmatpush1.msra.mxu1 %v67_v23  ;;  %457 = vmatpush1.msra.mxu0 %v65_v24  ;;  %v41_v48 = vld [vmem:[#allocation2 + $0x180] sm:$0xff]  ;;  %v111_v49 = vld [vmem:[#allocation2 + $0x3b0] sm:$0xff]  ;;  %v112_v50 = vld [vmem:[#allocation2 + $0x3b8] sm:$0xff] }
  0x1e   :  { %571 = vmatprep.subr.mxu1 %v7844_v0  ;;  %458 = vmatprep.subr.mxu0 %v63_v25  ;;  %v110_v51 = vld [vmem:[#allocation2 + $0x3a8] sm:$0xff]  ;;  %v108_v52 = vld [vmem:[#allocation2 + $0x398] sm:$0xff]  ;;  %v109_v53 = vld [vmem:[#allocation2 + $0x3a0] sm:$0xff] }
  0x1f   :  { %572 = vmatpush1.msra.mxu1 %v64_v26  ;;  %459 = vmatpush1.msra.mxu0 %v62_v27  ;;  %v107_v54 = vld [vmem:[#allocation2 + $0x390] sm:$0xff]  ;;  %v105_v55 = vld [vmem:[#allocation2 + $0x380] sm:$0xff]  ;;  %v106_v56 = vld [vmem:[#allocation2 + $0x388] sm:$0xff] }
  0x20   :  { %573 = vmatprep.subr.mxu1 %v7844_v0  ;;  %460 = vmatprep.subr.mxu0 %v60_v28  ;;  %v104_v57 = vld [vmem:[#allocation2 + $0x378] sm:$0xff]  ;;  %v102_v58 = vld [vmem:[#allocation2 + $0x368] sm:$0xff]  ;;  %v103_v59 = vld [vmem:[#allocation2 + $0x370] sm:$0xff] }
  0x21   :  { %574 = vmatpush1.msra.mxu1 %v61_v29  ;;  %461 = vmatpush1.msra.mxu0 %v59_v30  ;;  %v101_v60 = vld [vmem:[#allocation2 + $0x360] sm:$0xff]  ;;  %v99_v61 = vld [vmem:[#allocation2 + $0x350] sm:$0xff]  ;;  %v100_v62 = vld [vmem:[#allocation2 + $0x358] sm:$0xff] }
  0x22   :  { %575 = vmatprep.subr.mxu1 %v7844_v0  ;;  %462 = vmatprep.subr.mxu0 %v57_v31  ;;  %v98_v63 = vld [vmem:[#allocation2 + $0x348] sm:$0xff]  ;;  %v96_v1 = vld [vmem:[#allocation2 + $0x338] sm:$0xff]  ;;  %v97_v2 = vld [vmem:[#allocation2 + $0x340] sm:$0xff] }
  0x23   :  { %576 = vmatpush1.msra.mxu1 %v58_v32  ;;  %463 = vmatpush1.msra.mxu0 %v56_v33  ;;  %v95_v3 = vld [vmem:[#allocation2 + $0x330] sm:$0xff]  ;;  %v93_v4 = vld [vmem:[#allocation2 + $0x320] sm:$0xff]  ;;  %v94_v5 = vld [vmem:[#allocation2 + $0x328] sm:$0xff] }
  0x24   :  { %577 = vmatprep.subr.mxu1 %v7844_v0  ;;  %464 = vmatprep.subr.mxu0 %v54_v34  ;;  %v92_v6 = vld [vmem:[#allocation2 + $0x318] sm:$0xff]  ;;  %v90_v7 = vld [vmem:[#allocation2 + $0x308] sm:$0xff]  ;;  %v91_v8 = vld [vmem:[#allocation2 + $0x310] sm:$0xff] }
  0x25   :  { %578 = vmatpush1.msra.mxu1 %v55_v35  ;;  %465 = vmatpush1.msra.mxu0 %v53_v36  ;;  %v402_v9 = vld [vmem:[%s7760_s0 + $0x8] sm:$0xff]  ;;  %v89_v10 = vld [vmem:[#allocation2 + $0x300] sm:$0xff]  ;;  %v404_v12 = vld [vmem:[%s7760_s0 + $0x18] sm:$0xff] }
  0x26   :  { %579 = vmatprep.subr.mxu1 %v7844_v0  ;;  %466 = vmatprep.subr.mxu0 %v51_v37  ;;  %v401_v11 = vld [vmem:[%s7760_s0] sm:$0xff]  ;;  %v403_v13 = vld [vmem:[%s7760_s0 + $0x10] sm:$0xff]  ;;  %v406_v14 = vld [vmem:[%s7760_s0 + $0x28] sm:$0xff] }
  0x27   :  { %580 = vmatpush1.msra.mxu1 %v52_v38  ;;  %467 = vmatpush1.msra.mxu0 %v50_v39  ;;  %v405_v15 = vld [vmem:[%s7760_s0 + $0x20] sm:$0xff]  ;;  %v408_v16 = vld [vmem:[%s7760_s0 + $0x38] sm:$0xff]  ;;  %v407_v17 = vld [vmem:[%s7760_s0 + $0x30] sm:$0xff] }
  0x28   :  { %581 = vmatprep.subr.mxu1 %v7844_v0  ;;  %468 = vmatprep.subr.mxu0 %v48_v40  ;;  %v410_v18 = vld [vmem:[%s7760_s0 + $0x48] sm:$0xff]  ;;  %v409_v19 = vld [vmem:[%s7760_s0 + $0x40] sm:$0xff]  ;;  %v412_v20 = vld [vmem:[%s7760_s0 + $0x58] sm:$0xff] }
  0x29   :  { %582 = vmatpush1.msra.mxu1 %v49_v41  ;;  %469 = vmatpush1.msra.mxu0 %v47_v42  ;;  %v411_v21 = vld [vmem:[%s7760_s0 + $0x50] sm:$0xff]  ;;  %v414_v22 = vld [vmem:[%s7760_s0 + $0x68] sm:$0xff]  ;;  %v413_v23 = vld [vmem:[%s7760_s0 + $0x60] sm:$0xff] }
  0x2a   :  { %583 = vmatprep.subr.mxu1 %v7844_v0  ;;  %470 = vmatprep.subr.mxu0 %v45_v43  ;;  %v416_v24 = vld [vmem:[%s7760_s0 + $0x78] sm:$0xff]  ;;  %v415_v25 = vld [vmem:[%s7760_s0 + $0x70] sm:$0xff]  ;;  %v4854_v26 = vld [vmem:[#allocation2] sm:$0xff] }
  0x2b   :  { %584 = vmatpush1.msra.mxu1 %v46_v44  ;;  %471 = vmatpush1.msra.mxu0 %v44_v45 }
  0x2c   :  { %585 = vmatprep.subr.mxu1 %v7844_v0  ;;  %472 = vmatprep.subr.mxu0 %v42_v46 }
  0x2d   :  { %586 = vmatpush1.msra.mxu1 %v43_v47  ;;  %473 = vmatpush1.msra.mxu0 %v41_v48 }
  0x2e   :  { %603 = vmatprep.subr.mxu1 %v7844_v0  ;;  %490 = vmatprep.subr.mxu0 %v111_v49 }
  0x2f   :  { %604 = vmatpush2.msra.mxu1 %v112_v50  ;;  %491 = vmatpush2.msra.mxu0 %v110_v51 }
  0x30   :  { %605 = vmatprep.subr.mxu1 %v7844_v0  ;;  %492 = vmatprep.subr.mxu0 %v108_v52 }
  0x31   :  { %606 = vmatpush2.msra.mxu1 %v109_v53  ;;  %493 = vmatpush2.msra.mxu0 %v107_v54 }
  0x32   :  { %607 = vmatprep.subr.mxu1 %v7844_v0  ;;  %494 = vmatprep.subr.mxu0 %v105_v55 }
  0x33   :  { %608 = vmatpush2.msra.mxu1 %v106_v56  ;;  %495 = vmatpush2.msra.mxu0 %v104_v57 }
  0x34   :  { %609 = vmatprep.subr.mxu1 %v7844_v0  ;;  %496 = vmatprep.subr.mxu0 %v102_v58 }
  0x35   :  { %610 = vmatpush2.msra.mxu1 %v103_v59  ;;  %497 = vmatpush2.msra.mxu0 %v101_v60  ;;  %v26_v59 = vld [vmem:[#allocation2 + $0x18] sm:$0xff]  ;;  %v27_v60 = vld [vmem:[#allocation2 + $0x30] sm:$0xff] }
  0x36   :  { %611 = vmatprep.subr.mxu1 %v7844_v0  ;;  %498 = vmatprep.subr.mxu0 %v99_v61  ;;  %v375_v61 = vld [vmem:[#allocation2 + $0xbf0] sm:$0xff] }
  0x37   :  { %612 = vmatpush2.msra.mxu1 %v100_v62  ;;  %499 = vmatpush2.msra.mxu0 %v98_v63  ;;  %v279_v62 = vld [vmem:[#allocation2 + $0x8f0] sm:$0xff]  ;;  %v28_v63 = vld [vmem:[#allocation2 + $0x48] sm:$0xff] }
  0x38   :  { %613 = vmatprep.subr.mxu1 %v7844_v0  ;;  %500 = vmatprep.subr.mxu0 %v96_v1  ;;  %v29_v1 = vld [vmem:[#allocation2 + $0x60] sm:$0xff] }
  0x39   :  { %614 = vmatpush2.msra.mxu1 %v97_v2  ;;  %501 = vmatpush2.msra.mxu0 %v95_v3  ;;  %v278_v2 = vld [vmem:[#allocation2 + $0x8e8] sm:$0xff]  ;;  %v276_v3 = vld [vmem:[#allocation2 + $0x8d8] sm:$0xff] }
  0x3a   :  { %615 = vmatprep.subr.mxu1 %v7844_v0  ;;  %502 = vmatprep.subr.mxu0 %v93_v4  ;;  %v374_v4 = vld [vmem:[#allocation2 + $0xbe8] sm:$0xff] }
  0x3b   :  { %616 = vmatpush2.msra.mxu1 %v94_v5  ;;  %503 = vmatpush2.msra.mxu0 %v92_v6  ;;  %v372_v5 = vld [vmem:[#allocation2 + $0xbd8] sm:$0xff] }
  0x3c   :  { %617 = vmatprep.subr.mxu1 %v7844_v0  ;;  %504 = vmatprep.subr.mxu0 %v90_v7  ;;  %v30_v6 = vld [vmem:[#allocation2 + $0x78] sm:$0xff]  ;;  %v4871_v7 = vld [vmem:[#allocation2 + $0x90] sm:$0xff] }
  0x3d   :  { %618 = vmatpush2.msra.mxu1 %v91_v8  ;;  %4130 = vmatprep.mubr.msk.f32.mxu1 %vm417_vm0, %v402_v9  ;;  %v275_v8 = vld [vmem:[#allocation2 + $0x8d0] sm:$0xff] }
  0x3e   :  { %505 = vmatpush2.msra.mxu0 %v89_v10  ;;  %4122 = vmatprep.mubr.msk.f32.mxu0 %vm417_vm0, %v402_v9  ;;  %v273_v9 = vld [vmem:[#allocation2 + $0x8c0] sm:$0xff]  ;;  %v371_v10 = vld [vmem:[#allocation2 + $0xbd0] sm:$0xff] }
  0x3f   :  { %620 = vmatmul.mubr.f32.vlgmr.msra.gmra.mxu1 %v401_v11  ;;  %507 = vmatmul.mubr.f32.vlgmr.msra.gmra.mxu0 %v401_v11  ;;  %v369_v11 = vld [vmem:[#allocation2 + $0xbc0] sm:$0xff] }
  0x40   :  { %4131 = vmatprep.mubr.msk.f32.mxu1 %vm417_vm0, %v404_v12  ;;  %4123 = vmatprep.mubr.msk.f32.mxu0 %vm417_vm0, %v404_v12  ;;  %v4878_v12 = vld [vmem:[#allocation2 + $0xa8] sm:$0xff] }
  0x43   :  { %625 = vmatmul.mubr.f32.gmra.mxu1 %v403_v13  ;;  %513 = vmatmul.mubr.f32.gmra.mxu0 %v403_v13  ;;  %v4880_v13 = vld [vmem:[#allocation2 + $0xc0] sm:$0xff] }
  0x44   :  { %4132 = vmatprep.mubr.msk.f32.mxu1 %vm417_vm0, %v406_v14  ;;  %4124 = vmatprep.mubr.msk.f32.mxu0 %vm417_vm0, %v406_v14  ;;  %v272_v14 = vld [vmem:[#allocation2 + $0x8b8] sm:$0xff] }
  0x47   :  { %630 = vmatmul.mubr.f32.gmra.mxu1 %v405_v15  ;;  %519 = vmatmul.mubr.f32.gmra.mxu0 %v405_v15  ;;  %v270_v15 = vld [vmem:[#allocation2 + $0x8a8] sm:$0xff] }
  0x48   :  { %4133 = vmatprep.mubr.msk.f32.mxu1 %vm417_vm0, %v408_v16  ;;  %4125 = vmatprep.mubr.msk.f32.mxu0 %vm417_vm0, %v408_v16  ;;  %v368_v16 = vld [vmem:[#allocation2 + $0xbb8] sm:$0xff] }
  0x4b   :  { %635 = vmatmul.mubr.f32.gmra.mxu1 %v407_v17  ;;  %525 = vmatmul.mubr.f32.gmra.mxu0 %v407_v17  ;;  %v366_v17 = vld [vmem:[#allocation2 + $0xba8] sm:$0xff] }
  0x4c   :  { %4134 = vmatprep.mubr.msk.f32.mxu1 %vm417_vm0, %v410_v18  ;;  %4126 = vmatprep.mubr.msk.f32.mxu0 %vm417_vm0, %v410_v18  ;;  %v4888_v18 = vld [vmem:[#allocation2 + $0xd8] sm:$0xff] }
  0x4f   :  { %640 = vmatmul.mubr.f32.gmra.mxu1 %v409_v19  ;;  %531 = vmatmul.mubr.f32.gmra.mxu0 %v409_v19  ;;  %v4890_v19 = vld [vmem:[#allocation2 + $0xf0] sm:$0xff] }
  0x50   :  { %4135 = vmatprep.mubr.msk.f32.mxu1 %vm417_vm0, %v412_v20  ;;  %4127 = vmatprep.mubr.msk.f32.mxu0 %vm417_vm0, %v412_v20  ;;  %v269_v20 = vld [vmem:[#allocation2 + $0x8a0] sm:$0xff] }
  0x53   :  { %645 = vmatmul.mubr.f32.gmra.mxu1 %v411_v21  ;;  %537 = vmatmul.mubr.f32.gmra.mxu0 %v411_v21  ;;  %v267_v21 = vld [vmem:[#allocation2 + $0x890] sm:$0xff] }
  0x54   :  { %4136 = vmatprep.mubr.msk.f32.mxu1 %vm417_vm0, %v414_v22  ;;  %4128 = vmatprep.mubr.msk.f32.mxu0 %vm417_vm0, %v414_v22  ;;  %v365_v22 = vld [vmem:[#allocation2 + $0xba0] sm:$0xff] }
  0x57   :  { %650 = vmatmul.mubr.f32.gmra.mxu1 %v413_v23  ;;  %543 = vmatmul.mubr.f32.gmra.mxu0 %v413_v23  ;;  %v363_v23 = vld [vmem:[#allocation2 + $0xb90] sm:$0xff] }
  0x58   :  { %4137 = vmatprep.mubr.msk.f32.mxu1 %vm417_vm0, %v416_v24  ;;  %4129 = vmatprep.mubr.msk.f32.mxu0 %vm417_vm0, %v416_v24  ;;  %v4898_v24 = vld [vmem:[#allocation2 + $0x108] sm:$0xff] }
  0x5b   :  { %655 = vmatmul.mubr.f32.gmra.mxu1 %v415_v25  ;;  %549 = vmatmul.mubr.f32.gmra.mxu0 %v415_v25  ;;  %v4900_v25 = vld [vmem:[#allocation2 + $0x120] sm:$0xff] }
  0x5c   :  { %772 = vmatprep.mubr.f32.mxu0 %v7844_v0  ;;  %4394 = vmatprep.mubr.msk.f32.mxu1 %vm417_vm0, %v4854_v26 }
  0xff   :  { %v621_v27 = vpop.f32.mrf.mxu1  ;;  %v4858_v28 = vpop.f32.mrf.mxu0 }
 0x101   :  { %v623_v29 = vpop.f32.mrf.mxu1  ;;  %v4860_v30 = vpop.f32.mrf.mxu0 }
 0x102   :  { %v360_v29 = vld [vmem:[#allocation2 + $0xb78] sm:$0xff] }
 0x103   :  { %v626_v31 = vpop.f32.mrf.mxu1  ;;  %v514_v32 = vpop.f32.mrf.mxu0 }
 0x105   :  { %v628_v33 = vpop.f32.mrf.mxu1  ;;  %v516_v34 = vpop.f32.mrf.mxu0 }
 0x106   :  { %v261_v33 = vld [vmem:[#allocation2 + $0x860] sm:$0xff] }
 0x107   :  { %v631_v35 = vpop.f32.mrf.mxu1  ;;  %v520_v36 = vpop.f32.mrf.mxu0 }
 0x109   :  { %v633_v37 = vpop.f32.mrf.mxu1  ;;  %v522_v38 = vpop.f32.mrf.mxu0 }
 0x10a   :  { %v260_v37 = vld [vmem:[#allocation2 + $0x858] sm:$0xff] }
 0x10b   :  { %v636_v39 = vpop.f32.mrf.mxu1  ;;  %v526_v40 = vpop.f32.mrf.mxu0 }
 0x10d   :  { %v638_v41 = vpop.f32.mrf.mxu1  ;;  %v528_v42 = vpop.f32.mrf.mxu0 }
 0x10e   :  { %v353_v41 = vld [vmem:[#allocation2 + $0xb40] sm:$0xff] }
 0x10f   :  { %v641_v43 = vpop.f32.mrf.mxu1  ;;  %v532_v44 = vpop.f32.mrf.mxu0 }
 0x111   :  { %v643_v45 = vpop.f32.mrf.mxu1  ;;  %v534_v46 = vpop.f32.mrf.mxu0 }
 0x112   :  { %v254_v45 = vld [vmem:[#allocation2 + $0x828] sm:$0xff] }
 0x113   :  { %v646_v47 = vpop.f32.mrf.mxu1  ;;  %v538_v48 = vpop.f32.mrf.mxu0 }
 0x115   :  { %v648_v49 = vpop.f32.mrf.mxu1  ;;  %v540_v50 = vpop.f32.mrf.mxu0 }
 0x116   :  { %v249_v49 = vld [vmem:[#allocation2 + $0x800] sm:$0xff] }
 0x117   :  { %v651_v51 = vpop.f32.mrf.mxu1  ;;  %v544_v52 = vpop.f32.mrf.mxu0 }
 0x119   :  { %v653_v53 = vpop.f32.mrf.mxu1  ;;  %v546_v54 = vpop.f32.mrf.mxu0 }
 0x11a   :  { %v246_v53 = vld [vmem:[#allocation2 + $0x7e8] sm:$0xff] }
 0x11b   :  { %v656_v55 = vpop.f32.mrf.mxu1  ;;  %v550_v56 = vpop.f32.mrf.mxu0 }
 0x11c   :  { %4378 = vmatprep.subr.mxu1 %v656_v55 }
 0x11d   :  { %v658_v57 = vpop.f32.mrf.mxu1  ;;  %4379 = vmatpush3.msra.mxu1 %v656_v55  ;;  %v552_v58 = vpop.f32.mrf.mxu0  ;;  %v243_v55 = vld [vmem:[#allocation2 + $0x7d0] sm:$0xff] }
 0x11e   :  { %4380 = vmatprep.subr.mxu1 %v651_v51  ;;  %724 = vmatprep.subr.mxu0 %v552_v58  ;;  %v242_v57 = vld [vmem:[#allocation2 + $0x7c8] sm:$0xff]  ;;  %v344_v58 = vld [vmem:[#allocation2 + $0xaf8] sm:$0xff] }
 0x11f   :  { %4381 = vmatpush3.msra.mxu1 %v651_v51  ;;  %725 = vmatpush1.msra.mxu0 %v550_v56  ;;  %v248_v51 = vld [vmem:[#allocation2 + $0x7f8] sm:$0xff]  ;;  %v345_v56 = vld [vmem:[#allocation2 + $0xb00] sm:$0xff] }
 0x120   :  { %4382 = vmatprep.subr.mxu1 %v646_v47  ;;  %726 = vmatprep.subr.mxu0 %v546_v54  ;;  %v245_v54 = vld [vmem:[#allocation2 + $0x7e0] sm:$0xff] }
 0x121   :  { %4383 = vmatpush3.msra.mxu1 %v646_v47  ;;  %727 = vmatpush1.msra.mxu0 %v544_v52  ;;  %v252_v47 = vld [vmem:[#allocation2 + $0x818] sm:$0xff]  ;;  %v347_v52 = vld [vmem:[#allocation2 + $0xb10] sm:$0xff] }
 0x122   :  { %4384 = vmatprep.subr.mxu1 %v641_v43  ;;  %728 = vmatprep.subr.mxu0 %v540_v50  ;;  %v348_v50 = vld [vmem:[#allocation2 + $0xb18] sm:$0xff] }
 0x123   :  { %4385 = vmatpush3.msra.mxu1 %v641_v43  ;;  %729 = vmatpush1.msra.mxu0 %v538_v48  ;;  %v255_v43 = vld [vmem:[#allocation2 + $0x830] sm:$0xff] }
 0x124   :  { %4386 = vmatprep.subr.mxu1 %v636_v39  ;;  %730 = vmatprep.subr.mxu0 %v534_v46  ;;  %v350_v46 = vld [vmem:[#allocation2 + $0xb28] sm:$0xff]  ;;  %v251_v48 = vld [vmem:[#allocation2 + $0x810] sm:$0xff] }
 0x125   :  { %4387 = vmatpush3.msra.mxu1 %v636_v39  ;;  %731 = vmatpush1.msra.mxu0 %v532_v44  ;;  %v258_v39 = vld [vmem:[#allocation2 + $0x848] sm:$0xff]  ;;  %v351_v44 = vld [vmem:[#allocation2 + $0xb30] sm:$0xff] }
 0x126   :  { %4388 = vmatprep.subr.mxu1 %v631_v35  ;;  %732 = vmatprep.subr.mxu0 %v528_v42  ;;  %v257_v42 = vld [vmem:[#allocation2 + $0x840] sm:$0xff] }
 0x127   :  { %4389 = vmatpush3.msra.mxu1 %v631_v35  ;;  %733 = vmatpush1.msra.mxu0 %v526_v40  ;;  %v357_v35 = vld [vmem:[#allocation2 + $0xb60] sm:$0xff]  ;;  %v354_v40 = vld [vmem:[#allocation2 + $0xb48] sm:$0xff] }
 0x128   :  { %4390 = vmatprep.subr.mxu1 %v626_v31  ;;  %734 = vmatprep.subr.mxu0 %v522_v38  ;;  %v356_v38 = vld [vmem:[#allocation2 + $0xb58] sm:$0xff] }
 0x129   :  { %4391 = vmatpush3.msra.mxu1 %v626_v31  ;;  %735 = vmatpush1.msra.mxu0 %v520_v36  ;;  %v4910_v31 = vld [vmem:[#allocation2 + $0x150] sm:$0xff]  ;;  %v4918_v36 = vld [vmem:[#allocation2 + $0x168] sm:$0xff] }
 0x12a   :  { %4392 = vmatprep.subr.mxu1 %v621_v27  ;;  %736 = vmatprep.subr.mxu0 %v516_v34  ;;  %v359_v34 = vld [vmem:[#allocation2 + $0xb70] sm:$0xff] }
 0x12b   :  { %4393 = vmatpush3.msra.mxu1 %v621_v27  ;;  %737 = vmatpush1.msra.mxu0 %v514_v32  ;;  %v264_v27 = vld [vmem:[#allocation2 + $0x878] sm:$0xff]  ;;  %v263_v32 = vld [vmem:[#allocation2 + $0x870] sm:$0xff] }
 0x12c   :  { %4395 = vmatmul.mubr.msk.f32.vlgmr.msra.gmra.mxu1 %vm417_vm0, %v26_v59  ;;  %738 = vmatprep.subr.mxu0 %v4860_v30  ;;  %v4908_v30 = vld [vmem:[#allocation2 + $0x138] sm:$0xff] }
 0x12d   :  { %4397 = vmatprep.mubr.msk.f32.mxu1 %vm417_vm0, %v27_v60  ;;  %739 = vmatpush1.msra.mxu0 %v4858_v28  ;;  %v362_v28 = vld [vmem:[#allocation2 + $0xb88] sm:$0xff] }
 0x12e   :  { %1391 = vmatprep.subr.mxu1 %v375_v61  ;;  %4138 = vmatmul.mubr.msk.f32.vlgmr.msra.gmra.mxu0 %vm417_vm0, %v4854_v26  ;;  %v266_v26 = vld [vmem:[#allocation2 + $0x888] sm:$0xff]  ;;  %v237_v61 = vld [vmem:[#allocation2 + $0x7a0] sm:$0xff] }
 0x12f   :  { %1086 = vmatprep.subr.mxu0 %v279_v62  ;;  %778 = vmatprep.mubr.f32.mxu0 %v7844_v0  ;;  %v342_v62 = vld [vmem:[#allocation2 + $0xae8] sm:$0xff] }
 0x130   :  { %4398 = vmatmul.mubr.msk.f32.gmra.mxu1 %vm417_vm0, %v28_v63  ;;  %1087 = vmatpush1.msra.mxu0 %v278_v2  ;;  %v234_v2 = vld [vmem:[#allocation2 + $0x788] sm:$0xff] }
 0x131   :  { %4400 = vmatprep.mubr.msk.f32.mxu1 %vm417_vm0, %v29_v1  ;;  %1088 = vmatprep.subr.mxu0 %v276_v3  ;;  %v233_v3 = vld [vmem:[#allocation2 + $0x780] sm:$0xff] }
 0x132   :  { %1392 = vmatpush1.msra.mxu1 %v374_v4  ;;  %4139 = vmatmul.mubr.msk.f32.gmra.mxu0 %vm417_vm0, %v26_v59  ;;  %v240_v59 = vld [vmem:[#allocation2 + $0x7b8] sm:$0xff]  ;;  %v327_v4 = vld [vmem:[#allocation2 + $0xa70] sm:$0xff] }
 0x133   :  { %1393 = vmatprep.subr.mxu1 %v372_v5  ;;  %784 = vmatprep.mubr.f32.mxu0 %v7844_v0  ;;  %v339_v5 = vld [vmem:[#allocation2 + $0xad0] sm:$0xff] }
 0x134   :  { %4401 = vmatmul.mubr.msk.f32.gmra.mxu1 %vm417_vm0, %v30_v6  ;;  %1089 = vmatpush1.msra.mxu0 %v275_v8  ;;  %v324_v8 = vld [vmem:[#allocation2 + $0xa58] sm:$0xff] }
 0x135   :  { %4403 = vmatprep.mubr.msk.f32.mxu1 %vm417_vm0, %v4871_v7  ;;  %1090 = vmatprep.subr.mxu0 %v273_v9  ;;  %v323_v9 = vld [vmem:[#allocation2 + $0xa50] sm:$0xff] }
 0x136   :  { %1394 = vmatpush1.msra.mxu1 %v371_v10  ;;  %4140 = vmatmul.mubr.msk.f32.gmra.mxu0 %vm417_vm0, %v27_v60  ;;  %v239_v60 = vld [vmem:[#allocation2 + $0x7b0] sm:$0xff]  ;;  %v321_v10 = vld [vmem:[#allocation2 + $0xa40] sm:$0xff] }
 0x137   :  { %1395 = vmatprep.subr.mxu1 %v369_v11  ;;  %790 = vmatprep.mubr.f32.mxu0 %v7844_v0  ;;  %v336_v11 = vld [vmem:[#allocation2 + $0xab8] sm:$0xff] }
 0x138   :  { %4404 = vmatmul.mubr.msk.f32.gmra.mxu1 %vm417_vm0, %v4878_v12  ;;  %1091 = vmatpush1.msra.mxu0 %v272_v14  ;;  %v318_v14 = vld [vmem:[#allocation2 + $0xa28] sm:$0xff] }
 0x139   :  { %4406 = vmatprep.mubr.msk.f32.mxu1 %vm417_vm0, %v4880_v13  ;;  %1092 = vmatprep.subr.mxu0 %v270_v15  ;;  %v317_v15 = vld [vmem:[#allocation2 + $0xa20] sm:$0xff] }
 0x13a   :  { %1396 = vmatpush1.msra.mxu1 %v368_v16  ;;  %4141 = vmatmul.mubr.msk.f32.gmra.mxu0 %vm417_vm0, %v28_v63  ;;  %v236_v63 = vld [vmem:[#allocation2 + $0x798] sm:$0xff]  ;;  %v315_v16 = vld [vmem:[#allocation2 + $0xa10] sm:$0xff] }
 0x13b   :  { %1397 = vmatprep.subr.mxu1 %v366_v17  ;;  %796 = vmatprep.mubr.f32.mxu0 %v7844_v0  ;;  %v333_v17 = vld [vmem:[#allocation2 + $0xaa0] sm:$0xff] }
 0x13c   :  { %4407 = vmatmul.mubr.msk.f32.gmra.mxu1 %vm417_vm0, %v4888_v18  ;;  %1093 = vmatpush1.msra.mxu0 %v269_v20  ;;  %v311_v20 = vld [vmem:[#allocation2 + $0x9f0] sm:$0xff] }
 0x13d   :  { %4409 = vmatprep.mubr.msk.f32.mxu1 %vm417_vm0, %v4890_v19  ;;  %1094 = vmatprep.subr.mxu0 %v267_v21  ;;  %v309_v21 = vld [vmem:[#allocation2 + $0x9e0] sm:$0xff] }
 0x13e   :  { %1398 = vmatpush1.msra.mxu1 %v365_v22  ;;  %4142 = vmatmul.mubr.msk.f32.gmra.mxu0 %vm417_vm0, %v29_v1  ;;  %v341_v1 = vld [vmem:[#allocation2 + $0xae0] sm:$0xff]  ;;  %v308_v22 = vld [vmem:[#allocation2 + $0x9d8] sm:$0xff] }
 0x13f   :  { %1399 = vmatprep.subr.mxu1 %v363_v23  ;;  %802 = vmatprep.mubr.f32.mxu0 %v7844_v0  ;;  %v306_v23 = vld [vmem:[#allocation2 + $0x9c8] sm:$0xff] }
 0x140   :  { %4410 = vmatmul.mubr.msk.f32.gmra.mxu1 %vm417_vm0, %v4898_v24  ;;  %1095 = vmatpush1.msra.mxu0 %v266_v26  ;;  %v302_v26 = vld [vmem:[#allocation2 + $0x9a8] sm:$0xff] }
 0x141   :  { %4412 = vmatprep.mubr.msk.f32.mxu1 %vm417_vm0, %v4900_v25  ;;  %1096 = vmatprep.subr.mxu0 %v264_v27  ;;  %v332_v27 = vld [vmem:[#allocation2 + $0xa98] sm:$0xff] }
 0x142   :  { %1400 = vmatpush1.msra.mxu1 %v362_v28  ;;  %4143 = vmatmul.mubr.msk.f32.gmra.mxu0 %vm417_vm0, %v30_v6  ;;  %v326_v6 = vld [vmem:[#allocation2 + $0xa68] sm:$0xff]  ;;  %v300_v28 = vld [vmem:[#allocation2 + $0x998] sm:$0xff] }
 0x143   :  { %1401 = vmatprep.subr.mxu1 %v360_v29  ;;  %808 = vmatprep.mubr.f32.mxu0 %v7844_v0  ;;  %v330_v29 = vld [vmem:[#allocation2 + $0xa88] sm:$0xff] }
 0x144   :  { %4413 = vmatmul.mubr.msk.f32.gmra.mxu1 %vm417_vm0, %v4908_v30  ;;  %1097 = vmatpush1.msra.mxu0 %v263_v32  ;;  %v297_v32 = vld [vmem:[#allocation2 + $0x980] sm:$0xff] }
 0x145   :  { %4415 = vmatprep.mubr.msk.f32.mxu1 %vm417_vm0, %v4910_v31  ;;  %1098 = vmatprep.subr.mxu0 %v261_v33  ;;  %v296_v33 = vld [vmem:[#allocation2 + $0x978] sm:$0xff] }
 0x146   :  { %1402 = vmatpush1.msra.mxu1 %v359_v34  ;;  %4144 = vmatmul.mubr.msk.f32.gmra.mxu0 %vm417_vm0, %v4871_v7  ;;  %v338_v7 = vld [vmem:[#allocation2 + $0xac8] sm:$0xff] }
 0x147   :  { %1403 = vmatprep.subr.mxu1 %v357_v35  ;;  %814 = vmatprep.mubr.f32.mxu0 %v7844_v0  ;;  %v294_v34 = vld [vmem:[#allocation2 + $0x968] sm:$0xff]  ;;  %v293_v35 = vld [vmem:[#allocation2 + $0x960] sm:$0xff] }
 0x148   :  { %4416 = vmatmul.mubr.msk.f32.gmra.mxu1 %vm417_vm0, %v4918_v36  ;;  %1099 = vmatpush1.msra.mxu0 %v260_v37  ;;  %v290_v37 = vld [vmem:[#allocation2 + $0x948] sm:$0xff] }
 0x149   :  { %1404 = vmatpush1.msra.mxu1 %v356_v38  ;;  %1100 = vmatprep.subr.mxu0 %v258_v39  ;;  %v288_v38 = vld [vmem:[#allocation2 + $0x938] sm:$0xff]  ;;  %v287_v39 = vld [vmem:[#allocation2 + $0x930] sm:$0xff] }
 0x14a   :  { %1405 = vmatprep.subr.mxu1 %v354_v40  ;;  %4145 = vmatmul.mubr.msk.f32.gmra.mxu0 %vm417_vm0, %v4878_v12  ;;  %v320_v12 = vld [vmem:[#allocation2 + $0xa38] sm:$0xff]  ;;  %v285_v40 = vld [vmem:[#allocation2 + $0x920] sm:$0xff] }
 0x14b   :  { %1406 = vmatpush1.msra.mxu1 %v353_v41  ;;  %820 = vmatprep.mubr.f32.mxu0 %v7844_v0  ;;  %v284_v41 = vld [vmem:[#allocation2 + $0x918] sm:$0xff] }
 0x14c   :  { %1101 = vmatpush1.msra.mxu0 %v257_v42  ;;  %1407 = vmatprep.subr.mxu1 %v351_v44  ;;  %v282_v42 = vld [vmem:[#allocation2 + $0x908] sm:$0xff] }
 0x14d   :  { %1102 = vmatprep.subr.mxu0 %v255_v43  ;;  %1408 = vmatpush1.msra.mxu1 %v350_v46  ;;  %v281_v43 = vld [vmem:[#allocation2 + $0x900] sm:$0xff] }
 0x14e   :  { %1103 = vmatpush1.msra.mxu0 %v254_v45  ;;  %1409 = vmatprep.subr.mxu1 %v348_v50  ;;  %v280_v45 = vld [vmem:[#allocation2 + $0x8f8] sm:$0xff] }
 0x14f   :  { %4146 = vmatmul.mubr.msk.f32.gmra.mxu0 %vm417_vm0, %v4880_v13  ;;  %1104 = vmatprep.subr.mxu0 %v252_v47  ;;  %v335_v13 = vld [vmem:[#allocation2 + $0xab0] sm:$0xff] }
 0x150   :  { %826 = vmatprep.mubr.f32.mxu0 %v7844_v0  ;;  %1105 = vmatpush1.msra.mxu0 %v251_v48  ;;  %v277_v48 = vld [vmem:[#allocation2 + $0x8e0] sm:$0xff] }
 0x151   :  { %1106 = vmatprep.subr.mxu0 %v249_v49  ;;  %1410 = vmatpush1.msra.mxu1 %v347_v52  ;;  %v4967_v52 = vld [vmem:[#allocation2 + $0xbf8] sm:$0xff] }
 0x152   :  { %1107 = vmatpush1.msra.mxu0 %v248_v51  ;;  %1411 = vmatprep.subr.mxu1 %v345_v56  ;;  %v274_v51 = vld [vmem:[#allocation2 + $0x8c8] sm:$0xff] }
 0x153   :  { %4147 = vmatmul.mubr.msk.f32.gmra.mxu0 %vm417_vm0, %v4888_v18  ;;  %1108 = vmatprep.subr.mxu0 %v246_v53  ;;  %v314_v18 = vld [vmem:[#allocation2 + $0xa08] sm:$0xff] }
 0x154   :  { %832 = vmatprep.mubr.f32.mxu0 %v7844_v0  ;;  %1109 = vmatpush1.msra.mxu0 %v245_v54 }
 0x155   :  { %1110 = vmatprep.subr.mxu0 %v243_v55  ;;  %1412 = vmatpush1.msra.mxu1 %v344_v58  ;;  %v271_v55 = vld [vmem:[#allocation2 + $0x8b0] sm:$0xff]  ;;  %v268_v58 = vld [vmem:[#allocation2 + $0x898] sm:$0xff] }
 0x156   :  { %1111 = vmatpush1.msra.mxu0 %v242_v57  ;;  %1413 = vmatprep.subr.mxu1 %v342_v62  ;;  %v4994_v62 = vld [vmem:[#allocation2 + $0xbe0] sm:$0xff] }
 0x157   :  { %4148 = vmatmul.mubr.msk.f32.gmra.mxu0 %vm417_vm0, %v4890_v19  ;;  %1112 = vmatprep.subr.mxu0 %v240_v59  ;;  %v312_v19 = vld [vmem:[#allocation2 + $0x9f8] sm:$0xff] }
 0x158   :  { %838 = vmatprep.mubr.f32.mxu0 %v7844_v0  ;;  %1113 = vmatpush1.msra.mxu0 %v239_v60 }
 0x159   :  { %1114 = vmatprep.subr.mxu0 %v237_v61  ;;  %1414 = vmatpush1.msra.mxu1 %v341_v1  ;;  %v265_v61 = vld [vmem:[#allocation2 + $0x880] sm:$0xff] }
 0x15a   :  { %1115 = vmatpush1.msra.mxu0 %v236_v63  ;;  %1415 = vmatprep.subr.mxu1 %v339_v5  ;;  %v259_v5 = vld [vmem:[#allocation2 + $0x850] sm:$0xff] }
 0x15b   :  { %4149 = vmatmul.mubr.msk.f32.gmra.mxu0 %vm417_vm0, %v4898_v24  ;;  %1116 = vmatprep.subr.mxu0 %v234_v2  ;;  %v305_v24 = vld [vmem:[#allocation2 + $0x9c0] sm:$0xff]  ;;  %v262_v2 = vld [vmem:[#allocation2 + $0x868] sm:$0xff] }
 0x15c   :  { %844 = vmatprep.mubr.f32.mxu0 %v7844_v0  ;;  %1117 = vmatpush1.msra.mxu0 %v233_v3 }
 0x15d   :  { %1118 = vmatprep.subr.mxu0 %v327_v4  ;;  %1416 = vmatpush1.msra.mxu1 %v338_v7 }
 0x15e   :  { %1119 = vmatpush2.msra.mxu0 %v326_v6  ;;  %1417 = vmatprep.subr.mxu1 %v336_v11 }
 0x15f   :  { %4150 = vmatmul.mubr.msk.f32.gmra.mxu0 %vm417_vm0, %v4900_v25  ;;  %1120 = vmatprep.subr.mxu0 %v324_v8  ;;  %v303_v25 = vld [vmem:[#allocation2 + $0x9b0] sm:$0xff]  ;;  %v256_v8 = vld [vmem:[#allocation2 + $0x838] sm:$0xff] }
 0x160   :  { %850 = vmatprep.mubr.f32.mxu0 %v7844_v0  ;;  %1121 = vmatpush2.msra.mxu0 %v323_v9  ;;  %v5021_v9 = vld [vmem:[#allocation2 + $0xbc8] sm:$0xff] }
 0x161   :  { %1122 = vmatprep.subr.mxu0 %v321_v10  ;;  %1418 = vmatpush1.msra.mxu1 %v335_v13 }
 0x162   :  { %1123 = vmatpush2.msra.mxu0 %v320_v12  ;;  %1419 = vmatprep.subr.mxu1 %v333_v17  ;;  %v253_v12 = vld [vmem:[#allocation2 + $0x820] sm:$0xff] }
 0x163   :  { %4151 = vmatmul.mubr.msk.f32.gmra.mxu0 %vm417_vm0, %v4908_v30  ;;  %1124 = vmatprep.subr.mxu0 %v318_v14  ;;  %v299_v30 = vld [vmem:[#allocation2 + $0x990] sm:$0xff] }
 0x164   :  { %856 = vmatprep.mubr.f32.mxu0 %v7844_v0  ;;  %1125 = vmatpush2.msra.mxu0 %v317_v15  ;;  %v250_v15 = vld [vmem:[#allocation2 + $0x808] sm:$0xff] }
 0x165   :  { %1126 = vmatprep.subr.mxu0 %v315_v16  ;;  %1455 = vmatprep.mubr.f32.mxu1 %v7844_v0 }
 0x166   :  { %1127 = vmatpush2.msra.mxu0 %v314_v18  ;;  %1420 = vmatpush1.msra.mxu1 %v332_v27  ;;  %v247_v18 = vld [vmem:[#allocation2 + $0x7f0] sm:$0xff] }
 0x167   :  { %4152 = vmatmul.mubr.msk.f32.gmra.mxu0 %vm417_vm0, %v4910_v31  ;;  %1128 = vmatprep.subr.mxu0 %v312_v19  ;;  %v329_v31 = vld [vmem:[#allocation2 + $0xa80] sm:$0xff]  ;;  %v5048_v19 = vld [vmem:[#allocation2 + $0xbb0] sm:$0xff] }
 0x168   :  { %862 = vmatprep.mubr.f32.mxu0 %v7844_v0  ;;  %1129 = vmatpush2.msra.mxu0 %v311_v20 }
 0x169   :  { %1130 = vmatprep.subr.mxu0 %v309_v21  ;;  %1421 = vmatprep.subr.mxu1 %v330_v29  ;;  %v5075_v29 = vld [vmem:[#allocation2 + $0xb98] sm:$0xff] }
 0x16a   :  { %1131 = vmatpush2.msra.mxu0 %v308_v22  ;;  %1422 = vmatpush1.msra.mxu1 %v329_v31  ;;  %v244_v22 = vld [vmem:[#allocation2 + $0x7d8] sm:$0xff] }
 0x16b   :  { %4153 = vmatmul.mubr.msk.f32.gmra.mxu0 %vm417_vm0, %v4918_v36  ;;  %1132 = vmatprep.subr.mxu0 %v306_v23  ;;  %v291_v36 = vld [vmem:[#allocation2 + $0x950] sm:$0xff] }
 0x16c   :  { %1133 = vmatpush2.msra.mxu0 %v305_v24  ;;  %1696 = vmatprep.subr.mxu1 %v7844_v0 }
 0x16d   :  { %1134 = vmatprep.subr.mxu0 %v303_v25  ;;  %v241_v25 = vld [vmem:[#allocation2 + $0x7c0] sm:$0xff] }
 0x16e   :  { %1135 = vmatpush2.msra.mxu0 %v302_v26 }
 0x16f   :  { %1136 = vmatprep.subr.mxu0 %v300_v28  ;;  %v238_v28 = vld [vmem:[#allocation2 + $0x7a8] sm:$0xff] }
 0x170   :  { %1137 = vmatpush2.msra.mxu0 %v299_v30 }
 0x171   :  { %1138 = vmatprep.subr.mxu0 %v297_v32  ;;  %v235_v32 = vld [vmem:[#allocation2 + $0x790] sm:$0xff] }
 0x172   :  { %1139 = vmatpush2.msra.mxu0 %v296_v33 }
 0x173   :  { %1140 = vmatprep.subr.mxu0 %v294_v34 }
 0x174   :  { %1141 = vmatpush2.msra.mxu0 %v293_v35  ;;  %v328_v35 = vld [vmem:[#allocation2 + $0xa78] sm:$0xff] }
 0x175   :  { %1142 = vmatprep.subr.mxu0 %v291_v36 }
 0x176   :  { %1143 = vmatpush2.msra.mxu0 %v290_v37 }
 0x177   :  { %1144 = vmatprep.subr.mxu0 %v288_v38  ;;  %v325_v38 = vld [vmem:[#allocation2 + $0xa60] sm:$0xff] }
 0x178   :  { %1145 = vmatpush2.msra.mxu0 %v287_v39  ;;  %v5102_v39 = vld [vmem:[#allocation2 + $0xb80] sm:$0xff] }
 0x179   :  { %1146 = vmatprep.subr.mxu0 %v285_v40 }
 0x17a   :  { %1147 = vmatpush2.msra.mxu0 %v284_v41 }
 0x17b   :  { %1148 = vmatprep.subr.mxu0 %v282_v42  ;;  %v322_v42 = vld [vmem:[#allocation2 + $0xa48] sm:$0xff] }
 0x17c   :  { %1149 = vmatpush2.msra.mxu0 %v281_v43 }
 0x17d   :  { %4418 = vmatprep.subr.mxu0 %v4967_v52 }
 0x1ec   :  { %v4953_v44 = vpop.f32.mrf.mxu1 }
 0x1ee   :  { %v4955_v46 = vpop.f32.mrf.mxu1  ;;  %v4957_v47 = vpop.f32.mrf.mxu0 }
 0x1ef   :  { %1456 = vmatmul.mubr.f32.vlgmr.msra.gmra.mxu1 %v4955_v46 }
 0x1f0   :  { %1461 = vmatprep.mubr.f32.mxu1 %v7844_v0  ;;  %1697 = vmatpush1.msra.mxu1 %v280_v45  ;;  %v4961_v49 = vpop.f32.mrf.mxu0  ;;  %v4964_v50 = vpop.f32.mrf.mxu1 }
 0x1f1   :  { %1698 = vmatprep.subr.mxu1 %v7844_v0  ;;  %1150 = vmatprep.mubr.f32.mxu0 %v4961_v49 }
 0x1f2   :  { %1699 = vmatpush1.msra.mxu1 %v277_v48  ;;  %v4969_v53 = vpop.f32.mrf.mxu0  ;;  %1151 = vmatmul.mubr.f32.vlgmr.msra.gmra.mxu0 %v4957_v47  ;;  %v4978_v56 = vpop.f32.mrf.mxu1  ;;  %v319_v48 = vld [vmem:[#allocation2 + $0xa30] sm:$0xff] }
 0x1f3   :  { %1462 = vmatmul.mubr.f32.gmra.mxu1 %v4953_v44  ;;  %1700 = vmatprep.subr.mxu1 %v7844_v0 }
 0x1f4   :  { %1467 = vmatprep.mubr.f32.mxu1 %v7844_v0  ;;  %v4975_v54 = vpop.f32.mrf.mxu0  ;;  %1701 = vmatpush1.msra.mxu1 %v274_v51  ;;  %v4991_v60 = vpop.f32.mrf.mxu1 }
 0x1f5   :  { %1156 = vmatprep.mubr.f32.mxu0 %v4975_v54  ;;  %1702 = vmatprep.subr.mxu1 %v7844_v0 }
 0x1f6   :  { %v4982_v57 = vpop.f32.mrf.mxu0  ;;  %1157 = vmatmul.mubr.f32.gmra.mxu0 %v4969_v53  ;;  %1703 = vmatpush1.msra.mxu1 %v271_v55  ;;  %v5005_v3 = vpop.f32.mrf.mxu1 }
 0x1f7   :  { %1468 = vmatmul.mubr.f32.gmra.mxu1 %v4978_v56  ;;  %1704 = vmatprep.subr.mxu1 %v7844_v0 }
 0x1f8   :  { %1473 = vmatprep.mubr.f32.mxu1 %v7844_v0  ;;  %v4987_v59 = vpop.f32.mrf.mxu0  ;;  %4419 = vmatpush3.msra.mxu0 %v4967_v52  ;;  %v5018_v7 = vpop.f32.mrf.mxu1 }
 0x1f9   :  { %1162 = vmatprep.mubr.f32.mxu0 %v4987_v59  ;;  %1705 = vmatpush1.msra.mxu1 %v268_v58  ;;  %v316_v58 = vld [vmem:[#allocation2 + $0xa18] sm:$0xff] }
 0x1fa   :  { %v4996_v63 = vpop.f32.mrf.mxu0  ;;  %1163 = vmatmul.mubr.f32.gmra.mxu0 %v4982_v57  ;;  %1706 = vmatprep.subr.mxu1 %v7844_v0  ;;  %v5032_v13 = vpop.f32.mrf.mxu1 }
 0x1fb   :  { %1474 = vmatmul.mubr.f32.gmra.mxu1 %v4964_v50  ;;  %4420 = vmatprep.subr.mxu0 %v4994_v62 }
 0x1fc   :  { %1479 = vmatprep.mubr.f32.mxu1 %v7844_v0  ;;  %v5002_v1 = vpop.f32.mrf.mxu0  ;;  %1707 = vmatpush1.msra.mxu1 %v265_v61  ;;  %v5045_v17 = vpop.f32.mrf.mxu1  ;;  %v5129_v61 = vld [vmem:[#allocation2 + $0xb68] sm:$0xff] }
 0x1fd   :  { %1168 = vmatprep.mubr.f32.mxu0 %v5002_v1  ;;  %1708 = vmatprep.subr.mxu1 %v7844_v0 }
 0x1fe   :  { %v5009_v4 = vpop.f32.mrf.mxu0  ;;  %1169 = vmatmul.mubr.f32.gmra.mxu0 %v4996_v63  ;;  %1709 = vmatpush1.msra.mxu1 %v262_v2  ;;  %v5059_v23 = vpop.f32.mrf.mxu1 }
 0x1ff   :  { %1480 = vmatmul.mubr.f32.gmra.mxu1 %v5005_v3  ;;  %1710 = vmatprep.subr.mxu1 %v7844_v0 }
 0x200   :  { %1485 = vmatprep.mubr.f32.mxu1 %v7844_v0  ;;  %v5014_v6 = vpop.f32.mrf.mxu0  ;;  %4421 = vmatpush3.msra.mxu0 %v4994_v62  ;;  %v5072_v27 = vpop.f32.mrf.mxu1 }
 0x201   :  { %1174 = vmatprep.mubr.f32.mxu0 %v5014_v6  ;;  %1711 = vmatpush1.msra.mxu1 %v259_v5 }
 0x202   :  { %v5023_v10 = vpop.f32.mrf.mxu0  ;;  %1175 = vmatmul.mubr.f32.gmra.mxu0 %v5009_v4  ;;  %1712 = vmatprep.subr.mxu1 %v7844_v0  ;;  %v5086_v33 = vpop.f32.mrf.mxu1 }
 0x203   :  { %1486 = vmatmul.mubr.f32.gmra.mxu1 %v4991_v60  ;;  %4422 = vmatprep.subr.mxu0 %v5021_v9 }
 0x204   :  { %1491 = vmatprep.mubr.f32.mxu1 %v7844_v0  ;;  %v5029_v11 = vpop.f32.mrf.mxu0  ;;  %1713 = vmatpush1.msra.mxu1 %v256_v8  ;;  %v5099_v37 = vpop.f32.mrf.mxu1  ;;  %v313_v8 = vld [vmem:[#allocation2 + $0xa00] sm:$0xff] }
 0x205   :  { %1180 = vmatprep.mubr.f32.mxu0 %v5029_v11  ;;  %1714 = vmatprep.subr.mxu1 %v7844_v0 }
 0x206   :  { %v5036_v14 = vpop.f32.mrf.mxu0  ;;  %1181 = vmatmul.mubr.f32.gmra.mxu0 %v5023_v10  ;;  %1715 = vmatpush1.msra.mxu1 %v253_v12  ;;  %v5113_v43 = vpop.f32.mrf.mxu1 }
 0x207   :  { %1492 = vmatmul.mubr.f32.gmra.mxu1 %v5032_v13  ;;  %1716 = vmatprep.subr.mxu1 %v7844_v0 }
 0x208   :  { %1497 = vmatprep.mubr.f32.mxu1 %v7844_v0  ;;  %v5041_v16 = vpop.f32.mrf.mxu0  ;;  %4423 = vmatpush3.msra.mxu0 %v5021_v9  ;;  %v5126_v55 = vpop.f32.mrf.mxu1 }
 0x209   :  { %1186 = vmatprep.mubr.f32.mxu0 %v5041_v16  ;;  %1717 = vmatpush1.msra.mxu1 %v250_v15 }
 0x20a   :  { %v5050_v20 = vpop.f32.mrf.mxu0  ;;  %1187 = vmatmul.mubr.f32.gmra.mxu0 %v5036_v14  ;;  %1718 = vmatprep.subr.mxu1 %v7844_v0  ;;  %v5140_v12 = vpop.f32.mrf.mxu1 }
 0x20b   :  { %1498 = vmatmul.mubr.f32.gmra.mxu1 %v5018_v7  ;;  %4424 = vmatprep.subr.mxu0 %v5048_v19 }
 0x20c   :  { %1503 = vmatprep.mubr.f32.mxu1 %v7844_v0  ;;  %v5056_v21 = vpop.f32.mrf.mxu0  ;;  %1719 = vmatpush1.msra.mxu1 %v247_v18  ;;  %v310_v18 = vld [vmem:[#allocation2 + $0x9e8] sm:$0xff] }
 0x20d   :  { %1192 = vmatprep.mubr.f32.mxu0 %v5056_v21  ;;  %1720 = vmatprep.subr.mxu1 %v7844_v0 }
 0x20e   :  { %1193 = vmatmul.mubr.f32.gmra.mxu0 %v5050_v20  ;;  %1721 = vmatpush1.msra.mxu1 %v244_v22 }
 0x20f   :  { %v5063_v24 = vpop.f32.mrf.mxu0  ;;  %1504 = vmatmul.mubr.f32.gmra.mxu1 %v5059_v23  ;;  %1722 = vmatprep.subr.mxu1 %v7844_v0 }
 0x210   :  { %1509 = vmatprep.mubr.f32.mxu1 %v7844_v0  ;;  %4425 = vmatpush3.msra.mxu0 %v5048_v19 }
 0x211   :  { %v5068_v26 = vpop.f32.mrf.mxu0  ;;  %1723 = vmatpush1.msra.mxu1 %v241_v25  ;;  %4426 = vmatprep.subr.mxu0 %v5075_v29  ;;  %v307_v25 = vld [vmem:[#allocation2 + $0x9d0] sm:$0xff] }
 0x212   :  { %1198 = vmatprep.mubr.f32.mxu0 %v5068_v26  ;;  %1724 = vmatprep.subr.mxu1 %v7844_v0 }
 0x213   :  { %v5077_v30 = vpop.f32.mrf.mxu0  ;;  %1199 = vmatmul.mubr.f32.gmra.mxu0 %v5063_v24  ;;  %1510 = vmatmul.mubr.f32.gmra.mxu1 %v5045_v17 }
 0x214   :  { %1515 = vmatprep.mubr.f32.mxu1 %v7844_v0  ;;  %1725 = vmatpush1.msra.mxu1 %v238_v28  ;;  %v5154_v28 = vld [vmem:[#allocation2 + $0xb50] sm:$0xff] }
 0x215   :  { %v5083_v31 = vpop.f32.mrf.mxu0  ;;  %1726 = vmatprep.subr.mxu1 %v7844_v0  ;;  %4427 = vmatpush3.msra.mxu0 %v5075_v29  ;;  %7962 = vst [vmem:[#allocation5_spill] sm:$0xff] %v5154_v28 }
 0x216   :  { %1204 = vmatprep.mubr.f32.mxu0 %v5083_v31  ;;  %1727 = vmatpush1.msra.mxu1 %v235_v32 }
 0x217   :  { %v5090_v34 = vpop.f32.mrf.mxu0  ;;  %1205 = vmatmul.mubr.f32.gmra.mxu0 %v5077_v30  ;;  %1516 = vmatmul.mubr.f32.gmra.mxu1 %v5086_v33 }
 0x218   :  { %1521 = vmatprep.mubr.f32.mxu1 %v7844_v0  ;;  %1728 = vmatprep.subr.mxu1 %v7844_v0 }
 0x219   :  { %v5095_v36 = vpop.f32.mrf.mxu0  ;;  %1729 = vmatpush2.msra.mxu1 %v328_v35  ;;  %4428 = vmatprep.subr.mxu0 %v5102_v39 }
 0x21a   :  { %1210 = vmatprep.mubr.f32.mxu0 %v5095_v36  ;;  %1730 = vmatprep.subr.mxu1 %v7844_v0 }
 0x21b   :  { %v5104_v40 = vpop.f32.mrf.mxu0  ;;  %1211 = vmatmul.mubr.f32.gmra.mxu0 %v5090_v34  ;;  %1522 = vmatmul.mubr.f32.gmra.mxu1 %v5072_v27 }
 0x21c   :  { %1527 = vmatprep.mubr.f32.mxu1 %v7844_v0  ;;  %1731 = vmatpush2.msra.mxu1 %v325_v38  ;;  %v5166_v38 = vmul.f32 %v4955_v46, %v4955_v46 }
 0x21d   :  { %v5110_v41 = vpop.f32.mrf.mxu0  ;;  %1732 = vmatprep.subr.mxu1 %v7844_v0  ;;  %4429 = vmatpush3.msra.mxu0 %v5102_v39 }
 0x21e   :  { %1216 = vmatprep.mubr.f32.mxu0 %v5110_v41  ;;  %1733 = vmatpush2.msra.mxu1 %v322_v42  ;;  %7963 = vst [vmem:[#allocation6_spill] sm:$0xff] %v5166_v38  ;;  %v5172_v42 = vmul.f32 %v4961_v49, %v4961_v49 }
 0x21f   :  { %v5117_v45 = vpop.f32.mrf.mxu0  ;;  %1217 = vmatmul.mubr.f32.gmra.mxu0 %v5104_v40  ;;  %1528 = vmatmul.mubr.f32.gmra.mxu1 %v5113_v43 }
 0x220   :  { %1533 = vmatprep.mubr.f32.mxu1 %v7844_v0  ;;  %1734 = vmatprep.subr.mxu1 %v7844_v0  ;;  %7964 = vst [vmem:[#allocation7_spill] sm:$0xff] %v5172_v42 }
 0x221   :  { %v5122_v51 = vpop.f32.mrf.mxu0  ;;  %1735 = vmatpush2.msra.mxu1 %v319_v48  ;;  %4430 = vmatprep.subr.mxu0 %v5129_v61  ;;  %v304_v48 = vld [vmem:[#allocation2 + $0x9b8] sm:$0xff] }
 0x222   :  { %1222 = vmatprep.mubr.f32.mxu0 %v5122_v51  ;;  %1736 = vmatprep.subr.mxu1 %v7844_v0 }
 0x223   :  { %v5131_v2 = vpop.f32.mrf.mxu0  ;;  %1223 = vmatmul.mubr.f32.gmra.mxu0 %v5117_v45  ;;  %1534 = vmatmul.mubr.f32.gmra.mxu1 %v5099_v37 }
 0x224   :  { %1539 = vmatprep.mubr.f32.mxu1 %v7844_v0  ;;  %1737 = vmatpush2.msra.mxu1 %v316_v58  ;;  %v5177_v58 = vld [vmem:[#allocation2 + $0xb38] sm:$0xff] }
 0x225   :  { %v5137_v5 = vpop.f32.mrf.mxu0  ;;  %1738 = vmatprep.subr.mxu1 %v7844_v0  ;;  %4431 = vmatpush3.msra.mxu0 %v5129_v61  ;;  %7965 = vst [vmem:[#allocation8_spill] sm:$0xff] %v5177_v58 }
 0x226   :  { %1228 = vmatprep.mubr.f32.mxu0 %v5137_v5  ;;  %1739 = vmatpush2.msra.mxu1 %v313_v8  ;;  %v5183_v8 = vmul.f32 %v4957_v47, %v4957_v47 }
 0x227   :  { %v5144_v15 = vpop.f32.mrf.mxu0  ;;  %1229 = vmatmul.mubr.f32.gmra.mxu0 %v5131_v2  ;;  %1540 = vmatmul.mubr.f32.gmra.mxu1 %v5140_v12 }
 0x228   :  { %1545 = vmatprep.mubr.f32.mxu1 %v7844_v0  ;;  %1740 = vmatprep.subr.mxu1 %v7844_v0  ;;  %7966 = vst [vmem:[#allocation9_spill] sm:$0xff] %v5183_v8 }
 0x229   :  { %v5149_v22 = vpop.f32.mrf.mxu0  ;;  %1741 = vmatpush2.msra.mxu1 %v310_v18  ;;  %4432 = vmatprep.subr.mxu0 %v5154_v28  ;;  %v5187_v18 = vmul.f32 %v4953_v44, %v4953_v44 }
 0x22a   :  { %1234 = vmatprep.mubr.f32.mxu0 %v5149_v22  ;;  %1742 = vmatprep.subr.mxu1 %v7844_v0 }
 0x22b   :  { %v5156_v32 = vpop.f32.mrf.mxu0  ;;  %1235 = vmatmul.mubr.f32.gmra.mxu0 %v5144_v15  ;;  %1546 = vmatmul.mubr.f32.gmra.mxu1 %v5126_v55  ;;  %7967 = vst [vmem:[#allocation10_spill] sm:$0xff] %v5187_v18 }
 0x22c   :  { %1551 = vmatprep.mubr.f32.mxu1 %v7844_v0  ;;  %1743 = vmatpush2.msra.mxu1 %v307_v25  ;;  %v5192_v25 = vmul.f32 %v4975_v54, %v4975_v54 }
 0x22d   :  { %v5162_v35 = vpop.f32.mrf.mxu0  ;;  %1744 = vmatprep.subr.mxu1 %v7844_v0  ;;  %4433 = vmatpush3.msra.mxu0 %v5154_v28  ;;  %v5208_v28 = vmul.f32 %v4978_v56, %v4978_v56 }
 0x22e   :  { %1240 = vmatprep.mubr.f32.mxu0 %v5162_v35  ;;  %1745 = vmatpush2.msra.mxu1 %v304_v48  ;;  %7968 = vst [vmem:[#allocation11_spill] sm:$0xff] %v5192_v25  ;;  %v5204_v48 = vmul.f32 %v4969_v53, %v4969_v53 }
 0x22f   :  { %1241 = vmatmul.mubr.f32.gmra.mxu0 %v5156_v32  ;;  %1552 = vmatmul.mubr.f32.gmra.mxu1 %v5166_v38  ;;  %v5198_v38 = vld [vmem:[#allocation2 + $0xb20] sm:$0xff]  ;;  %7971 = vst [vmem:[#allocation14_spill] sm:$0xff] %v5208_v28 }
 0x230   :  { %1246 = vmatprep.mubr.f32.mxu0 %v5172_v42  ;;  %1557 = vmatprep.mubr.f32.mxu1 %v7844_v0  ;;  %v301_v42 = vld [vmem:[#allocation2 + $0x9a0] sm:$0xff]  ;;  %7969 = vst [vmem:[#allocation12_spill] sm:$0xff] %v5198_v38  ;;  %7970 = vst [vmem:[#allocation13_spill] sm:$0xff] %v5204_v48 }
 0x231   :  { %1746 = vmatprep.subr.mxu1 %v7844_v0  ;;  %4434 = vmatprep.subr.mxu0 %v5177_v58 }
 0x232   :  { %1747 = vmatpush2.msra.mxu1 %v301_v42  ;;  %4435 = vmatpush3.msra.mxu0 %v5177_v58  ;;  %v5225_v42 = vmul.f32 %v4982_v57, %v4982_v57  ;;  %v5229_v58 = vmul.f32 %v4964_v50, %v4964_v50 }
 0x233   :  { %1247 = vmatmul.mubr.f32.gmra.mxu0 %v5183_v8  ;;  %1558 = vmatmul.mubr.f32.gmra.mxu1 %v5187_v18  ;;  %v5213_v8 = vmul.f32 %v4987_v59, %v4987_v59  ;;  %v5219_v18 = vld [vmem:[#allocation2 + $0xb08] sm:$0xff] }
 0x234   :  { %1252 = vmatprep.mubr.f32.mxu0 %v5192_v25  ;;  %1563 = vmatprep.mubr.f32.mxu1 %v7844_v0  ;;  %v298_v25 = vld [vmem:[#allocation2 + $0x988] sm:$0xff]  ;;  %7973 = vst [vmem:[#allocation16_spill] sm:$0xff] %v5219_v18  ;;  %7974 = vst [vmem:[#allocation17_spill] sm:$0xff] %v5225_v42 }
 0x235   :  { %7972 = vst [vmem:[#allocation15_spill] sm:$0xff] %v5213_v8  ;;  %1748 = vmatprep.subr.mxu1 %v7844_v0  ;;  %4436 = vmatprep.subr.mxu0 %v5198_v38  ;;  %7975 = vst [vmem:[#allocation18_spill] sm:$0xff] %v5229_v58 }
 0x236   :  { %1749 = vmatpush2.msra.mxu1 %v298_v25  ;;  %4437 = vmatpush3.msra.mxu0 %v5198_v38  ;;  %v5246_v25 = vmul.f32 %v4996_v63, %v4996_v63  ;;  %v5250_v38 = vmul.f32 %v5005_v3, %v5005_v3 }
 0x237   :  { %1253 = vmatmul.mubr.f32.gmra.mxu0 %v5204_v48  ;;  %1564 = vmatmul.mubr.f32.gmra.mxu1 %v5208_v28  ;;  %v5234_v48 = vmul.f32 %v5002_v1, %v5002_v1  ;;  %v5240_v28 = vld [vmem:[#allocation2 + $0xaf0] sm:$0xff] }
 0x238   :  { %1258 = vmatprep.mubr.f32.mxu0 %v5213_v8  ;;  %1569 = vmatprep.mubr.f32.mxu1 %v7844_v0  ;;  %v295_v8 = vld [vmem:[#allocation2 + $0x970] sm:$0xff]  ;;  %7977 = vst [vmem:[#allocation20_spill] sm:$0xff] %v5240_v28  ;;  %7978 = vst [vmem:[#allocation21_spill] sm:$0xff] %v5246_v25 }
 0x239   :  { %7976 = vst [vmem:[#allocation19_spill] sm:$0xff] %v5234_v48  ;;  %1750 = vmatprep.subr.mxu1 %v7844_v0  ;;  %4438 = vmatprep.subr.mxu0 %v5219_v18  ;;  %7979 = vst [vmem:[#allocation22_spill] sm:$0xff] %v5250_v38 }
 0x23a   :  { %1751 = vmatpush2.msra.mxu1 %v295_v8  ;;  %4439 = vmatpush3.msra.mxu0 %v5219_v18  ;;  %v5267_v8 = vmul.f32 %v5009_v4, %v5009_v4  ;;  %v5271_v18 = vmul.f32 %v4991_v60, %v4991_v60 }
 0x23b   :  { %1259 = vmatmul.mubr.f32.gmra.mxu0 %v5225_v42  ;;  %1570 = vmatmul.mubr.f32.gmra.mxu1 %v5229_v58  ;;  %v5255_v42 = vmul.f32 %v5014_v6, %v5014_v6  ;;  %v5261_v58 = vld [vmem:[#allocation2 + $0xad8] sm:$0xff] }
 0x23c   :  { %1264 = vmatprep.mubr.f32.mxu0 %v5234_v48  ;;  %1575 = vmatprep.mubr.f32.mxu1 %v7844_v0  ;;  %v292_v48 = vld [vmem:[#allocation2 + $0x958] sm:$0xff]  ;;  %7981 = vst [vmem:[#allocation24_spill] sm:$0xff] %v5261_v58  ;;  %7982 = vst [vmem:[#allocation25_spill] sm:$0xff] %v5267_v8 }
 0x23d   :  { %7980 = vst [vmem:[#allocation23_spill] sm:$0xff] %v5255_v42  ;;  %1752 = vmatprep.subr.mxu1 %v7844_v0  ;;  %4440 = vmatprep.subr.mxu0 %v5240_v28  ;;  %7983 = vst [vmem:[#allocation26_spill] sm:$0xff] %v5271_v18 }
 0x23e   :  { %1753 = vmatpush2.msra.mxu1 %v292_v48  ;;  %4441 = vmatpush3.msra.mxu0 %v5240_v28  ;;  %v5288_v48 = vmul.f32 %v5023_v10, %v5023_v10  ;;  %v5292_v28 = vmul.f32 %v5032_v13, %v5032_v13 }
 0x23f   :  { %1265 = vmatmul.mubr.f32.gmra.mxu0 %v5246_v25  ;;  %1576 = vmatmul.mubr.f32.gmra.mxu1 %v5250_v38  ;;  %v5276_v25 = vmul.f32 %v5029_v11, %v5029_v11  ;;  %v5282_v38 = vld [vmem:[#allocation2 + $0xac0] sm:$0xff] }
 0x240   :  { %1270 = vmatprep.mubr.f32.mxu0 %v5255_v42  ;;  %1581 = vmatprep.mubr.f32.mxu1 %v7844_v0  ;;  %v289_v42 = vld [vmem:[#allocation2 + $0x940] sm:$0xff]  ;;  %7985 = vst [vmem:[#allocation28_spill] sm:$0xff] %v5282_v38  ;;  %7986 = vst [vmem:[#allocation29_spill] sm:$0xff] %v5288_v48 }
 0x241   :  { %7984 = vst [vmem:[#allocation27_spill] sm:$0xff] %v5276_v25  ;;  %1754 = vmatprep.subr.mxu1 %v7844_v0  ;;  %4442 = vmatprep.subr.mxu0 %v5261_v58  ;;  %7987 = vst [vmem:[#allocation30_spill] sm:$0xff] %v5292_v28 }
 0x242   :  { %1755 = vmatpush2.msra.mxu1 %v289_v42  ;;  %4443 = vmatpush3.msra.mxu0 %v5261_v58  ;;  %v5309_v42 = vmul.f32 %v5036_v14, %v5036_v14  ;;  %v5313_v58 = vmul.f32 %v5018_v7, %v5018_v7 }
 0x243   :  { %1271 = vmatmul.mubr.f32.gmra.mxu0 %v5267_v8  ;;  %1582 = vmatmul.mubr.f32.gmra.mxu1 %v5271_v18  ;;  %v5297_v8 = vmul.f32 %v5041_v16, %v5041_v16  ;;  %v5303_v18 = vld [vmem:[#allocation2 + $0xaa8] sm:$0xff] }
 0x244   :  { %1276 = vmatprep.mubr.f32.mxu0 %v5276_v25  ;;  %1587 = vmatprep.mubr.f32.mxu1 %v7844_v0  ;;  %v286_v25 = vld [vmem:[#allocation2 + $0x928] sm:$0xff]  ;;  %7989 = vst [vmem:[#allocation32_spill] sm:$0xff] %v5303_v18  ;;  %7990 = vst [vmem:[#allocation33_spill] sm:$0xff] %v5309_v42 }
 0x245   :  { %7988 = vst [vmem:[#allocation31_spill] sm:$0xff] %v5297_v8  ;;  %1756 = vmatprep.subr.mxu1 %v7844_v0  ;;  %4444 = vmatprep.subr.mxu0 %v5282_v38 }
 0x246   :  { %1757 = vmatpush2.msra.mxu1 %v286_v25  ;;  %4445 = vmatpush3.msra.mxu0 %v5282_v38  ;;  %v5330_v25 = vmul.f32 %v5050_v20, %v5050_v20  ;;  %v5334_v38 = vmul.f32 %v5059_v23, %v5059_v23 }
 0x247   :  { %1277 = vmatmul.mubr.f32.gmra.mxu0 %v5288_v48  ;;  %1588 = vmatmul.mubr.f32.gmra.mxu1 %v5292_v28  ;;  %v5318_v48 = vmul.f32 %v5056_v21, %v5056_v21  ;;  %v5324_v28 = vld [vmem:[#allocation2 + $0xa90] sm:$0xff] }
 0x248   :  { %1282 = vmatprep.mubr.f32.mxu0 %v5297_v8  ;;  %1593 = vmatprep.mubr.f32.mxu1 %v7844_v0  ;;  %v283_v8 = vld [vmem:[#allocation2 + $0x910] sm:$0xff]  ;;  %7992 = vst [vmem:[#allocation35_spill] sm:$0xff] %v5324_v28  ;;  %7993 = vst [vmem:[#allocation36_spill] sm:$0xff] %v5330_v25 }
 0x249   :  { %7991 = vst [vmem:[#allocation34_spill] sm:$0xff] %v5318_v48  ;;  %1758 = vmatprep.subr.mxu1 %v7844_v0  ;;  %4446 = vmatprep.subr.mxu0 %v5303_v18 }
 0x24a   :  { %1759 = vmatpush2.msra.mxu1 %v283_v8  ;;  %4447 = vmatpush3.msra.mxu0 %v5303_v18  ;;  %v5349_v8 = vmul.f32 %v5063_v24, %v5063_v24  ;;  %v5358_v18 = vmul.f32 %v5083_v31, %v5083_v31 }
 0x24b   :  { %1283 = vmatmul.mubr.f32.gmra.mxu0 %v5309_v42  ;;  %1594 = vmatmul.mubr.f32.gmra.mxu1 %v5313_v58  ;;  %v5339_v42 = vmul.f32 %v5068_v26, %v5068_v26 }
 0x24c   :  { %1288 = vmatprep.mubr.f32.mxu0 %v5318_v48  ;;  %1599 = vmatprep.mubr.f32.mxu1 %v7844_v0  ;;  %7995 = vst [vmem:[#allocation38_spill] sm:$0xff] %v5349_v8  ;;  %v5353_v48 = vmul.f32 %v5045_v17, %v5045_v17  ;;  %7997 = vst [vmem:[#allocation40_spill] sm:$0xff] %v5358_v18 }
 0x24d   :  { %7994 = vst [vmem:[#allocation37_spill] sm:$0xff] %v5339_v42  ;;  %4448 = vmatprep.subr.mxu0 %v5324_v28  ;;  %4586 = vmatprep.subr.mxu1 %v4967_v52 }
 0x24e   :  { %7996 = vst [vmem:[#allocation39_spill] sm:$0xff] %v5353_v48  ;;  %4449 = vmatpush3.msra.mxu0 %v5324_v28  ;;  %v5374_v28 = vmul.f32 %v5095_v36, %v5095_v36 }
 0x24f   :  { %1289 = vmatmul.mubr.f32.gmra.mxu0 %v5330_v25  ;;  %1600 = vmatmul.mubr.f32.gmra.mxu1 %v5334_v38  ;;  %v5370_v25 = vmul.f32 %v5086_v33, %v5086_v33 }
 0x250   :  { %1294 = vmatprep.mubr.f32.mxu0 %v5339_v42  ;;  %1605 = vmatprep.mubr.f32.mxu1 %v7844_v0  ;;  %v5366_v42 = vmul.f32 %v5077_v30, %v5077_v30  ;;  %8000 = vst [vmem:[#allocation43_spill] sm:$0xff] %v5374_v28 }
 0x251   :  { %7999 = vst [vmem:[#allocation42_spill] sm:$0xff] %v5370_v25 }
 0x252   :  { %7998 = vst [vmem:[#allocation41_spill] sm:$0xff] %v5366_v42 }
 0x253   :  { %1295 = vmatmul.mubr.f32.gmra.mxu0 %v5349_v8  ;;  %1606 = vmatmul.mubr.f32.gmra.mxu1 %v5353_v48  ;;  %v5386_v8 = vmul.f32 %v5072_v27, %v5072_v27  ;;  %v5390_v48 = vmul.f32 %v5110_v41, %v5110_v41 }
 0x254   :  { %1300 = vmatprep.mubr.f32.mxu0 %v5358_v18  ;;  %1611 = vmatprep.mubr.f32.mxu1 %v7844_v0  ;;  %v5382_v18 = vmul.f32 %v5090_v34, %v5090_v34 }
 0x255   :  { %8002 = vst [vmem:[#allocation45_spill] sm:$0xff] %v5386_v8  ;;  %8003 = vst [vmem:[#allocation46_spill] sm:$0xff] %v5390_v48 }
 0x256   :  { %8001 = vst [vmem:[#allocation44_spill] sm:$0xff] %v5382_v18 }
 0x257   :  { %1301 = vmatmul.mubr.f32.gmra.mxu0 %v5366_v42  ;;  %1612 = vmatmul.mubr.f32.gmra.mxu1 %v5370_v25  ;;  %v5402_v42 = vmul.f32 %v5113_v43, %v5113_v43  ;;  %v5406_v25 = vmul.f32 %v5122_v51, %v5122_v51 }
 0x258   :  { %1306 = vmatprep.mubr.f32.mxu0 %v5374_v28  ;;  %1617 = vmatprep.mubr.f32.mxu1 %v7844_v0  ;;  %v5398_v28 = vmul.f32 %v5104_v40, %v5104_v40 }
 0x259   :  { %8005 = vst [vmem:[#allocation48_spill] sm:$0xff] %v5402_v42  ;;  %8006 = vst [vmem:[#allocation49_spill] sm:$0xff] %v5406_v25 }
 0x25a   :  { %8004 = vst [vmem:[#allocation47_spill] sm:$0xff] %v5398_v28 }
 0x25b   :  { %1307 = vmatmul.mubr.f32.gmra.mxu0 %v5382_v18  ;;  %1618 = vmatmul.mubr.f32.gmra.mxu1 %v5386_v8  ;;  %v5418_v18 = vmul.f32 %v5099_v37, %v5099_v37  ;;  %v5422_v8 = vmul.f32 %v5137_v5, %v5137_v5 }
 0x25c   :  { %1312 = vmatprep.mubr.f32.mxu0 %v5390_v48  ;;  %1623 = vmatprep.mubr.f32.mxu1 %v7844_v0  ;;  %v5414_v48 = vmul.f32 %v5117_v45, %v5117_v45 }
 0x25d   :  { %8008 = vst [vmem:[#allocation51_spill] sm:$0xff] %v5418_v18  ;;  %8009 = vst [vmem:[#allocation52_spill] sm:$0xff] %v5422_v8 }
 0x25e   :  { %8007 = vst [vmem:[#allocation50_spill] sm:$0xff] %v5414_v48 }
 0x25f   :  { %1313 = vmatmul.mubr.f32.gmra.mxu0 %v5398_v28  ;;  %1624 = vmatmul.mubr.f32.gmra.mxu1 %v5402_v42  ;;  %v5434_v28 = vmul.f32 %v5140_v12, %v5140_v12  ;;  %v5438_v42 = vmul.f32 %v5149_v22, %v5149_v22 }
 0x260   :  { %1318 = vmatprep.mubr.f32.mxu0 %v5406_v25  ;;  %1629 = vmatprep.mubr.f32.mxu1 %v7844_v0  ;;  %v5430_v25 = vmul.f32 %v5131_v2, %v5131_v2 }
 0x261   :  { %8011 = vst [vmem:[#allocation54_spill] sm:$0xff] %v5434_v28  ;;  %8012 = vst [vmem:[#allocation55_spill] sm:$0xff] %v5438_v42 }
 0x262   :  { %8010 = vst [vmem:[#allocation53_spill] sm:$0xff] %v5430_v25 }
 0x263   :  { %1319 = vmatmul.mubr.f32.gmra.mxu0 %v5414_v48  ;;  %1630 = vmatmul.mubr.f32.gmra.mxu1 %v5418_v18  ;;  %v5450_v48 = vmul.f32 %v5126_v55, %v5126_v55  ;;  %v5454_v18 = vmul.f32 %v5162_v35, %v5162_v35 }
 0x264   :  { %1324 = vmatprep.mubr.f32.mxu0 %v5422_v8  ;;  %1635 = vmatprep.mubr.f32.mxu1 %v7844_v0  ;;  %v5446_v8 = vmul.f32 %v5144_v15, %v5144_v15 }
 0x265   :  { %8014 = vst [vmem:[#allocation57_spill] sm:$0xff] %v5450_v48  ;;  %8015 = vst [vmem:[#allocation58_spill] sm:$0xff] %v5454_v18 }
 0x266   :  { %8013 = vst [vmem:[#allocation56_spill] sm:$0xff] %v5446_v8 }
 0x267   :  { %1325 = vmatmul.mubr.f32.gmra.mxu0 %v5430_v25  ;;  %1636 = vmatmul.mubr.f32.gmra.mxu1 %v5434_v28  ;;  %v5466_v25 = vmul.f32 %v5059_v23, %v4955_v46  ;;  %v5470_v28 = vmul.f32 %v5068_v26, %v4961_v49 }
 0x268   :  { %1330 = vmatprep.mubr.f32.mxu0 %v5438_v42  ;;  %1641 = vmatprep.mubr.f32.mxu1 %v7844_v0  ;;  %v5462_v42 = vmul.f32 %v5156_v32, %v5156_v32 }
 0x269   :  { %8017 = vst [vmem:[#allocation60_spill] sm:$0xff] %v5466_v25  ;;  %8018 = vst [vmem:[#allocation61_spill] sm:$0xff] %v5470_v28 }
 0x26a   :  { %8016 = vst [vmem:[#allocation59_spill] sm:$0xff] %v5462_v42 }
 0x26b   :  { %1331 = vmatmul.mubr.f32.gmra.mxu0 %v5446_v8  ;;  %1642 = vmatmul.mubr.f32.gmra.mxu1 %v5450_v48  ;;  %v5482_v8 = vmul.f32 %v5045_v17, %v4953_v44  ;;  %v5486_v48 = vmul.f32 %v5083_v31, %v4975_v54 }
 0x26c   :  { %1336 = vmatprep.mubr.f32.mxu0 %v5454_v18  ;;  %1647 = vmatprep.mubr.f32.mxu1 %v7844_v0  ;;  %v5478_v18 = vmul.f32 %v5063_v24, %v4957_v47 }
 0x26d   :  { %8020 = vst [vmem:[#allocation63_spill] sm:$0xff] %v5482_v8  ;;  %8021 = vst [vmem:[#allocation64_spill] sm:$0xff] %v5486_v48 }
 0x26e   :  { %8019 = vst [vmem:[#allocation62_spill] sm:$0xff] %v5478_v18 }
 0x26f   :  { %1337 = vmatmul.mubr.f32.gmra.mxu0 %v5462_v42  ;;  %1648 = vmatmul.mubr.f32.gmra.mxu1 %v5466_v25  ;;  %v5494_v25 = vmul.f32 %v5077_v30, %v4969_v53  ;;  %v5502_v42 = vmul.f32 %v5095_v36, %v4987_v59 }
 0x270   :  { %1342 = vmatprep.mubr.f32.mxu0 %v5470_v28  ;;  %1653 = vmatprep.mubr.f32.mxu1 %v7844_v0  ;;  %v5498_v28 = vmul.f32 %v5086_v33, %v4978_v56 }
 0x271   :  { %8022 = vst [vmem:[#allocation65_spill] sm:$0xff] %v5494_v25  ;;  %8024 = vst [vmem:[#allocation67_spill] sm:$0xff] %v5502_v42 }
 0x272   :  { %8023 = vst [vmem:[#allocation66_spill] sm:$0xff] %v5498_v28 }
 0x273   :  { %1343 = vmatmul.mubr.f32.gmra.mxu0 %v5478_v18  ;;  %1654 = vmatmul.mubr.f32.gmra.mxu1 %v5482_v8  ;;  %v5510_v8 = vmul.f32 %v5090_v34, %v4982_v57  ;;  %v5518_v18 = vmul.f32 %v5110_v41, %v5002_v1 }
 0x274   :  { %1348 = vmatprep.mubr.f32.mxu0 %v5486_v48  ;;  %1659 = vmatprep.mubr.f32.mxu1 %v7844_v0  ;;  %v5514_v48 = vmul.f32 %v5072_v27, %v4964_v50 }
 0x275   :  { %8025 = vst [vmem:[#allocation68_spill] sm:$0xff] %v5510_v8  ;;  %8027 = vst [vmem:[#allocation70_spill] sm:$0xff] %v5518_v18 }
 0x276   :  { %8026 = vst [vmem:[#allocation69_spill] sm:$0xff] %v5514_v48 }
 0x277   :  { %1349 = vmatmul.mubr.f32.gmra.mxu0 %v5494_v25  ;;  %1660 = vmatmul.mubr.f32.gmra.mxu1 %v5498_v28  ;;  %v5526_v28 = vmul.f32 %v5104_v40, %v4996_v63  ;;  %v5534_v25 = vmul.f32 %v5122_v51, %v5014_v6 }
 0x278   :  { %1354 = vmatprep.mubr.f32.mxu0 %v5502_v42  ;;  %1665 = vmatprep.mubr.f32.mxu1 %v7844_v0  ;;  %v5530_v42 = vmul.f32 %v5113_v43, %v5005_v3 }
 0x279   :  { %8028 = vst [vmem:[#allocation71_spill] sm:$0xff] %v5526_v28  ;;  %8030 = vst [vmem:[#allocation73_spill] sm:$0xff] %v5534_v25 }
 0x27a   :  { %8029 = vst [vmem:[#allocation72_spill] sm:$0xff] %v5530_v42 }
 0x27b   :  { %1355 = vmatmul.mubr.f32.gmra.mxu0 %v5510_v8  ;;  %1666 = vmatmul.mubr.f32.gmra.mxu1 %v5514_v48  ;;  %v5542_v48 = vmul.f32 %v5117_v45, %v5009_v4  ;;  %v5550_v8 = vmul.f32 %v5137_v5, %v5029_v11 }
 0x27c   :  { %1360 = vmatprep.mubr.f32.mxu0 %v5518_v18  ;;  %1671 = vmatprep.mubr.f32.mxu1 %v7844_v0  ;;  %v5546_v18 = vmul.f32 %v5099_v37, %v4991_v60 }
 0x27d   :  { %8031 = vst [vmem:[#allocation74_spill] sm:$0xff] %v5542_v48  ;;  %8033 = vst [vmem:[#allocation76_spill] sm:$0xff] %v5550_v8 }
 0x27e   :  { %8032 = vst [vmem:[#allocation75_spill] sm:$0xff] %v5546_v18 }
 0x27f   :  { %1361 = vmatmul.mubr.f32.gmra.mxu0 %v5526_v28  ;;  %1672 = vmatmul.mubr.f32.gmra.mxu1 %v5530_v42  ;;  %v5558_v42 = vmul.f32 %v5131_v2, %v5023_v10  ;;  %v5566_v28 = vmul.f32 %v5149_v22, %v5041_v16 }
 0x280   :  { %1366 = vmatprep.mubr.f32.mxu0 %v5534_v25  ;;  %1677 = vmatprep.mubr.f32.mxu1 %v7844_v0  ;;  %v5562_v25 = vmul.f32 %v5140_v12, %v5032_v13 }
 0x281   :  { %8034 = vst [vmem:[#allocation77_spill] sm:$0xff] %v5558_v42  ;;  %8036 = vst [vmem:[#allocation79_spill] sm:$0xff] %v5566_v28 }
 0x282   :  { %8035 = vst [vmem:[#allocation78_spill] sm:$0xff] %v5562_v25 }
 0x283   :  { %1367 = vmatmul.mubr.f32.gmra.mxu0 %v5542_v48  ;;  %1678 = vmatmul.mubr.f32.gmra.mxu1 %v5546_v18  ;;  %v5574_v18 = vmul.f32 %v5144_v15, %v5036_v14  ;;  %v5582_v48 = vmul.f32 %v5162_v35, %v5056_v21 }
 0x284   :  { %1372 = vmatprep.mubr.f32.mxu0 %v5550_v8  ;;  %1683 = vmatprep.mubr.f32.mxu1 %v7844_v0  ;;  %v5578_v8 = vmul.f32 %v5126_v55, %v5018_v7 }
 0x285   :  { %8037 = vst [vmem:[#allocation80_spill] sm:$0xff] %v5574_v18  ;;  %8039 = vst [vmem:[#allocation82_spill] sm:$0xff] %v5582_v48 }
 0x286   :  { %8038 = vst [vmem:[#allocation81_spill] sm:$0xff] %v5578_v8 }
 0x287   :  { %1373 = vmatmul.mubr.f32.gmra.mxu0 %v5558_v42  ;;  %1684 = vmatmul.mubr.f32.gmra.mxu1 %v5562_v25  ;;  %v8090_v42 = vld [vmem:[#allocation38_spill] sm:$0xff] }
 0x288   :  { %1378 = vmatprep.mubr.f32.mxu0 %v5566_v28  ;;  %1689 = vmatprep.mubr.f32.mxu1 %v7844_v0  ;;  %v5590_v0 = vmul.f32 %v5156_v32, %v5050_v20 }
 0x28a   :  { %8040 = vst [vmem:[#allocation83_spill] sm:$0xff] %v5590_v0 }
 0x28b   :  { %1379 = vmatmul.mubr.f32.gmra.mxu0 %v5574_v18  ;;  %1690 = vmatmul.mubr.f32.gmra.mxu1 %v5578_v8 }
 0x28c   :  { %1384 = vmatprep.mubr.f32.mxu0 %v5582_v48  ;;  %1760 = vmatprep.mubr.f32.mxu1 %v4961_v49  ;;  %v8043_v49 = vld [vmem:[#allocation6_spill] sm:$0xff]  ;;  %v8089_v48 = vld [vmem:[#allocation37_spill] sm:$0xff] }
 0x28f   :  { %1385 = vmatmul.mubr.f32.gmra.mxu0 %v5590_v0  ;;  %1761 = vmatmul.mubr.f32.vlgmr.msra.gmra.mxu1 %v4957_v47  ;;  %v8088_v0 = vld [vmem:[#allocation36_spill] sm:$0xff] }
 0x290   :  { %1765 = vmatprep.mubr.f32.mxu1 %v4975_v54  ;;  %4450 = vmatprep.mubr.f32.mxu0 %v4955_v46  ;;  %v8042_v46 = vld [vmem:[#allocation8_spill] sm:$0xff] }
 0x291   :  { %4602 = vmatpush3.msra.mxu1 %v4967_v52  ;;  %v8045_v52 = vld [vmem:[#allocation12_spill] sm:$0xff] }
 0x292   :  { %4587 = vmatprep.subr.mxu1 %v4994_v62 }
 0x293   :  { %1766 = vmatmul.mubr.f32.gmra.mxu1 %v4969_v53  ;;  %4451 = vmatmul.mubr.f32.vlgmr.msra.gmra.mxu0 %v4953_v44  ;;  %v8041_v44 = vld [vmem:[#allocation5_spill] sm:$0xff] }
 0x294   :  { %1770 = vmatprep.mubr.f32.mxu1 %v4987_v59  ;;  %4453 = vmatprep.mubr.f32.mxu0 %v4978_v56  ;;  %v8046_v56 = vld [vmem:[#allocation10_spill] sm:$0xff] }
 0x295   :  { %4603 = vmatpush3.msra.mxu1 %v4994_v62  ;;  %v8048_v59 = vld [vmem:[#allocation14_spill] sm:$0xff] }
 0x296   :  { %4588 = vmatprep.subr.mxu1 %v5021_v9 }
 0x297   :  { %1771 = vmatmul.mubr.f32.gmra.mxu1 %v4982_v57  ;;  %4454 = vmatmul.mubr.f32.gmra.mxu0 %v4964_v50 }
 0x298   :  { %1775 = vmatprep.mubr.f32.mxu1 %v5002_v1  ;;  %4456 = vmatprep.mubr.f32.mxu0 %v5005_v3 }
 0x299   :  { %4604 = vmatpush3.msra.mxu1 %v5021_v9 }
 0x29a   :  { %4589 = vmatprep.subr.mxu1 %v5048_v19 }
 0x29b   :  { %1776 = vmatmul.mubr.f32.gmra.mxu1 %v4996_v63  ;;  %4457 = vmatmul.mubr.f32.gmra.mxu0 %v4991_v60  ;;  %v8051_v63 = vld [vmem:[#allocation16_spill] sm:$0xff] }
 0x29c   :  { %1780 = vmatprep.mubr.f32.mxu1 %v5014_v6  ;;  %4459 = vmatprep.mubr.f32.mxu0 %v5032_v13 }
 0x29d   :  { %4605 = vmatpush3.msra.mxu1 %v5048_v19  ;;  %v8060_v19 = vld [vmem:[#allocation30_spill] sm:$0xff] }
 0x29e   :  { %4590 = vmatprep.subr.mxu1 %v5075_v29 }
 0x29f   :  { %1781 = vmatmul.mubr.f32.gmra.mxu1 %v5009_v4  ;;  %4460 = vmatmul.mubr.f32.gmra.mxu0 %v5018_v7  ;;  %v8052_v4 = vld [vmem:[#allocation18_spill] sm:$0xff] }
 0x2a0   :  { %1785 = vmatprep.mubr.f32.mxu1 %v5029_v11  ;;  %4462 = vmatprep.mubr.f32.mxu0 %v5059_v23  ;;  %v8054_v7 = vld [vmem:[#allocation22_spill] sm:$0xff]  ;;  %v8057_v11 = vld [vmem:[#allocation20_spill] sm:$0xff] }
 0x2a1   :  { %4606 = vmatpush3.msra.mxu1 %v5075_v29  ;;  %v8061_v23 = vld [vmem:[#allocation24_spill] sm:$0xff] }
 0x2a2   :  { %4591 = vmatprep.subr.mxu1 %v5102_v39 }
 0x2a3   :  { %1786 = vmatmul.mubr.f32.gmra.mxu1 %v5023_v10  ;;  %4463 = vmatmul.mubr.f32.gmra.mxu0 %v5045_v17 }
 0x2a4   :  { %1790 = vmatprep.mubr.f32.mxu1 %v5041_v16  ;;  %4465 = vmatprep.mubr.f32.mxu0 %v5086_v33  ;;  %v8058_v16 = vld [vmem:[#allocation26_spill] sm:$0xff] }
 0x2a5   :  { %4607 = vmatpush3.msra.mxu1 %v5102_v39  ;;  %v8065_v39 = vld [vmem:[#allocation42_spill] sm:$0xff] }
 0x2a6   :  { %4592 = vmatprep.subr.mxu1 %v5129_v61 }
 0x2a7   :  { %1791 = vmatmul.mubr.f32.gmra.mxu1 %v5036_v14  ;;  %4466 = vmatmul.mubr.f32.gmra.mxu0 %v5072_v27 }
 0x2a8   :  { %1795 = vmatprep.mubr.f32.mxu1 %v5056_v21  ;;  %4468 = vmatprep.mubr.f32.mxu0 %v5113_v43  ;;  %v8066_v43 = vld [vmem:[#allocation32_spill] sm:$0xff] }
 0x2a9   :  { %4608 = vmatpush3.msra.mxu1 %v5129_v61  ;;  %v8068_v61 = vld [vmem:[#allocation48_spill] sm:$0xff] }
 0x2aa   :  { %4593 = vmatprep.subr.mxu1 %v8041_v44 }
 0x2ab   :  { %1796 = vmatmul.mubr.f32.gmra.mxu1 %v5050_v20  ;;  %4469 = vmatmul.mubr.f32.gmra.mxu0 %v5099_v37 }
 0x2ac   :  { %1800 = vmatprep.mubr.f32.mxu1 %v5068_v26  ;;  %4471 = vmatprep.mubr.f32.mxu0 %v5140_v12  ;;  %v8069_v12 = vld [vmem:[#allocation35_spill] sm:$0xff] }
 0x2ad   :  { %4609 = vmatpush3.msra.mxu1 %v8041_v44 }
 0x2ae   :  { %4594 = vmatprep.subr.mxu1 %v8042_v46 }
 0x2af   :  { %v1457_v47 = vpop.f32.mrf.mxu1  ;;  %1801 = vmatmul.mubr.f32.gmra.mxu1 %v5063_v24  ;;  %4472 = vmatmul.mubr.f32.gmra.mxu0 %v5126_v55  ;;  %v8067_v55 = vld [vmem:[#allocation45_spill] sm:$0xff] }
 0x2b0   :  { %1805 = vmatprep.mubr.f32.mxu1 %v5083_v31  ;;  %4474 = vmatprep.mubr.f32.mxu0 %v8043_v49  ;;  %v8063_v31 = vld [vmem:[#allocation28_spill] sm:$0xff] }
 0x2b1   :  { %v5644_v50 = vpop.f32.mrf.mxu1  ;;  %4610 = vmatpush3.msra.mxu1 %v8042_v46 }
 0x2b2   :  { %8044 = vst [vmem:[#allocation5_spill] sm:$0xff] %v5644_v50  ;;  %4595 = vmatprep.subr.mxu1 %v8045_v52  ;;  %v1152_v53 = vpop.f32.mrf.mxu0 }
 0x2b3   :  { %v1463_v54 = vpop.f32.mrf.mxu1  ;;  %1806 = vmatmul.mubr.f32.gmra.mxu1 %v5077_v30  ;;  %4475 = vmatmul.mubr.f32.gmra.mxu0 %v8046_v56  ;;  %v5650_v57 = vadd.f32 %v1457_v47, %v1152_v53  ;;  %v8074_v53 = vld [vmem:[#allocation57_spill] sm:$0xff] }
 0x2b4   :  { %1810 = vmatprep.mubr.f32.mxu1 %v5095_v36  ;;  %4477 = vmatprep.mubr.f32.mxu0 %v8048_v59  ;;  %v5654_v60 = vpop.f32.mrf.mxu0  ;;  %v8064_v36 = vld [vmem:[#allocation39_spill] sm:$0xff]  ;;  %v114_v59 = vld [vmem:[#allocation2 + $0x3c8] sm:$0xff] }
 0x2b5   :  { %8047 = vst [vmem:[#allocation8_spill] sm:$0xff] %v5650_v57  ;;  %8049 = vst [vmem:[#allocation6_spill] sm:$0xff] %v5654_v60  ;;  %v5656_v62 = vpop.f32.mrf.mxu1  ;;  %4611 = vmatpush3.msra.mxu1 %v8045_v52  ;;  %v8073_v52 = vld [vmem:[#allocation9_spill] sm:$0xff]  ;;  %v8091_v57 = vld [vmem:[#allocation40_spill] sm:$0xff] }
 0x2b6   :  { %8050 = vst [vmem:[#allocation12_spill] sm:$0xff] %v5656_v62  ;;  %4596 = vmatprep.subr.mxu1 %v8051_v63  ;;  %v1158_v1 = vpop.f32.mrf.mxu0  ;;  %v8093_v62 = vld [vmem:[#allocation41_spill] sm:$0xff] }
 0x2b7   :  { %v1469_v3 = vpop.f32.mrf.mxu1  ;;  %1811 = vmatmul.mubr.f32.gmra.mxu1 %v5090_v34  ;;  %4478 = vmatmul.mubr.f32.gmra.mxu0 %v8052_v4  ;;  %v5662_v6 = vadd.f32 %v1463_v54, %v1158_v1  ;;  %v8077_v4 = vld [vmem:[#allocation15_spill] sm:$0xff] }
 0x2b8   :  { %1815 = vmatprep.mubr.f32.mxu1 %v5110_v41  ;;  %4480 = vmatprep.mubr.f32.mxu0 %v8054_v7  ;;  %v5666_v9 = vpop.f32.mrf.mxu0 }
 0x2b9   :  { %8053 = vst [vmem:[#allocation10_spill] sm:$0xff] %v5662_v6  ;;  %8055 = vst [vmem:[#allocation14_spill] sm:$0xff] %v5666_v9  ;;  %v5668_v10 = vpop.f32.mrf.mxu1  ;;  %4612 = vmatpush3.msra.mxu1 %v8051_v63 }
 0x2ba   :  { %8056 = vst [vmem:[#allocation16_spill] sm:$0xff] %v5668_v10  ;;  %4597 = vmatprep.subr.mxu1 %v8057_v11  ;;  %v1164_v13 = vpop.f32.mrf.mxu0 }
 0x2bb   :  { %v1475_v14 = vpop.f32.mrf.mxu1  ;;  %1816 = vmatmul.mubr.f32.gmra.mxu1 %v5104_v40  ;;  %4481 = vmatmul.mubr.f32.gmra.mxu0 %v8058_v16  ;;  %v5674_v17 = vadd.f32 %v1469_v3, %v1164_v13  ;;  %v8076_v3 = vld [vmem:[#allocation13_spill] sm:$0xff] }
 0x2bc   :  { %1820 = vmatprep.mubr.f32.mxu1 %v5122_v51  ;;  %4483 = vmatprep.mubr.f32.mxu0 %v8060_v19  ;;  %v5678_v20 = vpop.f32.mrf.mxu0  ;;  %v8078_v16 = vld [vmem:[#allocation17_spill] sm:$0xff]  ;;  %v8079_v19 = vld [vmem:[#allocation19_spill] sm:$0xff] }
 0x2bd   :  { %8059 = vst [vmem:[#allocation18_spill] sm:$0xff] %v5674_v17  ;;  %v5680_v21 = vpop.f32.mrf.mxu1  ;;  %4613 = vmatpush3.msra.mxu1 %v8057_v11 }
 0x2be   :  { %4598 = vmatprep.subr.mxu1 %v8061_v23  ;;  %v1170_v24 = vpop.f32.mrf.mxu0 }
 0x2bf   :  { %v1481_v26 = vpop.f32.mrf.mxu1  ;;  %1821 = vmatmul.mubr.f32.gmra.mxu1 %v5117_v45  ;;  %4484 = vmatmul.mubr.f32.gmra.mxu0 %v5313_v58  ;;  %v5686_v27 = vadd.f32 %v1475_v14, %v1170_v24  ;;  %v8071_v58 = vld [vmem:[#allocation7_spill] sm:$0xff] }
 0x2c0   :  { %1825 = vmatprep.mubr.f32.mxu1 %v5137_v5  ;;  %4486 = vmatprep.mubr.f32.mxu0 %v5334_v38  ;;  %v5690_v29 = vpop.f32.mrf.mxu0 }
 0x2c1   :  { %8062 = vst [vmem:[#allocation22_spill] sm:$0xff] %v5686_v27  ;;  %v5692_v30 = vpop.f32.mrf.mxu1  ;;  %4614 = vmatpush3.msra.mxu1 %v8061_v23 }
 0x2c2   :  { %4599 = vmatprep.subr.mxu1 %v8063_v31  ;;  %v1176_v33 = vpop.f32.mrf.mxu0 }
 0x2c3   :  { %v5696_v34 = vpop.f32.mrf.mxu1  ;;  %1826 = vmatmul.mubr.f32.gmra.mxu1 %v5131_v2  ;;  %4487 = vmatmul.mubr.f32.gmra.mxu0 %v8064_v36  ;;  %v5700_v37 = vadd.f32 %v1481_v26, %v1176_v33  ;;  %v8080_v33 = vld [vmem:[#allocation21_spill] sm:$0xff]  ;;  %v8081_v36 = vld [vmem:[#allocation23_spill] sm:$0xff] }
 0x2c4   :  { %1830 = vmatprep.mubr.f32.mxu1 %v5149_v22  ;;  %4489 = vmatprep.mubr.f32.mxu0 %v8065_v39  ;;  %v5704_v40 = vpop.f32.mrf.mxu0 }
 0x2c5   :  { %v5706_v41 = vpop.f32.mrf.mxu1  ;;  %4615 = vmatpush3.msra.mxu1 %v8063_v31 }
 0x2c6   :  { %4600 = vmatprep.subr.mxu1 %v8066_v43  ;;  %v5710_v45 = vpop.f32.mrf.mxu0 }
 0x2c7   :  { %v5712_v51 = vpop.f32.mrf.mxu1  ;;  %1831 = vmatmul.mubr.f32.gmra.mxu1 %v5144_v15  ;;  %4490 = vmatmul.mubr.f32.gmra.mxu0 %v8067_v55  ;;  %v8070_v15 = vld [vmem:[#allocation51_spill] sm:$0xff] }
 0x2c8   :  { %1835 = vmatprep.mubr.f32.mxu1 %v5162_v35  ;;  %4492 = vmatprep.mubr.f32.mxu0 %v8068_v61  ;;  %v5718_v2 = vpop.f32.mrf.mxu0  ;;  %v8072_v35 = vld [vmem:[#allocation54_spill] sm:$0xff] }
 0x2c9   :  { %v5720_v5 = vpop.f32.mrf.mxu1  ;;  %4616 = vmatpush3.msra.mxu1 %v8066_v43 }
 0x2ca   :  { %4601 = vmatprep.subr.mxu1 %v8069_v12  ;;  %v5724_v22 = vpop.f32.mrf.mxu0 }
 0x2cb   :  { %v5726_v38 = vpop.f32.mrf.mxu1  ;;  %1836 = vmatmul.mubr.f32.gmra.mxu1 %v5156_v32  ;;  %4493 = vmatmul.mubr.f32.gmra.mxu0 %v8070_v15  ;;  %v8075_v32 = vld [vmem:[#allocation11_spill] sm:$0xff] }
 0x2cc   :  { %1840 = vmatprep.mubr.f32.mxu1 %v8071_v58  ;;  %4495 = vmatprep.mubr.f32.mxu0 %v8072_v35  ;;  %v5732_v44 = vpop.f32.mrf.mxu0  ;;  %v8083_v15 = vld [vmem:[#allocation27_spill] sm:$0xff] }
 0x2cd   :  { %v5734_v46 = vpop.f32.mrf.mxu1  ;;  %4617 = vmatpush3.msra.mxu1 %v8069_v12  ;;  %v8082_v12 = vld [vmem:[#allocation25_spill] sm:$0xff] }
 0x2ce   :  { %v5737_v47 = vpop.f32.mrf.mxu0 }
 0x2cf   :  { %v5739_v49 = vpop.f32.mrf.mxu1  ;;  %1841 = vmatmul.mubr.f32.gmra.mxu1 %v8073_v52  ;;  %4496 = vmatmul.mubr.f32.gmra.mxu0 %v8074_v53 }
 0x2d0   :  { %1845 = vmatprep.mubr.f32.mxu1 %v8075_v32  ;;  %v5744_v54 = vpop.f32.mrf.mxu0  ;;  %2410 = vmatprep.mubr.f32.mxu0 %v114_v59  ;;  %v8084_v32 = vld [vmem:[#allocation29_spill] sm:$0xff]  ;;  %v8085_v59 = vld [vmem:[#allocation31_spill] sm:$0xff] }
 0x2d1   :  { %v5746_v56 = vpop.f32.mrf.mxu1 }
 0x2d3   :  { %v5748_v63 = vpop.f32.mrf.mxu0  ;;  %v5750_v1 = vpop.f32.mrf.mxu1  ;;  %1846 = vmatmul.mubr.f32.gmra.mxu1 %v8076_v3 }
 0x2d4   :  { %1850 = vmatprep.mubr.f32.mxu1 %v8077_v4 }
 0x2d5   :  { %v5754_v7 = vpop.f32.mrf.mxu0  ;;  %v5756_v11 = vpop.f32.mrf.mxu1 }
 0x2d7   :  { %v5758_v13 = vpop.f32.mrf.mxu0  ;;  %v5760_v14 = vpop.f32.mrf.mxu1  ;;  %1851 = vmatmul.mubr.f32.gmra.mxu1 %v8078_v16 }
 0x2d8   :  { %1855 = vmatprep.mubr.f32.mxu1 %v8079_v19 }
 0x2d9   :  { %v5764_v23 = vpop.f32.mrf.mxu0  ;;  %v5766_v24 = vpop.f32.mrf.mxu1 }
 0x2db   :  { %v5768_v26 = vpop.f32.mrf.mxu0  ;;  %v5770_v31 = vpop.f32.mrf.mxu1  ;;  %1856 = vmatmul.mubr.f32.gmra.mxu1 %v8080_v33  ;;  %v8086_v33 = vld [vmem:[#allocation33_spill] sm:$0xff] }
 0x2dc   :  { %1860 = vmatprep.mubr.f32.mxu1 %v8081_v36  ;;  %v8087_v36 = vld [vmem:[#allocation34_spill] sm:$0xff] }
 0x2dd   :  { %v5774_v39 = vpop.f32.mrf.mxu0  ;;  %v1525_v43 = vpop.f32.mrf.mxu1 }
 0x2df   :  { %v1218_v55 = vpop.f32.mrf.mxu0  ;;  %v1529_v61 = vpop.f32.mrf.mxu1  ;;  %1861 = vmatmul.mubr.f32.gmra.mxu1 %v8082_v12 }
 0x2e0   :  { %1865 = vmatprep.mubr.f32.mxu1 %v8083_v15 }
 0x2e1   :  { %v1220_v58 = vpop.f32.mrf.mxu0  ;;  %v1531_v35 = vpop.f32.mrf.mxu1 }
 0x2e3   :  { %v1224_v52 = vpop.f32.mrf.mxu0  ;;  %v1535_v53 = vpop.f32.mrf.mxu1  ;;  %1866 = vmatmul.mubr.f32.gmra.mxu1 %v8084_v32 }
 0x2e4   :  { %1870 = vmatprep.mubr.f32.mxu1 %v8085_v59 }
 0x2e5   :  { %v1226_v3 = vpop.f32.mrf.mxu0  ;;  %v1537_v4 = vpop.f32.mrf.mxu1 }
 0x2e7   :  { %v1230_v16 = vpop.f32.mrf.mxu0  ;;  %v1541_v19 = vpop.f32.mrf.mxu1  ;;  %1871 = vmatmul.mubr.f32.gmra.mxu1 %v8086_v33 }
 0x2e8   :  { %1875 = vmatprep.mubr.f32.mxu1 %v8087_v36 }
 0x2e9   :  { %v1232_v8 = vpop.f32.mrf.mxu0  ;;  %v1543_v12 = vpop.f32.mrf.mxu1 }
 0x2eb   :  { %v1236_v25 = vpop.f32.mrf.mxu0  ;;  %v1547_v15 = vpop.f32.mrf.mxu1  ;;  %1876 = vmatmul.mubr.f32.gmra.mxu1 %v8088_v0 }
 0x2ec   :  { %1880 = vmatprep.mubr.f32.mxu1 %v8089_v48  ;;  %v8095_v48 = vld [vmem:[#allocation43_spill] sm:$0xff]  ;;  %v1542_v27 = vadd.f32 %v1541_v19, %v1236_v25  ;;  %v1530_v25 = vadd.f32 %v1529_v61, %v1224_v52  ;;  %v8104_v61 = vld [vmem:[#allocation49_spill] sm:$0xff]  ;;  %v8105_v52 = vld [vmem:[#allocation50_spill] sm:$0xff] }
 0x2ed   :  { %v1238_v18 = vpop.f32.mrf.mxu0  ;;  %v1549_v32 = vpop.f32.mrf.mxu1 }
 0x2ee   :  { %v1544_v0 = vadd.f32 %v1543_v12, %v1238_v18  ;;  %v1532_v18 = vadd.f32 %v1531_v35, %v1226_v3  ;;  %v1518_v35 = vadd.f32 %v5760_v14, %v5768_v26  ;;  %v1508_v14 = vadd.f32 %v5746_v56, %v5754_v7  ;;  %v8106_v3 = vld [vmem:[#allocation52_spill] sm:$0xff] }
 0x2ef   :  { %v1242_v28 = vpop.f32.mrf.mxu0  ;;  %v1553_v59 = vpop.f32.mrf.mxu1  ;;  %1881 = vmatmul.mubr.f32.gmra.mxu1 %v8090_v42  ;;  %v1500_v56 = vadd.f32 %v5726_v38, %v5737_v47  ;;  %v1490_v47 = vadd.f32 %v5706_v41, %v5718_v2 }
 0x2f0   :  { %1885 = vmatprep.mubr.f32.mxu1 %v8091_v57  ;;  %v1548_v50 = vadd.f32 %v1547_v15, %v1242_v28  ;;  %v1538_v57 = vadd.f32 %v1537_v4, %v1232_v8  ;;  %v1526_v8 = vadd.f32 %v1525_v43, %v1220_v58 }
 0x2f1   :  { %v1244_v6 = vpop.f32.mrf.mxu0  ;;  %v5786_v33 = vpop.f32.mrf.mxu1 }
 0x2f2   :  { %8092 = vst [vmem:[#allocation20_spill] sm:$0xff] %v5786_v33  ;;  %v1550_v36 = vadd.f32 %v1549_v32, %v1244_v6  ;;  %v1536_v6 = vadd.f32 %v1535_v53, %v1230_v16  ;;  %v8098_v32 = vld [vmem:[#allocation44_spill] sm:$0xff]  ;;  %v8102_v16 = vld [vmem:[#allocation47_spill] sm:$0xff] }
 0x2f3   :  { %v1248_v60 = vpop.f32.mrf.mxu0  ;;  %v1559_v17 = vpop.f32.mrf.mxu1  ;;  %1886 = vmatmul.mubr.f32.gmra.mxu1 %v8093_v62  ;;  %v8100_v62 = vld [vmem:[#allocation46_spill] sm:$0xff] }
 0x2f4   :  { %v5789_v9 = vadd.f32 %v1553_v59, %v1248_v60  ;;  %1890 = vmatprep.mubr.f32.mxu1 %v8095_v48  ;;  %2346 = vmatprep.subr.mxu0 %v1550_v36  ;;  %v8107_v36 = vld [vmem:[#allocation53_spill] sm:$0xff] }
 0x2f5   :  { %v5792_v10 = vpop.f32.mrf.mxu0  ;;  %v5794_v42 = vpop.f32.mrf.mxu1  ;;  %2347 = vmatpush1.msra.mxu0 %v1548_v50  ;;  %v1524_v50 = vadd.f32 %v5770_v31, %v1218_v55  ;;  %v1514_v31 = vadd.f32 %v5756_v11, %v5764_v23  ;;  %v1506_v11 = vadd.f32 %v5739_v49, %v5748_v63  ;;  %v1496_v49 = vadd.f32 %v5720_v5, %v5732_v44 }
 0x2f6   :  { %8094 = vst [vmem:[#allocation26_spill] sm:$0xff] %v5789_v9  ;;  %8096 = vst [vmem:[#allocation30_spill] sm:$0xff] %v5792_v10  ;;  %2348 = vmatprep.subr.mxu0 %v1544_v0  ;;  %v8108_v0 = vld [vmem:[#allocation55_spill] sm:$0xff]  ;;  %v1488_v5 = vadd.f32 %v5696_v34, %v5710_v45  ;;  %v1478_v34 = vadd.f32 %v5680_v21, %v5690_v29  ;;  %v8114_v21 = vld [vmem:[#allocation22_spill] sm:$0xff] }
 0x2f7   :  { %8097 = vst [vmem:[#allocation24_spill] sm:$0xff] %v5794_v42  ;;  %v1254_v28 = vpop.f32.mrf.mxu0  ;;  %v1565_v15 = vpop.f32.mrf.mxu1  ;;  %1891 = vmatmul.mubr.f32.gmra.mxu1 %v8098_v32  ;;  %2349 = vmatpush1.msra.mxu0 %v1542_v27  ;;  %v8115_v29 = vld [vmem:[#allocation14_spill] sm:$0xff]  ;;  %v8142_v42 = vld [vmem:[#allocation72_spill] sm:$0xff] }
 0x2f8   :  { %v5797_v60 = vadd.f32 %v1559_v17, %v1254_v28  ;;  %1895 = vmatprep.mubr.f32.mxu1 %v8100_v62  ;;  %2350 = vmatprep.subr.mxu0 %v1538_v57  ;;  %v1520_v17 = vadd.f32 %v5766_v24, %v5774_v39  ;;  %v1512_v24 = vadd.f32 %v5750_v1, %v5758_v13  ;;  %v8109_v57 = vld [vmem:[#allocation56_spill] sm:$0xff]  ;;  %v8111_v28 = vld [vmem:[#allocation59_spill] sm:$0xff]  ;;  %v8140_v9 = vld [vmem:[#allocation66_spill] sm:$0xff] }
 0x2f9   :  { %v5800_v19 = vpop.f32.mrf.mxu0  ;;  %v5802_v12 = vpop.f32.mrf.mxu1  ;;  %2351 = vmatpush1.msra.mxu0 %v1536_v6  ;;  %v1502_v1 = vadd.f32 %v5734_v46, %v5744_v54  ;;  %v1494_v46 = vadd.f32 %v5712_v51, %v5724_v22  ;;  %v1484_v51 = vadd.f32 %v5692_v30, %v5704_v40  ;;  %v8110_v22 = vld [vmem:[#allocation58_spill] sm:$0xff]  ;;  %v8112_v30 = vld [vmem:[#allocation16_spill] sm:$0xff] }
 0x2fa   :  { %8099 = vst [vmem:[#allocation28_spill] sm:$0xff] %v5797_v60  ;;  %8101 = vst [vmem:[#allocation39_spill] sm:$0xff] %v5800_v19  ;;  %2352 = vmatprep.subr.mxu0 %v1532_v18  ;;  %v1472_v40 = vadd.f32 %v8112_v30, %v5678_v20  ;;  %v8116_v62 = vld [vmem:[#allocation12_spill] sm:$0xff]  ;;  %v8118_v20 = vld [vmem:[#allocation18_spill] sm:$0xff] }
 0x2fb   :  { %v1260_v53 = vpop.f32.mrf.mxu0  ;;  %v1571_v4 = vpop.f32.mrf.mxu1  ;;  %1896 = vmatmul.mubr.f32.gmra.mxu1 %v8102_v16  ;;  %2353 = vmatpush1.msra.mxu0 %v1530_v25  ;;  %v1466_v25 = vadd.f32 %v8116_v62, %v8115_v29  ;;  %v8130_v30 = vld [vmem:[#allocation74_spill] sm:$0xff] }
 0x2fc   :  { %v5808_v27 = vadd.f32 %v1565_v15, %v1260_v53  ;;  %1900 = vmatprep.mubr.f32.mxu1 %v8104_v61  ;;  %2354 = vmatprep.subr.mxu0 %v1526_v8  ;;  %v8113_v15 = vld [vmem:[#allocation61_spill] sm:$0xff]  ;;  %v8119_v53 = vld [vmem:[#allocation6_spill] sm:$0xff] }
 0x2fd   :  { %v5813_v43 = vpop.f32.mrf.mxu0  ;;  %v5815_v58 = vpop.f32.mrf.mxu1  ;;  %2355 = vmatpush1.msra.mxu0 %v1524_v50 }
 0x2fe   :  { %8103 = vst [vmem:[#allocation42_spill] sm:$0xff] %v5808_v27  ;;  %2356 = vmatprep.subr.mxu0 %v1520_v17  ;;  %v8121_v17 = vld [vmem:[#allocation64_spill] sm:$0xff] }
 0x2ff   :  { %v1266_v39 = vpop.f32.mrf.mxu0  ;;  %v1577_v55 = vpop.f32.mrf.mxu1  ;;  %1901 = vmatmul.mubr.f32.gmra.mxu1 %v8105_v52  ;;  %2357 = vmatpush1.msra.mxu0 %v1518_v35  ;;  %v8124_v52 = vld [vmem:[#allocation8_spill] sm:$0xff] }
 0x300   :  { %v5824_v26 = vadd.f32 %v1571_v4, %v1266_v39  ;;  %1905 = vmatprep.mubr.f32.mxu1 %v8106_v3  ;;  %2358 = vmatprep.subr.mxu0 %v1514_v31  ;;  %v8120_v4 = vld [vmem:[#allocation5_spill] sm:$0xff]  ;;  %v8122_v31 = vld [vmem:[#allocation10_spill] sm:$0xff] }
 0x301   :  { %v5829_v23 = vpop.f32.mrf.mxu0  ;;  %v5831_v59 = vpop.f32.mrf.mxu1  ;;  %2359 = vmatpush1.msra.mxu0 %v1512_v24  ;;  %v1460_v16 = vadd.f32 %v8120_v4, %v8119_v53 }
 0x302   :  { %2360 = vmatprep.subr.mxu0 %v1508_v14  ;;  %v8125_v14 = vld [vmem:[#allocation67_spill] sm:$0xff] }
 0x303   :  { %v1272_v7 = vpop.f32.mrf.mxu0  ;;  %v5837_v13 = vpop.f32.mrf.mxu1  ;;  %1906 = vmatmul.mubr.f32.gmra.mxu1 %v8107_v36  ;;  %2361 = vmatpush1.msra.mxu0 %v1506_v11  ;;  %v8127_v36 = vld [vmem:[#allocation70_spill] sm:$0xff] }
 0x304   :  { %v5842_v63 = vadd.f32 %v1577_v55, %v1272_v7  ;;  %1910 = vmatprep.mubr.f32.mxu1 %v8108_v0  ;;  %2362 = vmatprep.subr.mxu0 %v1502_v1  ;;  %v8123_v55 = vld [vmem:[#allocation65_spill] sm:$0xff]  ;;  %v8126_v7 = vld [vmem:[#allocation68_spill] sm:$0xff] }
 0x305   :  { %v5847_v54 = vpop.f32.mrf.mxu0  ;;  %v5849_v38 = vpop.f32.mrf.mxu1  ;;  %2363 = vmatpush1.msra.mxu0 %v1500_v56 }
 0x306   :  { %2364 = vmatprep.subr.mxu0 %v1496_v49 }
 0x307   :  { %v5855_v44 = vpop.f32.mrf.mxu0  ;;  %v5857_v48 = vpop.f32.mrf.mxu1  ;;  %1911 = vmatmul.mubr.f32.gmra.mxu1 %v8109_v57  ;;  %2365 = vmatpush1.msra.mxu0 %v1494_v46  ;;  %v8129_v57 = vld [vmem:[#allocation73_spill] sm:$0xff] }
 0x308   :  { %1915 = vmatprep.mubr.f32.mxu1 %v8110_v22  ;;  %2366 = vmatprep.subr.mxu0 %v1490_v47 }
 0x309   :  { %v5863_v6 = vpop.f32.mrf.mxu0  ;;  %v5865_v41 = vpop.f32.mrf.mxu1  ;;  %2367 = vmatpush1.msra.mxu0 %v1488_v5  ;;  %v8128_v5 = vld [vmem:[#allocation71_spill] sm:$0xff] }
 0x30a   :  { %2368 = vmatprep.subr.mxu0 %v1484_v51 }
 0x30b   :  { %v5869_v45 = vpop.f32.mrf.mxu0  ;;  %v5871_v2 = vpop.f32.mrf.mxu1  ;;  %1916 = vmatmul.mubr.f32.gmra.mxu1 %v8111_v28  ;;  %2369 = vmatpush1.msra.mxu0 %v5700_v37  ;;  %v8117_v37 = vld [vmem:[#allocation62_spill] sm:$0xff] }
 0x30c   :  { %1920 = vmatprep.mubr.f32.mxu1 %v8113_v15  ;;  %2370 = vmatprep.subr.mxu0 %v1478_v34 }
 0x30d   :  { %v5878_v32 = vpop.f32.mrf.mxu0  ;;  %v5880_v18 = vpop.f32.mrf.mxu1  ;;  %2371 = vmatpush1.msra.mxu0 %v8114_v21 }
 0x30e   :  { %2372 = vmatprep.subr.mxu0 %v1472_v40  ;;  %v8131_v40 = vld [vmem:[#allocation76_spill] sm:$0xff] }
 0x30f   :  { %v5885_v8 = vpop.f32.mrf.mxu0  ;;  %v5887_v50 = vpop.f32.mrf.mxu1  ;;  %1921 = vmatmul.mubr.f32.gmra.mxu1 %v8117_v37  ;;  %2373 = vmatpush1.msra.mxu0 %v8118_v20  ;;  %v8133_v37 = vld [vmem:[#allocation79_spill] sm:$0xff] }
 0x310   :  { %1925 = vmatprep.mubr.f32.mxu1 %v8121_v17  ;;  %2374 = vmatprep.subr.mxu0 %v1466_v25  ;;  %v8132_v25 = vld [vmem:[#allocation77_spill] sm:$0xff]  ;;  %v8134_v17 = vld [vmem:[#allocation80_spill] sm:$0xff] }
 0x311   :  { %v5894_v61 = vpop.f32.mrf.mxu0  ;;  %v5896_v35 = vpop.f32.mrf.mxu1  ;;  %2375 = vmatpush1.msra.mxu0 %v8122_v31  ;;  %v8135_v31 = vld [vmem:[#allocation82_spill] sm:$0xff] }
 0x312   :  { %2376 = vmatprep.subr.mxu0 %v1460_v16 }
 0x313   :  { %v5899_v24 = vpop.f32.mrf.mxu0  ;;  %v5901_v39 = vpop.f32.mrf.mxu1  ;;  %1926 = vmatmul.mubr.f32.gmra.mxu1 %v8123_v55  ;;  %2377 = vmatpush1.msra.mxu0 %v8124_v52 }
 0x314   :  { %1930 = vmatprep.mubr.f32.mxu1 %v8125_v14 }
 0x315   :  { %v5906_v3 = vpop.f32.mrf.mxu0  ;;  %v5908_v11 = vpop.f32.mrf.mxu1 }
 0x317   :  { %v5910_v1 = vpop.f32.mrf.mxu0  ;;  %v5912_v56 = vpop.f32.mrf.mxu1  ;;  %1931 = vmatmul.mubr.f32.gmra.mxu1 %v8126_v7 }
 0x318   :  { %1935 = vmatprep.mubr.f32.mxu1 %v8127_v36  ;;  %v8136_v36 = vld [vmem:[#allocation83_spill] sm:$0xff] }
 0x319   :  { %v5916_v49 = vpop.f32.mrf.mxu0  ;;  %v5918_v0 = vpop.f32.mrf.mxu1 }
 0x31b   :  { %v5920_v46 = vpop.f32.mrf.mxu0  ;;  %v5922_v47 = vpop.f32.mrf.mxu1  ;;  %1936 = vmatmul.mubr.f32.gmra.mxu1 %v8128_v5  ;;  %v8137_v5 = vld [vmem:[#allocation60_spill] sm:$0xff] }
 0x31c   :  { %1940 = vmatprep.mubr.f32.mxu1 %v8129_v57 }
 0x31d   :  { %v5926_v51 = vpop.f32.mrf.mxu0  ;;  %v1621_v22 = vpop.f32.mrf.mxu1 }
 0x31f   :  { %v1314_v34 = vpop.f32.mrf.mxu0  ;;  %v1625_v28 = vpop.f32.mrf.mxu1  ;;  %1941 = vmatmul.mubr.f32.gmra.mxu1 %v8130_v30 }
 0x320   :  { %1945 = vmatprep.mubr.f32.mxu1 %v8131_v40 }
 0x321   :  { %v1316_v15 = vpop.f32.mrf.mxu0  ;;  %v1627_v21 = vpop.f32.mrf.mxu1 }
 0x323   :  { %v1320_v29 = vpop.f32.mrf.mxu0  ;;  %v1631_v62 = vpop.f32.mrf.mxu1  ;;  %1946 = vmatmul.mubr.f32.gmra.mxu1 %v8132_v25 }
 0x324   :  { %1950 = vmatprep.mubr.f32.mxu1 %v8133_v37  ;;  %v8139_v37 = vld [vmem:[#allocation63_spill] sm:$0xff] }
 0x325   :  { %v1322_v20 = vpop.f32.mrf.mxu0  ;;  %v1633_v53 = vpop.f32.mrf.mxu1 }
 0x327   :  { %v1326_v4 = vpop.f32.mrf.mxu0  ;;  %v1637_v16 = vpop.f32.mrf.mxu1  ;;  %1951 = vmatmul.mubr.f32.gmra.mxu1 %v8134_v17 }
 0x328   :  { %1955 = vmatprep.mubr.f32.mxu1 %v8135_v31 }
 0x329   :  { %v1328_v55 = vpop.f32.mrf.mxu0  ;;  %v1639_v52 = vpop.f32.mrf.mxu1 }
 0x32b   :  { %v1332_v14 = vpop.f32.mrf.mxu0  ;;  %v1643_v7 = vpop.f32.mrf.mxu1  ;;  %1956 = vmatmul.mubr.f32.gmra.mxu1 %v8136_v36  ;;  %v8141_v36 = vld [vmem:[#allocation69_spill] sm:$0xff] }
 0x32c   :  { %4498 = vmatprep.mubr.f32.mxu1 %v8137_v5 }
 0x32d   :  { %v1334_v57 = vpop.f32.mrf.mxu0  ;;  %v1645_v30 = vpop.f32.mrf.mxu1 }
 0x32e   :  { %v1640_v5 = vadd.f32 %v1639_v52, %v1334_v57  ;;  %v1628_v52 = vadd.f32 %v1627_v21, %v1322_v20  ;;  %v8144_v57 = vld [vmem:[#allocation78_spill] sm:$0xff]  ;;  %v1616_v21 = vadd.f32 %v5918_v0, %v5926_v51 }
 0x32f   :  { %v1338_v40 = vpop.f32.mrf.mxu0  ;;  %v5936_v25 = vpop.f32.mrf.mxu1  ;;  %4499 = vmatmul.mubr.f32.vlgmr.msra.gmra.mxu1 %v8139_v37 }
 0x330   :  { %8138 = vst [vmem:[#allocation32_spill] sm:$0xff] %v5936_v25  ;;  %4501 = vmatprep.mubr.f32.mxu1 %v8140_v9  ;;  %v1644_v33 = vadd.f32 %v1643_v7, %v1338_v40  ;;  %v1638_v25 = vadd.f32 %v1637_v16, %v1332_v14  ;;  %v1634_v9 = vadd.f32 %v1633_v53, %v1328_v55  ;;  %v8145_v55 = vld [vmem:[#allocation81_spill] sm:$0xff] }
 0x331   :  { %v1340_v17 = vpop.f32.mrf.mxu0  ;;  %v5940_v60 = vpop.f32.mrf.mxu1 }
 0x332   :  { %v1646_v31 = vadd.f32 %v1645_v30, %v1340_v17  ;;  %v1632_v30 = vadd.f32 %v1631_v62, %v1326_v4  ;;  %v8143_v17 = vld [vmem:[#allocation75_spill] sm:$0xff]  ;;  %v1620_v62 = vadd.f32 %v5922_v47, %v1314_v34  ;;  %v1610_v47 = vadd.f32 %v5908_v11, %v5916_v49 }
 0x333   :  { %v5942_v10 = vpop.f32.mrf.mxu0  ;;  %v5944_v27 = vpop.f32.mrf.mxu1  ;;  %4502 = vmatmul.mubr.f32.gmra.mxu1 %v8141_v36  ;;  %v1608_v34 = vadd.f32 %v5901_v39, %v5910_v1  ;;  %v1598_v39 = vadd.f32 %v5880_v18, %v5894_v61  ;;  %v1596_v11 = vadd.f32 %v5871_v2, %v5885_v8  ;;  %v1586_v18 = vadd.f32 %v5849_v38, %v5863_v6 }
 0x334   :  { %4504 = vmatprep.mubr.f32.mxu1 %v8142_v42  ;;  %2378 = vmatprep.subr.mxu0 %v1646_v31  ;;  %v1626_v42 = vadd.f32 %v1625_v28, %v1320_v29  ;;  %v8146_v28 = vmov 0.0   ;;  %v1614_v29 = vadd.f32 %v5912_v56, %v5920_v46  ;;  %v1604_v56 = vadd.f32 %v5896_v35, %v5906_v3 }
 0x335   :  { %v5948_v19 = vpop.f32.mrf.mxu0  ;;  %v5950_v37 = vpop.f32.mrf.mxu1  ;;  %2379 = vmatpush2.msra.mxu0 %v1644_v33  ;;  %v1622_v33 = vadd.f32 %v1621_v22, %v1316_v15  ;;  %v1602_v46 = vadd.f32 %v5887_v50, %v5899_v24  ;;  %v1592_v35 = vadd.f32 %v5865_v41, %v5878_v32  ;;  %v1590_v50 = vadd.f32 %v5857_v48, %v5869_v45 }
 0x336   :  { %2380 = vmatprep.subr.mxu0 %v1640_v5  ;;  %v1584_v2 = vadd.f32 %v5837_v13, %v5855_v44  ;;  %v1580_v41 = vadd.f32 %v5831_v59, %v5847_v54  ;;  %v1574_v48 = vadd.f32 %v5815_v58, %v5829_v23  ;;  %v1568_v13 = vadd.f32 %v5802_v12, %v5813_v43  ;;  %v8147_v59 = vld [vmem:[#allocation39_spill] sm:$0xff]  ;;  %v8148_v54 = vld [vmem:[#allocation24_spill] sm:$0xff]  ;;  %v8149_v58 = vld [vmem:[#allocation42_spill] sm:$0xff] }
 0x337   :  { %v5952_v7 = vpop.f32.mrf.mxu0  ;;  %v5954_v40 = vpop.f32.mrf.mxu1  ;;  %4505 = vmatmul.mubr.f32.gmra.mxu1 %v8143_v17  ;;  %2381 = vmatpush2.msra.mxu0 %v1638_v25  ;;  %v1562_v36 = vadd.f32 %v8148_v54, %v8147_v59  ;;  %v8150_v23 = vld [vmem:[#allocation30_spill] sm:$0xff]  ;;  %v8152_v43 = vld [vmem:[#allocation28_spill] sm:$0xff]  ;;  %v6116_v59 = vld [vmem:[#allocation2 + $0x400] sm:$0xff] }
 0x338   :  { %4507 = vmatprep.mubr.f32.mxu1 %v8144_v57  ;;  %2382 = vmatprep.subr.mxu0 %v1634_v9  ;;  %v6025_v57 = vld [vmem:[#allocation2 + $0x3e0] sm:$0xff] }
 0x339   :  { %v5958_v16 = vpop.f32.mrf.mxu0  ;;  %v5960_v14 = vpop.f32.mrf.mxu1  ;;  %2383 = vmatpush2.msra.mxu0 %v1632_v30  ;;  %v8151_v30 = vld [vmem:[#allocation20_spill] sm:$0xff] }
 0x33a   :  { %2384 = vmatprep.subr.mxu0 %v1628_v52  ;;  %v6023_v52 = vld [vmem:[#allocation2 + $0x3c0] sm:$0xff] }
 0x33b   :  { %v5963_v53 = vpop.f32.mrf.mxu0  ;;  %v5965_v4 = vpop.f32.mrf.mxu1  ;;  %4508 = vmatmul.mubr.f32.gmra.mxu1 %v8145_v55  ;;  %2385 = vmatpush2.msra.mxu0 %v1626_v42  ;;  %v8153_v55 = vld [vmem:[#allocation26_spill] sm:$0xff] }
 0x33c   :  { %2386 = vmatprep.subr.mxu0 %v1622_v33  ;;  %2715 = vmatprep.mubr.f32.mxu1 %v8146_v28 }
 0x33d   :  { %v5973_v22 = vpop.f32.mrf.mxu0  ;;  %v5975_v15 = vpop.f32.mrf.mxu1  ;;  %2387 = vmatpush2.msra.mxu0 %v1620_v62 }
 0x33e   :  { %2388 = vmatprep.subr.mxu0 %v1616_v21 }
 0x33f   :  { %v5981_v20 = vpop.f32.mrf.mxu0  ;;  %v5983_v0 = vpop.f32.mrf.mxu1  ;;  %2389 = vmatpush2.msra.mxu0 %v1614_v29 }
 0x340   :  { %2390 = vmatprep.subr.mxu0 %v1610_v47 }
 0x341   :  { %v5989_v51 = vpop.f32.mrf.mxu0  ;;  %v5991_v25 = vpop.f32.mrf.mxu1  ;;  %2391 = vmatpush2.msra.mxu0 %v1608_v34  ;;  %v6034_v34 = vld [vmem:[#allocation2 + $0x3d8] sm:$0xff] }
 0x342   :  { %2392 = vmatprep.subr.mxu0 %v1604_v56 }
 0x343   :  { %v5997_v1 = vpop.f32.mrf.mxu0  ;;  %v1679_v49 = vpop.f32.mrf.mxu1  ;;  %2393 = vmatpush2.msra.mxu0 %v1602_v46 }
 0x344   :  { %2394 = vmatprep.subr.mxu0 %v1598_v39  ;;  %v6038_v39 = vld [vmem:[#allocation2 + $0x3f8] sm:$0xff] }
 0x345   :  { %v1370_v24 = vpop.f32.mrf.mxu0  ;;  %v1681_v3 = vpop.f32.mrf.mxu1  ;;  %2395 = vmatpush2.msra.mxu0 %v1596_v11 }
 0x346   :  { %2396 = vmatprep.subr.mxu0 %v1592_v35 }
 0x347   :  { %v1374_v8 = vpop.f32.mrf.mxu0  ;;  %v1685_v61 = vpop.f32.mrf.mxu1  ;;  %2397 = vmatpush2.msra.mxu0 %v1590_v50  ;;  %v1676_v50 = vadd.f32 %v5991_v25, %v1370_v24  ;;  %v1668_v25 = vadd.f32 %v5965_v4, %v5981_v20  ;;  %v1658_v4 = vadd.f32 %v5950_v37, %v5958_v16 }
 0x348   :  { %2398 = vmatprep.subr.mxu0 %v1586_v18  ;;  %v1680_v11 = vadd.f32 %v1679_v49, %v1374_v8  ;;  %v1674_v18 = vadd.f32 %v5983_v0, %v5997_v1  ;;  %v1670_v49 = vadd.f32 %v5975_v15, %v5989_v51  ;;  %v1664_v0 = vadd.f32 %v5960_v14, %v5973_v22  ;;  %v6066_v1 = vld [vmem:[#allocation2 + $0x408] sm:$0xff] }
 0x349   :  { %v1376_v32 = vpop.f32.mrf.mxu0  ;;  %v1687_v31 = vpop.f32.mrf.mxu1  ;;  %2399 = vmatpush2.msra.mxu0 %v1584_v2  ;;  %v6048_v2 = vld [vmem:[#allocation2 + $0x3f0] sm:$0xff]  ;;  %v1662_v15 = vadd.f32 %v5954_v40, %v5963_v53  ;;  %v1656_v14 = vadd.f32 %v5944_v27, %v5952_v7  ;;  %v1652_v40 = vadd.f32 %v5940_v60, %v5948_v19  ;;  %v8154_v53 = vld [vmem:[#allocation32_spill] sm:$0xff]  ;;  %v6090_v7 = vld [vmem:[#allocation2 + $0x440] sm:$0xff] }
 0x34a   :  { %2400 = vmatprep.subr.mxu0 %v1580_v41  ;;  %v1682_v56 = vadd.f32 %v1681_v3, %v1376_v32  ;;  %v6072_v41 = vld [vmem:[#allocation2 + $0x428] sm:$0xff]  ;;  %v1650_v37 = vadd.f32 %v8154_v53, %v5942_v10  ;;  %v6084_v32 = vld [vmem:[#allocation2 + $0x420] sm:$0xff]  ;;  %v6099_v19 = vld [vmem:[#allocation2 + $0x438] sm:$0xff] }
 0x34b   :  { %v1380_v45 = vpop.f32.mrf.mxu0  ;;  %v1691_v38 = vpop.f32.mrf.mxu1  ;;  %2401 = vmatpush2.msra.mxu0 %v5842_v63  ;;  %v1556_v63 = vadd.f32 %v8151_v30, %v8150_v23  ;;  %v6129_v23 = vld [vmem:[#allocation2 + $0x468] sm:$0xff]  ;;  %v6131_v30 = vld [vmem:[#allocation2 + $0x418] sm:$0xff] }
 0x34c   :  { %2402 = vmatprep.subr.mxu0 %v1574_v48  ;;  %v1686_v29 = vadd.f32 %v1685_v61, %v1380_v45  ;;  %v6054_v61 = vld [vmem:[#allocation2 + $0x410] sm:$0xff]  ;;  %v6101_v48 = vld [vmem:[#allocation2 + $0x3e8] sm:$0xff]  ;;  %v6191_v53 = vld [vmem:[#allocation2 + $0x478] sm:$0xff] }
 0x34d   :  { %v1382_v44 = vpop.f32.mrf.mxu0  ;;  %v1693_v6 = vpop.f32.mrf.mxu1  ;;  %2403 = vmatpush2.msra.mxu0 %v5824_v26  ;;  %8163 = vst [vmem:[#allocation11_spill] sm:$0xff] %v6191_v53 }
 0x34e   :  { %2404 = vmatprep.subr.mxu0 %v1568_v13  ;;  %v1688_v21 = vadd.f32 %v1687_v31, %v1382_v44  ;;  %v6086_v31 = vld [vmem:[#allocation2 + $0x3d0] sm:$0xff] }
 0x34f   :  { %v1386_v5 = vpop.f32.mrf.mxu0  ;;  %v6017_v9 = vpop.f32.mrf.mxu1  ;;  %2405 = vmatpush2.msra.mxu0 %v8149_v58 }
 0x350   :  { %2406 = vmatprep.subr.mxu0 %v1562_v36  ;;  %v1692_v42 = vadd.f32 %v1691_v38, %v1386_v5  ;;  %v6105_v38 = vld [vmem:[#allocation2 + $0x458] sm:$0xff]  ;;  %v6120_v36 = vld [vmem:[#allocation2 + $0x470] sm:$0xff] }
 0x351   :  { %v1388_v17 = vpop.f32.mrf.mxu0  ;;  %v1764_v12 = vpop.f32.mrf.mxu1  ;;  %2407 = vmatpush2.msra.mxu0 %v8152_v43 }
 0x352   :  { %v1694_v26 = vadd.f32 %v1693_v6, %v1388_v17  ;;  %2408 = vmatprep.subr.mxu0 %v1556_v63  ;;  %v6114_v6 = vld [vmem:[#allocation2 + $0x450] sm:$0xff]  ;;  %v6135_v17 = vld [vmem:[#allocation2 + $0x488] sm:$0xff] }
 0x353   :  { %v6027_v33 = vpop.f32.mrf.mxu1  ;;  %v6029_v62 = vpop.f32.mrf.mxu0  ;;  %2409 = vmatpush2.msra.mxu0 %v8153_v55 }
 0x354   :  { %2411 = vmatmul.mubr.f32.vlgmr.msra.gmra.mxu0 %v6023_v52  ;;  %2667 = vmatprep.subr.mxu1 %v1694_v26  ;;  %v6144_v26 = vld [vmem:[#allocation2 + $0x480] sm:$0xff] }
 0x355   :  { %v1769_v47 = vpop.f32.mrf.mxu1  ;;  %2668 = vmatpush1.msra.mxu1 %v1692_v42  ;;  %2416 = vmatprep.mubr.f32.mxu0 %v6025_v57  ;;  %v6036_v46 = vpop.f32.mrf.mxu0  ;;  %v6146_v42 = vld [vmem:[#allocation2 + $0x430] sm:$0xff] }
 0x356   :  { %2669 = vmatprep.subr.mxu1 %v1688_v21  ;;  %2956 = vmatprep.subr.mxu0 %v8146_v28  ;;  %v6150_v21 = vld [vmem:[#allocation2 + $0x4a0] sm:$0xff] }
 0x357   :  { %v6041_v35 = vpop.f32.mrf.mxu1  ;;  %2670 = vmatpush1.msra.mxu1 %v1686_v29  ;;  %v6052_v8 = vpop.f32.mrf.mxu0  ;;  %8155 = vst [vmem:[#allocation45_spill] sm:$0xff] %v6150_v21 }
 0x358   :  { %2417 = vmatmul.mubr.f32.gmra.mxu0 %v6034_v34  ;;  %2671 = vmatprep.subr.mxu1 %v1682_v56  ;;  %v6159_v56 = vld [vmem:[#allocation2 + $0x498] sm:$0xff] }
 0x359   :  { %v1774_v3 = vpop.f32.mrf.mxu1  ;;  %2672 = vmatpush1.msra.mxu1 %v1680_v11  ;;  %2422 = vmatprep.mubr.f32.mxu0 %v6038_v39  ;;  %v6070_v20 = vpop.f32.mrf.mxu0  ;;  %8156 = vst [vmem:[#allocation48_spill] sm:$0xff] %v6159_v56  ;;  %v6161_v11 = vld [vmem:[#allocation2 + $0x448] sm:$0xff] }
 0x35a   :  { %2673 = vmatprep.subr.mxu1 %v1676_v50  ;;  %8157 = vst [vmem:[#allocation35_spill] sm:$0xff] %v6161_v11 }
 0x35b   :  { %v6058_v24 = vpop.f32.mrf.mxu1  ;;  %2674 = vmatpush1.msra.mxu1 %v1674_v18  ;;  %v6088_v27 = vpop.f32.mrf.mxu0  ;;  %v6165_v18 = vld [vmem:[#allocation2 + $0x4b8] sm:$0xff] }
 0x35c   :  { %2423 = vmatmul.mubr.f32.gmra.mxu0 %v6048_v2  ;;  %2675 = vmatprep.subr.mxu1 %v1670_v49  ;;  %8158 = vst [vmem:[#allocation51_spill] sm:$0xff] %v6165_v18 }
 0x35d   :  { %v1779_v51 = vpop.f32.mrf.mxu1  ;;  %2676 = vmatpush1.msra.mxu1 %v1668_v25  ;;  %2428 = vmatprep.mubr.f32.mxu0 %v6054_v61  ;;  %v6103_v45 = vpop.f32.mrf.mxu0  ;;  %v6174_v25 = vld [vmem:[#allocation2 + $0x4b0] sm:$0xff] }
 0x35e   :  { %2677 = vmatprep.subr.mxu1 %v1664_v0  ;;  %8159 = vst [vmem:[#allocation7_spill] sm:$0xff] %v6174_v25  ;;  %v6176_v0 = vld [vmem:[#allocation2 + $0x460] sm:$0xff]  ;;  %v6180_v51 = vld [vmem:[#allocation2 + $0x4d0] sm:$0xff] }
 0x35f   :  { %v6076_v22 = vpop.f32.mrf.mxu1  ;;  %2678 = vmatpush1.msra.mxu1 %v1662_v15  ;;  %v6118_v54 = vpop.f32.mrf.mxu0  ;;  %8160 = vst [vmem:[#allocation54_spill] sm:$0xff] %v6176_v0  ;;  %8161 = vst [vmem:[#allocation9_spill] sm:$0xff] %v6180_v51 }
 0x360   :  { %2429 = vmatmul.mubr.f32.gmra.mxu0 %v6066_v1  ;;  %2679 = vmatprep.subr.mxu1 %v1658_v4 }
 0x361   :  { %v1784_v16 = vpop.f32.mrf.mxu1  ;;  %2680 = vmatpush1.msra.mxu1 %v1656_v14  ;;  %2434 = vmatprep.mubr.f32.mxu0 %v6072_v41  ;;  %v6133_v63 = vpop.f32.mrf.mxu0 }
 0x362   :  { %2681 = vmatprep.subr.mxu1 %v1652_v40  ;;  %v6189_v40 = vld [vmem:[#allocation2 + $0x4c8] sm:$0xff] }
 0x363   :  { %v6092_v60 = vpop.f32.mrf.mxu1  ;;  %2682 = vmatpush1.msra.mxu1 %v1650_v37  ;;  %v6148_v55 = vpop.f32.mrf.mxu0  ;;  %8162 = vst [vmem:[#allocation57_spill] sm:$0xff] %v6189_v40  ;;  %v6195_v16 = vld [vmem:[#allocation2 + $0x4e8] sm:$0xff] }
 0x364   :  { %2435 = vmatmul.mubr.f32.gmra.mxu0 %v6084_v32  ;;  %4170 = vmatmul.mubr.msk.f32.vlgmr.msra.gmra.mxu1 %vm417_vm0, %v6086_v31  ;;  %8164 = vst [vmem:[#allocation13_spill] sm:$0xff] %v6195_v16 }
 0x365   :  { %v1789_v10 = vpop.f32.mrf.mxu1  ;;  %2440 = vmatprep.mubr.f32.mxu0 %v6090_v7  ;;  %2721 = vmatprep.mubr.f32.mxu1 %v8146_v28  ;;  %v6163_v50 = vpop.f32.mrf.mxu0 }
 0x367   :  { %v6107_v13 = vpop.f32.mrf.mxu1  ;;  %v6178_v15 = vpop.f32.mrf.mxu0 }
 0x368   :  { %2441 = vmatmul.mubr.f32.gmra.mxu0 %v6099_v19  ;;  %4171 = vmatmul.mubr.msk.f32.gmra.mxu1 %vm417_vm0, %v6101_v48 }
 0x369   :  { %v1794_v44 = vpop.f32.mrf.mxu1  ;;  %2446 = vmatprep.mubr.f32.mxu0 %v6105_v38  ;;  %2727 = vmatprep.mubr.f32.mxu1 %v8146_v28  ;;  %v6193_v37 = vpop.f32.mrf.mxu0 }
 0x36b   :  { %v6122_v5 = vpop.f32.mrf.mxu1 }
 0x36c   :  { %2447 = vmatmul.mubr.f32.gmra.mxu0 %v6114_v6  ;;  %4172 = vmatmul.mubr.msk.f32.gmra.mxu1 %vm417_vm0, %v6116_v59 }
 0x36d   :  { %v1799_v58 = vpop.f32.mrf.mxu1  ;;  %2452 = vmatprep.mubr.f32.mxu0 %v6120_v36  ;;  %2733 = vmatprep.mubr.f32.mxu1 %v8146_v28 }
 0x36e   :  { %v6202_v58 = vld [vmem:[#allocation2 + $0x4e0] sm:$0xff] }
 0x36f   :  { %v6137_v12 = vpop.f32.mrf.mxu1  ;;  %8165 = vst [vmem:[#allocation15_spill] sm:$0xff] %v6202_v58 }
 0x370   :  { %2453 = vmatmul.mubr.f32.gmra.mxu0 %v6129_v23  ;;  %4173 = vmatmul.mubr.msk.f32.gmra.mxu1 %vm417_vm0, %v6131_v30 }
 0x371   :  { %v1804_v43 = vpop.f32.mrf.mxu1  ;;  %2458 = vmatprep.mubr.f32.mxu0 %v6135_v17  ;;  %2739 = vmatprep.mubr.f32.mxu1 %v8146_v28 }
 0x372   :  { %v6204_v43 = vld [vmem:[#allocation2 + $0x490] sm:$0xff] }
 0x373   :  { %v6152_v29 = vpop.f32.mrf.mxu1  ;;  %8166 = vst [vmem:[#allocation17_spill] sm:$0xff] %v6204_v43 }
 0x374   :  { %2459 = vmatmul.mubr.f32.gmra.mxu0 %v6144_v26  ;;  %4174 = vmatmul.mubr.msk.f32.gmra.mxu1 %vm417_vm0, %v6146_v42 }
 0x375   :  { %v1809_v47 = vpop.f32.mrf.mxu1  ;;  %2464 = vmatprep.mubr.f32.mxu0 %v6150_v21  ;;  %2745 = vmatprep.mubr.f32.mxu1 %v8146_v28 }
 0x376   :  { %v4470_v47 = vpop.f32.mrf.mxu0 }
 0x377   :  { %v6167_v3 = vpop.f32.mrf.mxu1 }
 0x378   :  { %2465 = vmatmul.mubr.f32.gmra.mxu0 %v6159_v56  ;;  %4175 = vmatmul.mubr.msk.f32.gmra.mxu1 %vm417_vm0, %v6161_v11  ;;  %v6239_v11 = vld [vmem:[#allocation2 + $0x548] sm:$0xff] }
 0x379   :  { %v1814_v49 = vpop.f32.mrf.mxu1  ;;  %2470 = vmatprep.mubr.f32.mxu0 %v6165_v18  ;;  %2751 = vmatprep.mubr.f32.mxu1 %v8146_v28  ;;  %v6228_v18 = vld [vmem:[#allocation2 + $0x530] sm:$0xff]  ;;  %8176 = vst [vmem:[#allocation36_spill] sm:$0xff] %v6239_v11 }
 0x37a   :  { %v6206_v49 = vld [vmem:[#allocation2 + $0x500] sm:$0xff]  ;;  %8173 = vst [vmem:[#allocation31_spill] sm:$0xff] %v6228_v18 }
 0x37b   :  { %v6182_v4 = vpop.f32.mrf.mxu1  ;;  %8167 = vst [vmem:[#allocation19_spill] sm:$0xff] %v6206_v49 }
 0x37c   :  { %2471 = vmatmul.mubr.f32.gmra.mxu0 %v6174_v25  ;;  %4176 = vmatmul.mubr.msk.f32.gmra.mxu1 %vm417_vm0, %v6176_v0  ;;  %v6217_v25 = vld [vmem:[#allocation2 + $0x518] sm:$0xff] }
 0x37d   :  { %v1819_v14 = vpop.f32.mrf.mxu1  ;;  %2476 = vmatprep.mubr.f32.mxu0 %v6180_v51  ;;  %2757 = vmatprep.mubr.f32.mxu1 %v8146_v28  ;;  %v2087_v51 = vpop.f32.mrf.mxu0  ;;  %8170 = vst [vmem:[#allocation25_spill] sm:$0xff] %v6217_v25 }
 0x37f   :  { %v1822_v10 = vpop.f32.mrf.mxu1 }
 0x380   :  { %2477 = vmatmul.mubr.f32.gmra.mxu0 %v6189_v40  ;;  %4177 = vmatmul.mubr.msk.f32.gmra.mxu1 %vm417_vm0, %v6191_v53 }
 0x381   :  { %v1824_v44 = vpop.f32.mrf.mxu1  ;;  %2482 = vmatprep.mubr.f32.mxu0 %v6195_v16  ;;  %2763 = vmatprep.mubr.f32.mxu1 %v8146_v28  ;;  %v6215_v16 = vld [vmem:[#allocation2 + $0x4a8] sm:$0xff] }
 0x382   :  { %v6213_v44 = vld [vmem:[#allocation2 + $0x4f8] sm:$0xff]  ;;  %8169 = vst [vmem:[#allocation23_spill] sm:$0xff] %v6215_v16 }
 0x383   :  { %v1827_v14 = vpop.f32.mrf.mxu1  ;;  %8168 = vst [vmem:[#allocation21_spill] sm:$0xff] %v6213_v44 }
 0x384   :  { %2483 = vmatmul.mubr.f32.gmra.mxu0 %v6202_v58  ;;  %4178 = vmatmul.mubr.msk.f32.gmra.mxu1 %vm417_vm0, %v6204_v43  ;;  %v4473_v43 = vpop.f32.mrf.mxu0 }
 0x385   :  { %v1829_v40 = vpop.f32.mrf.mxu1  ;;  %2488 = vmatprep.mubr.f32.mxu0 %v6206_v49  ;;  %2769 = vmatprep.mubr.f32.mxu1 %v8146_v28  ;;  %v6226_v49 = vld [vmem:[#allocation2 + $0x4c0] sm:$0xff] }
 0x386   :  { %v6224_v40 = vld [vmem:[#allocation2 + $0x510] sm:$0xff]  ;;  %8172 = vst [vmem:[#allocation29_spill] sm:$0xff] %v6226_v49 }
 0x387   :  { %v1832_v53 = vpop.f32.mrf.mxu1  ;;  %8171 = vst [vmem:[#allocation27_spill] sm:$0xff] %v6224_v40 }
 0x388   :  { %2489 = vmatmul.mubr.f32.gmra.mxu0 %v6213_v44  ;;  %4179 = vmatmul.mubr.msk.f32.gmra.mxu1 %vm417_vm0, %v6215_v16  ;;  %v2097_v16 = vpop.f32.mrf.mxu0 }
 0x389   :  { %v1834_v58 = vpop.f32.mrf.mxu1  ;;  %2494 = vmatprep.mubr.f32.mxu0 %v6217_v25  ;;  %2775 = vmatprep.mubr.f32.mxu1 %v8146_v28  ;;  %v6237_v25 = vld [vmem:[#allocation2 + $0x4d8] sm:$0xff]  ;;  %v2098_v21 = vadd.f32 %v2097_v16, %v1832_v53  ;;  %v6254_v53 = vld [vmem:[#allocation2 + $0x4f0] sm:$0xff]  ;;  %v2088_v16 = vadd.f32 %v2087_v51, %v1822_v10  ;;  %v6272_v10 = vld [vmem:[#allocation2 + $0x508] sm:$0xff] }
 0x38a   :  { %v6235_v58 = vld [vmem:[#allocation2 + $0x528] sm:$0xff]  ;;  %8175 = vst [vmem:[#allocation34_spill] sm:$0xff] %v6237_v25  ;;  %8178 = vst [vmem:[#allocation38_spill] sm:$0xff] %v6254_v53 }
 0x38b   :  { %v1837_v0 = vpop.f32.mrf.mxu1  ;;  %8174 = vst [vmem:[#allocation33_spill] sm:$0xff] %v6235_v58  ;;  %8181 = vst [vmem:[#allocation43_spill] sm:$0xff] %v6272_v10 }
 0x38c   :  { %v2103_v56 = vadd.f32 %v4473_v43, %v1837_v0  ;;  %2495 = vmatmul.mubr.f32.gmra.mxu0 %v6224_v40  ;;  %4180 = vmatmul.mubr.msk.f32.gmra.mxu1 %vm417_vm0, %v6226_v49  ;;  %v2093_v43 = vadd.f32 %v4470_v47, %v1827_v14  ;;  %v6258_v40 = vld [vmem:[#allocation2 + $0x560] sm:$0xff]  ;;  %v6266_v14 = vld [vmem:[#allocation2 + $0x558] sm:$0xff] }
 0x38d   :  { %v1839_v44 = vpop.f32.mrf.mxu1  ;;  %2500 = vmatprep.mubr.f32.mxu0 %v6228_v18  ;;  %2781 = vmatprep.mubr.f32.mxu1 %v8146_v28  ;;  %v6248_v18 = vld [vmem:[#allocation2 + $0x540] sm:$0xff]  ;;  %8179 = vst [vmem:[#allocation40_spill] sm:$0xff] %v6258_v40  ;;  %8180 = vst [vmem:[#allocation41_spill] sm:$0xff] %v6266_v14 }
 0x38e   :  { %2957 = vmatpush1.msra.mxu0 %v2103_v56  ;;  %8177 = vst [vmem:[#allocation37_spill] sm:$0xff] %v6248_v18  ;;  %v6250_v56 = vpop.f32.mrf.mxu0 }
 0x38f   :  { %v6241_v0 = vpop.f32.mrf.mxu1  ;;  %2958 = vmatprep.subr.mxu0 %v8146_v28 }
 0x390   :  { %2501 = vmatmul.mubr.f32.gmra.mxu0 %v6235_v58  ;;  %4181 = vmatmul.mubr.msk.f32.gmra.mxu1 %vm417_vm0, %v6237_v25  ;;  %v6268_v51 = vpop.f32.mrf.mxu0 }
 0x391   :  { %2959 = vmatpush1.msra.mxu0 %v2098_v21  ;;  %v1844_v44 = vpop.f32.mrf.mxu1  ;;  %2506 = vmatprep.mubr.f32.mxu0 %v6239_v11  ;;  %v2083_v21 = vadd.f32 %v6178_v15, %v6182_v4  ;;  %v6279_v4 = vld [vmem:[#allocation2 + $0x578] sm:$0xff] }
 0x392   :  { %2960 = vmatprep.subr.mxu0 %v8146_v28  ;;  %2787 = vmatprep.mubr.f32.mxu1 %v8146_v28  ;;  %8182 = vst [vmem:[#allocation44_spill] sm:$0xff] %v6279_v4  ;;  %v2073_v44 = vadd.f32 %v6148_v55, %v6152_v29  ;;  %v6300_v29 = vld [vmem:[#allocation2 + $0x590] sm:$0xff] }
 0x393   :  { %2961 = vmatpush1.msra.mxu0 %v2093_v43  ;;  %v6256_v58 = vpop.f32.mrf.mxu1  ;;  %v2078_v43 = vadd.f32 %v6193_v37, %v6167_v3  ;;  %v6287_v3 = vld [vmem:[#allocation2 + $0x570] sm:$0xff]  ;;  %v6289_v37 = vpop.f32.mrf.mxu0  ;;  %8185 = vst [vmem:[#allocation49_spill] sm:$0xff] %v6300_v29 }
 0x394   :  { %2962 = vmatprep.subr.mxu0 %v8146_v28  ;;  %2507 = vmatmul.mubr.f32.gmra.mxu0 %v6248_v18  ;;  %8183 = vst [vmem:[#allocation46_spill] sm:$0xff] %v6287_v3 }
 0x395   :  { %4182 = vmatmul.mubr.msk.f32.gmra.mxu1 %vm417_vm0, %v6254_v53  ;;  %2963 = vmatpush1.msra.mxu0 %v2088_v16  ;;  %v1849_v47 = vpop.f32.mrf.mxu1 }
 0x396   :  { %2964 = vmatprep.subr.mxu0 %v8146_v28  ;;  %2512 = vmatprep.mubr.f32.mxu0 %v6258_v40  ;;  %v2068_v47 = vadd.f32 %v6163_v50, %v6137_v12  ;;  %v6308_v12 = vld [vmem:[#allocation2 + $0x588] sm:$0xff]  ;;  %v6310_v50 = vpop.f32.mrf.mxu0  ;;  %v6442_v40 = vld [vmem:[#allocation2 + $0x5e0] sm:$0xff] }
 0x397   :  { %2965 = vmatpush1.msra.mxu0 %v2083_v21  ;;  %v6276_v15 = vpop.f32.mrf.mxu1  ;;  %2793 = vmatprep.mubr.f32.mxu1 %v8146_v28  ;;  %v6293_v21 = vld [vmem:[#allocation2 + $0x520] sm:$0xff]  ;;  %8186 = vst [vmem:[#allocation50_spill] sm:$0xff] %v6308_v12  ;;  %8208 = vst [vmem:[#allocation70_spill] sm:$0xff] %v6442_v40 }
 0x398   :  { %2966 = vmatprep.subr.mxu0 %v8146_v28  ;;  %2513 = vmatmul.mubr.f32.gmra.mxu0 %v6266_v14  ;;  %8184 = vst [vmem:[#allocation47_spill] sm:$0xff] %v6293_v21 }
 0x399   :  { %4183 = vmatmul.mubr.msk.f32.gmra.mxu1 %vm417_vm0, %v6272_v10  ;;  %2967 = vmatpush1.msra.mxu0 %v2078_v43  ;;  %v1854_v16 = vpop.f32.mrf.mxu1  ;;  %v2063_v43 = vadd.f32 %v6118_v54, %v6122_v5  ;;  %v6321_v5 = vld [vmem:[#allocation2 + $0x5a8] sm:$0xff] }
 0x39a   :  { %2968 = vmatprep.subr.mxu0 %v8146_v28  ;;  %2518 = vmatprep.mubr.f32.mxu0 %v6279_v4  ;;  %8188 = vst [vmem:[#allocation53_spill] sm:$0xff] %v6321_v5  ;;  %v6429_v4 = vld [vmem:[#allocation2 + $0x638] sm:$0xff] }
 0x39b   :  { %2969 = vmatpush1.msra.mxu0 %v2073_v44  ;;  %v6297_v55 = vpop.f32.mrf.mxu1  ;;  %2799 = vmatprep.mubr.f32.mxu1 %v8146_v28  ;;  %v6314_v44 = vld [vmem:[#allocation2 + $0x538] sm:$0xff]  ;;  %8206 = vst [vmem:[#allocation67_spill] sm:$0xff] %v6429_v4 }
 0x39c   :  { %2970 = vmatprep.subr.mxu0 %v8146_v28  ;;  %2519 = vmatmul.mubr.f32.gmra.mxu0 %v6287_v3  ;;  %8187 = vst [vmem:[#allocation52_spill] sm:$0xff] %v6314_v44  ;;  %v2058_v3 = vadd.f32 %v6133_v63, %v6107_v13  ;;  %v6329_v13 = vld [vmem:[#allocation2 + $0x5a0] sm:$0xff]  ;;  %v6331_v63 = vpop.f32.mrf.mxu0 }
 0x39d   :  { %4184 = vmatmul.mubr.msk.f32.gmra.mxu1 %vm417_vm0, %v6293_v21  ;;  %2971 = vmatpush1.msra.mxu0 %v2068_v47  ;;  %v1859_v16 = vpop.f32.mrf.mxu1  ;;  %v2053_v47 = vadd.f32 %v6088_v27, %v6092_v60  ;;  %8189 = vst [vmem:[#allocation55_spill] sm:$0xff] %v6329_v13  ;;  %v6342_v60 = vld [vmem:[#allocation2 + $0x5c0] sm:$0xff]  ;;  %v6492_v21 = vld [vmem:[#allocation2 + $0x6b0] sm:$0xff] }
 0x39e   :  { %2972 = vmatprep.subr.mxu0 %v8146_v28  ;;  %2524 = vmatprep.mubr.f32.mxu0 %v6300_v29  ;;  %8191 = vst [vmem:[#allocation58_spill] sm:$0xff] %v6342_v60  ;;  %v6427_v29 = vld [vmem:[#allocation2 + $0x5c8] sm:$0xff]  ;;  %8219 = vst [vmem:[#allocation63_spill] sm:$0xff] %v6492_v21 }
 0x39f   :  { %2973 = vmatpush1.msra.mxu0 %v2063_v43  ;;  %v6318_v54 = vpop.f32.mrf.mxu1  ;;  %2805 = vmatprep.mubr.f32.mxu1 %v8146_v28  ;;  %v6335_v43 = vld [vmem:[#allocation2 + $0x550] sm:$0xff]  ;;  %8205 = vst [vmem:[#allocation8_spill] sm:$0xff] %v6427_v29 }
 0x3a0   :  { %2974 = vmatprep.subr.mxu0 %v8146_v28  ;;  %2525 = vmatmul.mubr.f32.gmra.mxu0 %v6308_v12  ;;  %8190 = vst [vmem:[#allocation56_spill] sm:$0xff] %v6335_v43  ;;  %v2048_v12 = vadd.f32 %v6103_v45, %v6076_v22  ;;  %v6350_v22 = vld [vmem:[#allocation2 + $0x5b8] sm:$0xff]  ;;  %v6352_v45 = vpop.f32.mrf.mxu0 }
 0x3a1   :  { %4185 = vmatmul.mubr.msk.f32.gmra.mxu1 %vm417_vm0, %v6314_v44  ;;  %2975 = vmatpush1.msra.mxu0 %v2058_v3  ;;  %v1864_v16 = vpop.f32.mrf.mxu1  ;;  %v2043_v3 = vadd.f32 %v6052_v8, %v6058_v24  ;;  %8192 = vst [vmem:[#allocation59_spill] sm:$0xff] %v6350_v22  ;;  %v6363_v24 = vld [vmem:[#allocation2 + $0x5d8] sm:$0xff] }
 0x3a2   :  { %2976 = vmatprep.subr.mxu0 %v8146_v28  ;;  %2530 = vmatprep.mubr.f32.mxu0 %v6321_v5  ;;  %8194 = vst [vmem:[#allocation61_spill] sm:$0xff] %v6363_v24 }
 0x3a3   :  { %2977 = vmatpush1.msra.mxu0 %v2053_v47  ;;  %v6339_v27 = vpop.f32.mrf.mxu1  ;;  %2811 = vmatprep.mubr.f32.mxu1 %v8146_v28  ;;  %v6356_v47 = vld [vmem:[#allocation2 + $0x568] sm:$0xff] }
 0x3a4   :  { %2978 = vmatprep.subr.mxu0 %v8146_v28  ;;  %2531 = vmatmul.mubr.f32.gmra.mxu0 %v6329_v13  ;;  %8193 = vst [vmem:[#allocation16_spill] sm:$0xff] %v6356_v47  ;;  %v2038_v13 = vadd.f32 %v6070_v20, %v6041_v35  ;;  %v6371_v35 = vld [vmem:[#allocation2 + $0x5d0] sm:$0xff]  ;;  %v6373_v20 = vpop.f32.mrf.mxu0 }
 0x3a5   :  { %4186 = vmatmul.mubr.msk.f32.gmra.mxu1 %vm417_vm0, %v6335_v43  ;;  %2979 = vmatpush1.msra.mxu0 %v2048_v12  ;;  %v1869_v16 = vpop.f32.mrf.mxu1  ;;  %v2033_v12 = vadd.f32 %v6029_v62, %v6027_v33  ;;  %8195 = vst [vmem:[#allocation22_spill] sm:$0xff] %v6371_v35  ;;  %v6384_v62 = vld [vmem:[#allocation2 + $0x5f0] sm:$0xff]  ;;  %v6481_v43 = vld [vmem:[#allocation2 + $0x698] sm:$0xff] }
 0x3a6   :  { %2980 = vmatprep.subr.mxu0 %v8146_v28  ;;  %2536 = vmatprep.mubr.f32.mxu0 %v6342_v60  ;;  %8197 = vst [vmem:[#allocation12_spill] sm:$0xff] %v6384_v62  ;;  %v6414_v60 = vld [vmem:[#allocation2 + $0x620] sm:$0xff]  ;;  %8218 = vst [vmem:[#allocation60_spill] sm:$0xff] %v6481_v43 }
 0x3a7   :  { %2981 = vmatpush1.msra.mxu0 %v2043_v3  ;;  %v6360_v8 = vpop.f32.mrf.mxu1  ;;  %2817 = vmatprep.mubr.f32.mxu1 %v8146_v28  ;;  %v6377_v3 = vld [vmem:[#allocation2 + $0x580] sm:$0xff]  ;;  %8203 = vst [vmem:[#allocation10_spill] sm:$0xff] %v6414_v60 }
 0x3a8   :  { %2982 = vmatprep.subr.mxu0 %v8146_v28  ;;  %2537 = vmatmul.mubr.f32.gmra.mxu0 %v6350_v22  ;;  %8196 = vst [vmem:[#allocation14_spill] sm:$0xff] %v6377_v3  ;;  %v2028_v22 = vadd.f32 %v6036_v46, %v6017_v9  ;;  %v6396_v9 = vld [vmem:[#allocation2 + $0x598] sm:$0xff]  ;;  %v6398_v46 = vld [vmem:[#allocation2 + $0x608] sm:$0xff] }
 0x3a9   :  { %4187 = vmatmul.mubr.msk.f32.gmra.mxu1 %vm417_vm0, %v6356_v47  ;;  %2983 = vmatpush1.msra.mxu0 %v2038_v13  ;;  %v1874_v16 = vpop.f32.mrf.mxu1  ;;  %8199 = vst [vmem:[#allocation18_spill] sm:$0xff] %v6396_v9  ;;  %8200 = vst [vmem:[#allocation6_spill] sm:$0xff] %v6398_v46 }
 0x3aa   :  { %2984 = vmatprep.subr.mxu0 %v8146_v28  ;;  %2542 = vmatprep.mubr.f32.mxu0 %v6363_v24  ;;  %v6390_v16 = vld [vmem:[#allocation2 + $0x5e8] sm:$0xff]  ;;  %v6392_v24 = vpop.f32.mrf.mxu0 }
 0x3ab   :  { %2985 = vmatpush1.msra.mxu0 %v2033_v12  ;;  %v6381_v33 = vpop.f32.mrf.mxu1  ;;  %2823 = vmatprep.mubr.f32.mxu1 %v8146_v28  ;;  %8198 = vst [vmem:[#allocation62_spill] sm:$0xff] %v6390_v16 }
 0x3ac   :  { %2986 = vmatprep.subr.mxu0 %v8146_v28  ;;  %2543 = vmatmul.mubr.f32.gmra.mxu0 %v6371_v35  ;;  %v6412_v35 = vld [vmem:[#allocation2 + $0x5b0] sm:$0xff] }
 0x3ad   :  { %4188 = vmatmul.mubr.msk.f32.gmra.mxu1 %vm417_vm0, %v6377_v3  ;;  %2987 = vmatpush1.msra.mxu0 %v2028_v22  ;;  %v1879_v13 = vpop.f32.mrf.mxu1  ;;  %8202 = vst [vmem:[#allocation64_spill] sm:$0xff] %v6412_v35  ;;  %v6470_v3 = vld [vmem:[#allocation2 + $0x680] sm:$0xff] }
 0x3ae   :  { %2548 = vmatprep.mubr.f32.mxu0 %v6384_v62  ;;  %2829 = vmatprep.mubr.f32.mxu1 %v8146_v28  ;;  %v6407_v13 = vld [vmem:[#allocation2 + $0x600] sm:$0xff]  ;;  %v6409_v62 = vpop.f32.mrf.mxu0  ;;  %8215 = vst [vmem:[#allocation80_spill] sm:$0xff] %v6470_v3 }
 0x3af   :  { %v6400_v12 = vpop.f32.mrf.mxu1  ;;  %2988 = vmatprep.subr.mxu0 %v8146_v28  ;;  %8201 = vst [vmem:[#allocation5_spill] sm:$0xff] %v6407_v13 }
 0x3b0   :  { %2549 = vmatmul.mubr.f32.gmra.mxu0 %v6390_v16  ;;  %v6424_v16 = vpop.f32.mrf.mxu0 }
 0x3b1   :  { %4189 = vmatmul.mubr.msk.f32.gmra.mxu1 %vm417_vm0, %v6396_v9  ;;  %v1884_v22 = vpop.f32.mrf.mxu1  ;;  %2554 = vmatprep.mubr.f32.mxu0 %v6398_v46  ;;  %v6422_v46 = vld [vmem:[#allocation2 + $0x618] sm:$0xff]  ;;  %v6459_v9 = vld [vmem:[#allocation2 + $0x668] sm:$0xff] }
 0x3b2   :  { %2835 = vmatprep.mubr.f32.mxu1 %v8146_v28  ;;  %8204 = vst [vmem:[#allocation65_spill] sm:$0xff] %v6422_v46  ;;  %8212 = vst [vmem:[#allocation76_spill] sm:$0xff] %v6459_v9 }
 0x3b3   :  { %v6416_v5 = vpop.f32.mrf.mxu1 }
 0x3b4   :  { %2555 = vmatmul.mubr.f32.gmra.mxu0 %v6407_v13  ;;  %v6439_v13 = vpop.f32.mrf.mxu0 }
 0x3b5   :  { %4190 = vmatmul.mubr.msk.f32.gmra.mxu1 %vm417_vm0, %v6412_v35  ;;  %v1889_v22 = vpop.f32.mrf.mxu1  ;;  %2560 = vmatprep.mubr.f32.mxu0 %v6414_v60  ;;  %v6437_v60 = vld [vmem:[#allocation2 + $0x630] sm:$0xff] }
 0x3b6   :  { %2841 = vmatprep.mubr.f32.mxu1 %v8146_v28  ;;  %8207 = vst [vmem:[#allocation68_spill] sm:$0xff] %v6437_v60  ;;  %v6444_v35 = vld [vmem:[#allocation2 + $0x650] sm:$0xff] }
 0x3b7   :  { %v6431_v14 = vpop.f32.mrf.mxu1  ;;  %8209 = vst [vmem:[#allocation71_spill] sm:$0xff] %v6444_v35 }
 0x3b8   :  { %2561 = vmatmul.mubr.f32.gmra.mxu0 %v6422_v46  ;;  %v6454_v46 = vpop.f32.mrf.mxu0 }
 0x3b9   :  { %4191 = vmatmul.mubr.msk.f32.gmra.mxu1 %vm417_vm0, %v6427_v29  ;;  %v1894_v22 = vpop.f32.mrf.mxu1  ;;  %2566 = vmatprep.mubr.f32.mxu0 %v6429_v4  ;;  %v6452_v4 = vld [vmem:[#allocation2 + $0x648] sm:$0xff]  ;;  %v6457_v29 = vld [vmem:[#allocation2 + $0x5f8] sm:$0xff] }
 0x3ba   :  { %2847 = vmatprep.mubr.f32.mxu1 %v8146_v28  ;;  %8210 = vst [vmem:[#allocation73_spill] sm:$0xff] %v6452_v4  ;;  %8211 = vst [vmem:[#allocation74_spill] sm:$0xff] %v6457_v29 }
 0x3bb   :  { %v6446_v18 = vpop.f32.mrf.mxu1 }
 0x3bc   :  { %2567 = vmatmul.mubr.f32.gmra.mxu0 %v6437_v60 }
 0x3bd   :  { %4192 = vmatmul.mubr.msk.f32.gmra.mxu1 %vm417_vm0, %v6442_v40  ;;  %v1899_v22 = vpop.f32.mrf.mxu1  ;;  %2572 = vmatprep.mubr.f32.mxu0 %v6444_v35  ;;  %v4494_v35 = vpop.f32.mrf.mxu0  ;;  %v6468_v40 = vld [vmem:[#allocation2 + $0x610] sm:$0xff] }
 0x3be   :  { %2853 = vmatprep.mubr.f32.mxu1 %v8146_v28  ;;  %v6465_v22 = vld [vmem:[#allocation2 + $0x660] sm:$0xff]  ;;  %8214 = vst [vmem:[#allocation79_spill] sm:$0xff] %v6468_v40 }
 0x3bf   :  { %v1902_v11 = vpop.f32.mrf.mxu1  ;;  %8213 = vst [vmem:[#allocation77_spill] sm:$0xff] %v6465_v22 }
 0x3c0   :  { %2573 = vmatmul.mubr.f32.gmra.mxu0 %v6452_v4 }
 0x3c1   :  { %4193 = vmatmul.mubr.msk.f32.gmra.mxu1 %vm417_vm0, %v6457_v29  ;;  %v1904_v60 = vpop.f32.mrf.mxu1  ;;  %2578 = vmatprep.mubr.f32.mxu0 %v6459_v9  ;;  %v2167_v9 = vpop.f32.mrf.mxu0  ;;  %v6479_v29 = vld [vmem:[#allocation2 + $0x628] sm:$0xff] }
 0x3c2   :  { %2859 = vmatprep.mubr.f32.mxu1 %v8146_v28  ;;  %v6476_v60 = vld [vmem:[#allocation2 + $0x678] sm:$0xff]  ;;  %8217 = vst [vmem:[#allocation83_spill] sm:$0xff] %v6479_v29 }
 0x3c3   :  { %v1907_v47 = vpop.f32.mrf.mxu1  ;;  %8216 = vst [vmem:[#allocation82_spill] sm:$0xff] %v6476_v60 }
 0x3c4   :  { %2579 = vmatmul.mubr.f32.gmra.mxu0 %v6465_v22 }
 0x3c5   :  { %4194 = vmatmul.mubr.msk.f32.gmra.mxu1 %vm417_vm0, %v6468_v40  ;;  %v1909_v4 = vpop.f32.mrf.mxu1  ;;  %2584 = vmatprep.mubr.f32.mxu0 %v6470_v3  ;;  %v4497_v3 = vpop.f32.mrf.mxu0  ;;  %v6490_v40 = vld [vmem:[#allocation2 + $0x640] sm:$0xff] }
 0x3c6   :  { %2865 = vmatprep.mubr.f32.mxu1 %v8146_v28  ;;  %v6487_v4 = vld [vmem:[#allocation2 + $0x690] sm:$0xff] }
 0x3c7   :  { %v1912_v44 = vpop.f32.mrf.mxu1 }
 0x3c8   :  { %2585 = vmatmul.mubr.f32.gmra.mxu0 %v6476_v60 }
 0x3c9   :  { %4195 = vmatmul.mubr.msk.f32.gmra.mxu1 %vm417_vm0, %v6479_v29  ;;  %v1914_v22 = vpop.f32.mrf.mxu1  ;;  %2590 = vmatprep.mubr.f32.mxu0 %v6481_v43  ;;  %v2177_v43 = vpop.f32.mrf.mxu0  ;;  %v6501_v29 = vld [vmem:[#allocation2 + $0x658] sm:$0xff] }
 0x3ca   :  { %2871 = vmatprep.mubr.f32.mxu1 %v8146_v28  ;;  %v6498_v22 = vld [vmem:[#allocation2 + $0x6a8] sm:$0xff]  ;;  %v2178_v25 = vadd.f32 %v2177_v43, %v1912_v44  ;;  %v6515_v44 = vld [vmem:[#allocation2 + $0x670] sm:$0xff]  ;;  %v2168_v43 = vadd.f32 %v2167_v9, %v1902_v11  ;;  %v6528_v11 = vld [vmem:[#allocation2 + $0x6d8] sm:$0xff] }
 0x3cb   :  { %v1917_v10 = vpop.f32.mrf.mxu1  ;;  %v6532_v9 = vld [vmem:[#allocation2 + $0x688] sm:$0xff] }
 0x3cc   :  { %v2183_v53 = vadd.f32 %v4497_v3, %v1917_v10  ;;  %2591 = vmatmul.mubr.f32.gmra.mxu0 %v6487_v4  ;;  %v6506_v10 = vld [vmem:[#allocation2 + $0x6c8] sm:$0xff]  ;;  %v2173_v3 = vadd.f32 %v4494_v35, %v1907_v47  ;;  %v6520_v47 = vld [vmem:[#allocation2 + $0x6e0] sm:$0xff] }
 0x3cd   :  { %4196 = vmatmul.mubr.msk.f32.gmra.mxu1 %vm417_vm0, %v6490_v40  ;;  %v1919_v60 = vpop.f32.mrf.mxu1  ;;  %2596 = vmatprep.mubr.f32.mxu0 %v6492_v21 }
 0x3ce   :  { %2989 = vmatpush2.msra.mxu0 %v2183_v53  ;;  %2877 = vmatprep.mubr.f32.mxu1 %v8146_v28  ;;  %v6511_v53 = vld [vmem:[#allocation2 + $0x6c0] sm:$0xff] }
 0x3cf   :  { %v6503_v49 = vpop.f32.mrf.mxu1  ;;  %2990 = vmatprep.subr.mxu0 %v8146_v28 }
 0x3d0   :  { %2597 = vmatmul.mubr.f32.gmra.mxu0 %v6498_v22 }
 0x3d1   :  { %4197 = vmatmul.mubr.msk.f32.gmra.mxu1 %vm417_vm0, %v6501_v29  ;;  %2991 = vmatpush2.msra.mxu0 %v2178_v25  ;;  %v1924_v60 = vpop.f32.mrf.mxu1  ;;  %v2163_v25 = vadd.f32 %v6439_v13, %v6446_v18  ;;  %v6539_v18 = vld [vmem:[#allocation2 + $0x6f8] sm:$0xff]  ;;  %v2153_v13 = vadd.f32 %v6409_v62, %v6416_v5  ;;  %v6558_v5 = vld [vmem:[#allocation2 + $0x710] sm:$0xff]  ;;  %v2143_v62 = vadd.f32 %v6373_v20, %v6381_v33  ;;  %v6577_v20 = vld [vmem:[#allocation2 + $0x728] sm:$0xff] }
 0x3d2   :  { %2992 = vmatprep.subr.mxu0 %v8146_v28  ;;  %2602 = vmatprep.mubr.f32.mxu0 %v6506_v10  ;;  %v2133_v33 = vadd.f32 %v6331_v63, %v6339_v27  ;;  %v6596_v63 = vld [vmem:[#allocation2 + $0x740] sm:$0xff]  ;;  %v2123_v27 = vadd.f32 %v6289_v37, %v6297_v55  ;;  %v6613_v37 = vld [vmem:[#allocation2 + $0x758] sm:$0xff]  ;;  %v2113_v55 = vadd.f32 %v6250_v56, %v6256_v58  ;;  %v6630_v58 = vld [vmem:[#allocation2 + $0x770] sm:$0xff] }
 0x3d3   :  { %2993 = vmatpush2.msra.mxu0 %v2173_v3  ;;  %v6517_v21 = vpop.f32.mrf.mxu1  ;;  %2883 = vmatprep.mubr.f32.mxu1 %v8146_v28  ;;  %v2158_v3 = vadd.f32 %v6454_v46, %v6431_v14  ;;  %v6547_v14 = vld [vmem:[#allocation2 + $0x6f0] sm:$0xff]  ;;  %v6551_v46 = vld [vmem:[#allocation2 + $0x6a0] sm:$0xff]  ;;  %8220 = vst [vmem:[#allocation66_spill] sm:$0xff] %v6596_v63  ;;  %8222 = vst [vmem:[#allocation72_spill] sm:$0xff] %v6613_v37 }
 0x3d4   :  { %2994 = vmatprep.subr.mxu0 %v8146_v28  ;;  %2603 = vmatmul.mubr.f32.gmra.mxu0 %v6511_v53  ;;  %8224 = vst [vmem:[#allocation78_spill] sm:$0xff] %v6630_v58 }
 0x3d5   :  { %4198 = vmatmul.mubr.msk.f32.gmra.mxu1 %vm417_vm0, %v6515_v44  ;;  %2995 = vmatpush2.msra.mxu0 %v2168_v43  ;;  %v1929_v35 = vpop.f32.mrf.mxu1 }
 0x3d6   :  { %2996 = vmatprep.subr.mxu0 %v8146_v28  ;;  %2608 = vmatprep.mubr.f32.mxu0 %v6520_v47 }
 0x3d7   :  { %2997 = vmatpush2.msra.mxu0 %v2163_v25  ;;  %v6536_v60 = vpop.f32.mrf.mxu1  ;;  %2889 = vmatprep.mubr.f32.mxu1 %v8146_v28  ;;  %v2148_v25 = vadd.f32 %v6424_v16, %v6400_v12  ;;  %v6566_v16 = vld [vmem:[#allocation2 + $0x708] sm:$0xff]  ;;  %v6570_v12 = vld [vmem:[#allocation2 + $0x6b8] sm:$0xff] }
 0x3d8   :  { %2998 = vmatprep.subr.mxu0 %v8146_v28  ;;  %2609 = vmatmul.mubr.f32.gmra.mxu0 %v6528_v11 }
 0x3d9   :  { %4199 = vmatmul.mubr.msk.f32.gmra.mxu1 %vm417_vm0, %v6532_v9  ;;  %2999 = vmatpush2.msra.mxu0 %v2158_v3  ;;  %v1934_v43 = vpop.f32.mrf.mxu1 }
 0x3da   :  { %3000 = vmatprep.subr.mxu0 %v8146_v28  ;;  %2614 = vmatprep.mubr.f32.mxu0 %v6539_v18 }
 0x3db   :  { %3001 = vmatpush2.msra.mxu0 %v2153_v13  ;;  %v6555_v35 = vpop.f32.mrf.mxu1  ;;  %2895 = vmatprep.mubr.f32.mxu1 %v8146_v28  ;;  %v2138_v13 = vadd.f32 %v6392_v24, %v6360_v8  ;;  %v6585_v8 = vld [vmem:[#allocation2 + $0x720] sm:$0xff]  ;;  %v6589_v24 = vld [vmem:[#allocation2 + $0x6d0] sm:$0xff] }
 0x3dc   :  { %3002 = vmatprep.subr.mxu0 %v8146_v28  ;;  %2615 = vmatmul.mubr.f32.gmra.mxu0 %v6547_v14 }
 0x3dd   :  { %4200 = vmatmul.mubr.msk.f32.gmra.mxu1 %vm417_vm0, %v6551_v46  ;;  %3003 = vmatpush2.msra.mxu0 %v2148_v25  ;;  %v1939_v3 = vpop.f32.mrf.mxu1 }
 0x3de   :  { %3004 = vmatprep.subr.mxu0 %v8146_v28  ;;  %2620 = vmatprep.mubr.f32.mxu0 %v6558_v5 }
 0x3df   :  { %3005 = vmatpush2.msra.mxu0 %v2143_v62  ;;  %v6574_v43 = vpop.f32.mrf.mxu1  ;;  %2901 = vmatprep.mubr.f32.mxu1 %v8146_v28  ;;  %v2128_v62 = vadd.f32 %v6352_v45, %v6318_v54  ;;  %v6604_v54 = vld [vmem:[#allocation2 + $0x738] sm:$0xff]  ;;  %v6608_v45 = vld [vmem:[#allocation2 + $0x6e8] sm:$0xff] }
 0x3e0   :  { %3006 = vmatprep.subr.mxu0 %v8146_v28  ;;  %2621 = vmatmul.mubr.f32.gmra.mxu0 %v6566_v16  ;;  %8221 = vst [vmem:[#allocation69_spill] sm:$0xff] %v6604_v54 }
 0x3e1   :  { %4201 = vmatmul.mubr.msk.f32.gmra.mxu1 %vm417_vm0, %v6570_v12  ;;  %3007 = vmatpush2.msra.mxu0 %v2138_v13  ;;  %v1944_v25 = vpop.f32.mrf.mxu1 }
 0x3e2   :  { %3008 = vmatprep.subr.mxu0 %v8146_v28  ;;  %2626 = vmatprep.mubr.f32.mxu0 %v6577_v20 }
 0x3e3   :  { %3009 = vmatpush2.msra.mxu0 %v2133_v33  ;;  %v6593_v3 = vpop.f32.mrf.mxu1  ;;  %2907 = vmatprep.mubr.f32.mxu1 %v8146_v28  ;;  %v2118_v33 = vadd.f32 %v6310_v50, %v6276_v15  ;;  %v6625_v15 = vld [vmem:[#allocation2 + $0x700] sm:$0xff]  ;;  %v2108_v50 = vadd.f32 %v6268_v51, %v6241_v0  ;;  %v6640_v0 = vld [vmem:[#allocation2 + $0x718] sm:$0xff] }
 0x3e4   :  { %3010 = vmatprep.subr.mxu0 %v8146_v28  ;;  %2627 = vmatmul.mubr.f32.gmra.mxu0 %v6585_v8 }
 0x3e5   :  { %4202 = vmatmul.mubr.msk.f32.gmra.mxu1 %vm417_vm0, %v6589_v24  ;;  %3011 = vmatpush2.msra.mxu0 %v2128_v62  ;;  %v1949_v13 = vpop.f32.mrf.mxu1 }
 0x3e6   :  { %3012 = vmatprep.subr.mxu0 %v8146_v28  ;;  %2632 = vmatprep.mubr.f32.mxu0 %v6596_v63  ;;  %v6621_v13 = vld [vmem:[#allocation2 + $0x750] sm:$0xff]  ;;  %v6667_v63 = vld [vmem:[#allocation2 + $0x778] sm:$0xff] }
 0x3e7   :  { %3013 = vmatpush2.msra.mxu0 %v2123_v27  ;;  %v1952_v25 = vpop.f32.mrf.mxu1  ;;  %2913 = vmatprep.mubr.f32.mxu1 %v8146_v28  ;;  %8223 = vst [vmem:[#allocation75_spill] sm:$0xff] %v6621_v13 }
 0x3e8   :  { %3014 = vmatprep.subr.mxu0 %v8146_v28  ;;  %2633 = vmatmul.mubr.f32.gmra.mxu0 %v6604_v54 }
 0x3e9   :  { %4203 = vmatmul.mubr.msk.f32.gmra.mxu1 %vm417_vm0, %v6608_v45  ;;  %3015 = vmatpush2.msra.mxu0 %v2118_v33  ;;  %v1954_v62 = vpop.f32.mrf.mxu1  ;;  %v6636_v33 = vld [vmem:[#allocation2 + $0x768] sm:$0xff] }
 0x3ea   :  { %3016 = vmatprep.subr.mxu0 %v8146_v28  ;;  %2638 = vmatprep.mubr.f32.mxu0 %v6613_v37  ;;  %8225 = vst [vmem:[#allocation81_spill] sm:$0xff] %v6636_v33  ;;  %v4719_v62 = vld [vmem:[#allocation2 + $0x3c8] sm:$0xff] }
 0x3eb   :  { %3017 = vmatpush2.msra.mxu0 %v2113_v55  ;;  %v1957_v27 = vpop.f32.mrf.mxu1  ;;  %2919 = vmatprep.mubr.f32.mxu1 %v8146_v28 }
 0x3ec   :  { %3018 = vmatprep.subr.mxu0 %v8146_v28  ;;  %2639 = vmatmul.mubr.f32.gmra.mxu0 %v6621_v13 }
 0x3ed   :  { %4204 = vmatmul.mubr.msk.f32.gmra.mxu1 %vm417_vm0, %v6625_v15  ;;  %3019 = vmatpush2.msra.mxu0 %v2108_v50  ;;  %v1959_v56 = vpop.f32.mrf.mxu1  ;;  %v6646_v50 = vld [vmem:[#allocation2 + $0x730] sm:$0xff] }
 0x3ee   :  { %2644 = vmatprep.mubr.f32.mxu0 %v6630_v58  ;;  %2925 = vmatprep.mubr.f32.mxu1 %v8146_v28 }
 0x3ef   :  { %v4500_v51 = vpop.f32.mrf.mxu1 }
 0x3f0   :  { %2645 = vmatmul.mubr.f32.gmra.mxu0 %v6636_v33  ;;  %v6653_v33 = vld [vmem:[#allocation2 + $0x748] sm:$0xff] }
 0x3f1   :  { %4205 = vmatmul.mubr.msk.f32.gmra.mxu1 %vm417_vm0, %v6640_v0  ;;  %v2187_v55 = vpop.f32.mrf.mxu1  ;;  %3020 = vmatprep.mubr.f32.mxu0 %v4719_v62 }
 0x3f2   :  { %2931 = vmatprep.mubr.f32.mxu1 %v8146_v28 }
 0x3f3   :  { %v4503_v56 = vpop.f32.mrf.mxu1 }
 0x3f4   :  { %3021 = vmatmul.mubr.f32.vlgmr.msra.gmra.mxu0 %v6023_v52  ;;  %v6660_v52 = vld [vmem:[#allocation2 + $0x760] sm:$0xff] }
 0x3f5   :  { %4206 = vmatmul.mubr.msk.f32.gmra.mxu1 %vm417_vm0, %v6646_v50  ;;  %v2197_v58 = vpop.f32.mrf.mxu1  ;;  %3025 = vmatprep.mubr.f32.mxu0 %v6025_v57 }
 0x3f6   :  { %2937 = vmatprep.mubr.f32.mxu1 %v8146_v28 }
 0x3f7   :  { %v4506_v13 = vpop.f32.mrf.mxu1 }
 0x3f8   :  { %3026 = vmatmul.mubr.f32.gmra.mxu0 %v6034_v34 }
 0x3f9   :  { %4207 = vmatmul.mubr.msk.f32.gmra.mxu1 %vm417_vm0, %v6653_v33  ;;  %v2207_v62 = vpop.f32.mrf.mxu1  ;;  %3030 = vmatprep.mubr.f32.mxu0 %v6038_v39  ;;  %v2213_v39 = vadd.f32 %v4506_v13, %v6593_v3  ;;  %v8238_v3 = vld [vmem:[#allocation13_spill] sm:$0xff] }
 0x3fa   :  { %2943 = vmatprep.mubr.f32.mxu1 %v8146_v28 }
 0x3fb   :  { %v4509_v37 = vpop.f32.mrf.mxu1 }
 0x3fc   :  { %v2223_v54 = vadd.f32 %v4509_v37, %v1957_v27  ;;  %3031 = vmatmul.mubr.f32.gmra.mxu0 %v6048_v2  ;;  %v2208_v2 = vadd.f32 %v2207_v62, %v6574_v43  ;;  %v8237_v43 = vld [vmem:[#allocation29_spill] sm:$0xff]  ;;  %v8240_v27 = vld [vmem:[#allocation15_spill] sm:$0xff] }
 0x3fd   :  { %4208 = vmatmul.mubr.msk.f32.gmra.mxu1 %vm417_vm0, %v6660_v52  ;;  %v2217_v57 = vpop.f32.mrf.mxu1  ;;  %3035 = vmatprep.mubr.f32.mxu0 %v6054_v61  ;;  %v2198_v61 = vadd.f32 %v2197_v58, %v6536_v60  ;;  %v8241_v58 = vld [vmem:[#allocation38_spill] sm:$0xff] }
 0x3fe   :  { %v2218_v34 = vadd.f32 %v2217_v57, %v1952_v25  ;;  %4510 = vmatprep.subr.mxu1 %v2223_v54  ;;  %2949 = vmatprep.mubr.f32.mxu1 %v8146_v28  ;;  %v2203_v28 = vadd.f32 %v4503_v56, %v6555_v35  ;;  %v8236_v35 = vld [vmem:[#allocation57_spill] sm:$0xff]  ;;  %v8239_v25 = vld [vmem:[#allocation34_spill] sm:$0xff] }
 0x3ff   :  { %4511 = vmatpush3.msra.mxu1 %v2223_v54 }
 0x400   :  { %3036 = vmatmul.mubr.f32.gmra.mxu0 %v6066_v1  ;;  %4512 = vmatprep.subr.mxu1 %v2218_v34  ;;  %v2193_v1 = vadd.f32 %v4500_v51, %v6517_v21  ;;  %v8235_v21 = vld [vmem:[#allocation23_spill] sm:$0xff] }
 0x401   :  { %4209 = vmatmul.mubr.msk.f32.gmra.mxu1 %vm417_vm0, %v6667_v63  ;;  %3040 = vmatprep.mubr.f32.mxu0 %v6072_v41  ;;  %v2188_v41 = vadd.f32 %v2187_v55, %v6503_v49  ;;  %v8242_v55 = vld [vmem:[#allocation19_spill] sm:$0xff] }
 0x402   :  { %4513 = vmatpush3.msra.mxu1 %v2218_v34  ;;  %4526 = vmatprep.mubr.msk.f32.mxu1 %vm417_vm0, %v6086_v31  ;;  %v8226_v31 = vld [vmem:[#allocation45_spill] sm:$0xff]  ;;  %v8243_v34 = vld [vmem:[#allocation43_spill] sm:$0xff] }
 0x403   :  { %4514 = vmatprep.subr.mxu1 %v2213_v39 }
 0x404   :  { %4515 = vmatpush3.msra.mxu1 %v2213_v39  ;;  %3041 = vmatmul.mubr.f32.gmra.mxu0 %v6084_v32 }
 0x405   :  { %4516 = vmatprep.subr.mxu1 %v2208_v2  ;;  %3045 = vmatprep.mubr.f32.mxu0 %v6090_v7 }
 0x406   :  { %4517 = vmatpush3.msra.mxu1 %v2208_v2 }
 0x407   :  { %4518 = vmatprep.subr.mxu1 %v2203_v28 }
 0x408   :  { %4519 = vmatpush3.msra.mxu1 %v2203_v28  ;;  %3046 = vmatmul.mubr.f32.gmra.mxu0 %v6099_v19  ;;  %v8227_v19 = vld [vmem:[#allocation35_spill] sm:$0xff]  ;;  %v8244_v28 = vld [vmem:[#allocation21_spill] sm:$0xff] }
 0x409   :  { %4520 = vmatprep.subr.mxu1 %v2198_v61  ;;  %3050 = vmatprep.mubr.f32.mxu0 %v6105_v38  ;;  %v8228_v38 = vld [vmem:[#allocation48_spill] sm:$0xff] }
 0x40a   :  { %4521 = vmatpush3.msra.mxu1 %v2198_v61  ;;  %v8245_v61 = vld [vmem:[#allocation47_spill] sm:$0xff] }
 0x40b   :  { %4522 = vmatprep.subr.mxu1 %v2193_v1 }
 0x40c   :  { %4523 = vmatpush3.msra.mxu1 %v2193_v1  ;;  %3051 = vmatmul.mubr.f32.gmra.mxu0 %v6114_v6  ;;  %v8229_v6 = vld [vmem:[#allocation54_spill] sm:$0xff] }
 0x40d   :  { %4524 = vmatprep.subr.mxu1 %v2188_v41  ;;  %3055 = vmatprep.mubr.f32.mxu0 %v6120_v36 }
 0x40e   :  { %4525 = vmatpush3.msra.mxu1 %v2188_v41  ;;  %v8246_v41 = vld [vmem:[#allocation25_spill] sm:$0xff] }
 0x40f   :  { %4527 = vmatmul.mubr.msk.f32.vlgmr.msra.gmra.mxu1 %vm417_vm0, %v6101_v48 }
 0x410   :  { %3056 = vmatmul.mubr.f32.gmra.mxu0 %v6129_v23  ;;  %4529 = vmatprep.mubr.msk.f32.mxu1 %vm417_vm0, %v6116_v59  ;;  %v8230_v59 = vld [vmem:[#allocation51_spill] sm:$0xff] }
 0x411   :  { %3060 = vmatprep.mubr.f32.mxu0 %v6135_v17  ;;  %v8231_v23 = vld [vmem:[#allocation11_spill] sm:$0xff] }
 0x412   :  { %v8232_v17 = vld [vmem:[#allocation7_spill] sm:$0xff] }
 0x413   :  { %4530 = vmatmul.mubr.msk.f32.gmra.mxu1 %vm417_vm0, %v6131_v30 }
 0x414   :  { %v2412_v32 = vpop.f32.mrf.mxu0  ;;  %3061 = vmatmul.mubr.f32.gmra.mxu0 %v6144_v26  ;;  %4532 = vmatprep.mubr.msk.f32.mxu1 %vm417_vm0, %v6146_v42  ;;  %v8233_v26 = vld [vmem:[#allocation17_spill] sm:$0xff] }
 0x415   :  { %3065 = vmatprep.mubr.f32.mxu0 %v8226_v31  ;;  %v8234_v42 = vld [vmem:[#allocation9_spill] sm:$0xff] }
 0x416   :  { %v2414_v7 = vpop.f32.mrf.mxu0 }
 0x417   :  { %4533 = vmatmul.mubr.msk.f32.gmra.mxu1 %vm417_vm0, %v8227_v19 }
 0x418   :  { %v2418_v48 = vpop.f32.mrf.mxu0  ;;  %3066 = vmatmul.mubr.f32.gmra.mxu0 %v8228_v38  ;;  %4535 = vmatprep.mubr.msk.f32.mxu1 %vm417_vm0, %v8229_v6 }
 0x419   :  { %3070 = vmatprep.mubr.f32.mxu0 %v8230_v59  ;;  %v8248_v59 = vld [vmem:[#allocation27_spill] sm:$0xff] }
 0x41a   :  { %v2420_v36 = vpop.f32.mrf.mxu0 }
 0x41b   :  { %4536 = vmatmul.mubr.msk.f32.gmra.mxu1 %vm417_vm0, %v8231_v23  ;;  %v8249_v23 = vld [vmem:[#allocation56_spill] sm:$0xff] }
 0x41c   :  { %v2424_v30 = vpop.f32.mrf.mxu0  ;;  %3071 = vmatmul.mubr.f32.gmra.mxu0 %v8232_v17  ;;  %4538 = vmatprep.mubr.msk.f32.mxu1 %vm417_vm0, %v8233_v26 }
 0x41d   :  { %3075 = vmatprep.mubr.f32.mxu0 %v8234_v42 }
 0x41e   :  { %v2426_v49 = vpop.f32.mrf.mxu0 }
 0x41f   :  { %4539 = vmatmul.mubr.msk.f32.gmra.mxu1 %vm417_vm0, %v8235_v21 }
 0x420   :  { %v2430_v60 = vpop.f32.mrf.mxu0  ;;  %3076 = vmatmul.mubr.f32.gmra.mxu0 %v8236_v35  ;;  %4541 = vmatprep.mubr.msk.f32.mxu1 %vm417_vm0, %v8237_v43 }
 0x421   :  { %3080 = vmatprep.mubr.f32.mxu0 %v8238_v3  ;;  %v8252_v3 = vld [vmem:[#allocation33_spill] sm:$0xff] }
 0x422   :  { %v2432_v54 = vpop.f32.mrf.mxu0 }
 0x423   :  { %4542 = vmatmul.mubr.msk.f32.gmra.mxu1 %vm417_vm0, %v8239_v25  ;;  %v8253_v25 = vld [vmem:[#allocation14_spill] sm:$0xff] }
 0x424   :  { %v2436_v37 = vpop.f32.mrf.mxu0  ;;  %v2717_v13 = vpop.f32.mrf.mxu1  ;;  %3081 = vmatmul.mubr.f32.gmra.mxu0 %v8240_v27  ;;  %4544 = vmatprep.mubr.msk.f32.mxu1 %vm417_vm0, %v8241_v58 }
 0x425   :  { %v6722_v51 = vadd.f32 %v2717_v13, %v2412_v32  ;;  %3085 = vmatprep.mubr.f32.mxu0 %v8242_v55 }
 0x426   :  { %v2438_v56 = vpop.f32.mrf.mxu0  ;;  %v2719_v62 = vpop.f32.mrf.mxu1 }
 0x427   :  { %v6725_v57 = vadd.f32 %v2719_v62, %v2414_v7  ;;  %4545 = vmatmul.mubr.msk.f32.gmra.mxu1 %vm417_vm0, %v8243_v34  ;;  %v8247_v7 = vld [vmem:[#allocation52_spill] sm:$0xff] }
 0x428   :  { %v2442_v39 = vpop.f32.mrf.mxu0  ;;  %v2723_v2 = vpop.f32.mrf.mxu1  ;;  %3086 = vmatmul.mubr.f32.gmra.mxu0 %v8244_v28  ;;  %4547 = vmatprep.mubr.msk.f32.mxu1 %vm417_vm0, %v8245_v61  ;;  %v8257_v28 = vld [vmem:[#allocation64_spill] sm:$0xff] }
 0x429   :  { %v6732_v1 = vadd.f32 %v2723_v2, %v2418_v48  ;;  %3090 = vmatprep.mubr.f32.mxu0 %v8246_v41  ;;  %v8250_v48 = vld [vmem:[#allocation31_spill] sm:$0xff]  ;;  %v8256_v2 = vld [vmem:[#allocation37_spill] sm:$0xff] }
 0x42a   :  { %v2444_v32 = vpop.f32.mrf.mxu0  ;;  %v2725_v31 = vpop.f32.mrf.mxu1 }
 0x42b   :  { %v6735_v19 = vadd.f32 %v2725_v31, %v2420_v36  ;;  %4548 = vmatmul.mubr.msk.f32.gmra.mxu1 %vm417_vm0, %v8247_v7  ;;  %v8251_v36 = vld [vmem:[#allocation16_spill] sm:$0xff] }
 0x42c   :  { %v2448_v38 = vpop.f32.mrf.mxu0  ;;  %v2729_v6 = vpop.f32.mrf.mxu1  ;;  %3091 = vmatmul.mubr.f32.gmra.mxu0 %v8248_v59  ;;  %4550 = vmatprep.mubr.msk.f32.mxu1 %vm417_vm0, %v8249_v23  ;;  %v8260_v23 = vld [vmem:[#allocation41_spill] sm:$0xff] }
 0x42d   :  { %v6742_v17 = vadd.f32 %v2729_v6, %v2424_v30  ;;  %3095 = vmatprep.mubr.f32.mxu0 %v8250_v48  ;;  %v8254_v30 = vld [vmem:[#allocation36_spill] sm:$0xff]  ;;  %v8261_v48 = vld [vmem:[#allocation70_spill] sm:$0xff] }
 0x42e   :  { %v2450_v26 = vpop.f32.mrf.mxu0  ;;  %v2731_v42 = vpop.f32.mrf.mxu1 }
 0x42f   :  { %v6745_v21 = vadd.f32 %v2731_v42, %v2426_v49  ;;  %4551 = vmatmul.mubr.msk.f32.gmra.mxu1 %vm417_vm0, %v8251_v36  ;;  %v8255_v49 = vld [vmem:[#allocation18_spill] sm:$0xff] }
 0x430   :  { %v2454_v35 = vpop.f32.mrf.mxu0  ;;  %v2735_v43 = vpop.f32.mrf.mxu1  ;;  %3096 = vmatmul.mubr.f32.gmra.mxu0 %v8252_v3  ;;  %4553 = vmatprep.mubr.msk.f32.mxu1 %vm417_vm0, %v8253_v25 }
 0x431   :  { %v6752_v13 = vadd.f32 %v2735_v43, %v2430_v60  ;;  %3100 = vmatprep.mubr.f32.mxu0 %v8254_v30  ;;  %v8258_v60 = vld [vmem:[#allocation40_spill] sm:$0xff] }
 0x432   :  { %v2456_v27 = vpop.f32.mrf.mxu0  ;;  %v2737_v58 = vpop.f32.mrf.mxu1 }
 0x433   :  { %v6755_v55 = vadd.f32 %v2737_v58, %v2432_v54  ;;  %4554 = vmatmul.mubr.msk.f32.gmra.mxu1 %vm417_vm0, %v8255_v49  ;;  %v8259_v54 = vld [vmem:[#allocation8_spill] sm:$0xff]  ;;  %v8264_v58 = vld [vmem:[#allocation46_spill] sm:$0xff]  ;;  %v8265_v49 = vld [vmem:[#allocation79_spill] sm:$0xff] }
 0x434   :  { %v2460_v62 = vpop.f32.mrf.mxu0  ;;  %v2741_v34 = vpop.f32.mrf.mxu1  ;;  %3101 = vmatmul.mubr.f32.gmra.mxu0 %v8256_v2  ;;  %4556 = vmatprep.mubr.msk.f32.mxu1 %vm417_vm0, %v8257_v28 }
 0x435   :  { %v6762_v61 = vadd.f32 %v2741_v34, %v2436_v37  ;;  %3105 = vmatprep.mubr.f32.mxu0 %v8258_v60  ;;  %v8262_v37 = vld [vmem:[#allocation44_spill] sm:$0xff] }
 0x436   :  { %v2462_v41 = vpop.f32.mrf.mxu0  ;;  %v2743_v31 = vpop.f32.mrf.mxu1 }
 0x437   :  { %v6765_v7 = vadd.f32 %v2743_v31, %v2438_v56  ;;  %4557 = vmatmul.mubr.msk.f32.gmra.mxu1 %vm417_vm0, %v8259_v54  ;;  %v8263_v56 = vld [vmem:[#allocation74_spill] sm:$0xff] }
 0x438   :  { %v2466_v6 = vpop.f32.mrf.mxu0  ;;  %v2747_v59 = vpop.f32.mrf.mxu1  ;;  %3106 = vmatmul.mubr.f32.gmra.mxu0 %v8260_v23  ;;  %4559 = vmatprep.mubr.msk.f32.mxu1 %vm417_vm0, %v8261_v48 }
 0x439   :  { %v6772_v42 = vadd.f32 %v2747_v59, %v2442_v39  ;;  %3110 = vmatprep.mubr.f32.mxu0 %v8262_v37  ;;  %v8266_v39 = vld [vmem:[#allocation49_spill] sm:$0xff]  ;;  %v8268_v59 = vld [vmem:[#allocation50_spill] sm:$0xff] }
 0x43a   :  { %v2468_v36 = vpop.f32.mrf.mxu0  ;;  %v2749_v43 = vpop.f32.mrf.mxu1 }
 0x43b   :  { %v6775_v3 = vadd.f32 %v2749_v43, %v2444_v32  ;;  %4560 = vmatmul.mubr.msk.f32.gmra.mxu1 %vm417_vm0, %v8263_v56  ;;  %v8267_v32 = vld [vmem:[#allocation83_spill] sm:$0xff] }
 0x43c   :  { %v2472_v25 = vpop.f32.mrf.mxu0  ;;  %v2753_v30 = vpop.f32.mrf.mxu1  ;;  %3111 = vmatmul.mubr.f32.gmra.mxu0 %v8264_v58  ;;  %4562 = vmatprep.mubr.msk.f32.mxu1 %vm417_vm0, %v8265_v49 }
 0x43d   :  { %v6782_v34 = vadd.f32 %v2753_v30, %v2448_v38  ;;  %3115 = vmatprep.mubr.f32.mxu0 %v8266_v39  ;;  %v8269_v38 = vld [vmem:[#allocation53_spill] sm:$0xff]  ;;  %v8270_v30 = vld [vmem:[#allocation55_spill] sm:$0xff] }
 0x43e   :  { %v2474_v2 = vpop.f32.mrf.mxu0  ;;  %v2755_v28 = vpop.f32.mrf.mxu1 }
 0x43f   :  { %v6785_v60 = vadd.f32 %v2755_v28, %v2450_v26  ;;  %4563 = vmatmul.mubr.msk.f32.gmra.mxu1 %vm417_vm0, %v8267_v32  ;;  %v8274_v32 = vld [vmem:[#allocation59_spill] sm:$0xff] }
 0x440   :  { %v6789_v31 = vpop.f32.mrf.mxu0  ;;  %v2759_v54 = vpop.f32.mrf.mxu1  ;;  %3116 = vmatmul.mubr.f32.gmra.mxu0 %v8268_v59  ;;  %4565 = vmatprep.mubr.msk.f32.mxu1 %vm417_vm0, %v6490_v40  ;;  %v8277_v59 = vld [vmem:[#allocation61_spill] sm:$0xff] }
 0x441   :  { %v6794_v23 = vadd.f32 %v2759_v54, %v2454_v35  ;;  %3120 = vmatprep.mubr.f32.mxu0 %v8269_v38  ;;  %v8271_v35 = vld [vmem:[#allocation58_spill] sm:$0xff]  ;;  %v6829_v54 = vmul.f32 %v6725_v57, %v6725_v57 }
 0x442   :  { %v6797_v48 = vpop.f32.mrf.mxu0  ;;  %v2761_v37 = vpop.f32.mrf.mxu1 }
 0x443   :  { %v6799_v26 = vadd.f32 %v2761_v37, %v2456_v27  ;;  %4566 = vmatmul.mubr.msk.f32.gmra.mxu1 %vm417_vm0, %v6501_v29  ;;  %v6813_v27 = vmul.f32 %v6722_v51, %v6722_v51 }
 0x444   :  { %v6803_v43 = vpop.f32.mrf.mxu0  ;;  %v2765_v56 = vpop.f32.mrf.mxu1  ;;  %3121 = vmatmul.mubr.f32.gmra.mxu0 %v8270_v30  ;;  %4568 = vmatprep.mubr.msk.f32.mxu1 %vm417_vm0, %v6515_v44 }
 0x445   :  { %v2766_v40 = vadd.f32 %v2765_v56, %v2460_v62  ;;  %3125 = vmatprep.mubr.f32.mxu0 %v8271_v35 }
 0x446   :  { %v6809_v58 = vpop.f32.mrf.mxu0  ;;  %v2767_v49 = vpop.f32.mrf.mxu1 }
 0x447   :  { %v6815_v39 = vmul.f32 %v2766_v40, %v2766_v40  ;;  %v6818_v29 = vmul.f32 %v2766_v40, %v6722_v51  ;;  %v2768_v28 = vadd.f32 %v2767_v49, %v2462_v41  ;;  %4569 = vmatmul.mubr.msk.f32.gmra.mxu1 %vm417_vm0, %v6532_v9 }
 0x448   :  { %v6822_v44 = vpop.f32.mrf.mxu0  ;;  %v2771_v62 = vpop.f32.mrf.mxu1  ;;  %3126 = vmatmul.mubr.f32.gmra.mxu0 %v8274_v32  ;;  %4571 = vmatprep.mubr.msk.f32.mxu1 %vm417_vm0, %v6551_v46  ;;  %v6845_v46 = vmul.f32 %v6732_v1, %v6732_v1  ;;  %v8281_v32 = vld [vmem:[#allocation12_spill] sm:$0xff] }
 0x449   :  { %8272 = vst [vmem:[#allocation39_spill] sm:$0xff] %v6815_v39  ;;  %8273 = vst [vmem:[#allocation24_spill] sm:$0xff] %v6818_v29  ;;  %v6833_v51 = vadd.f32 %v6815_v39, %v6813_v27  ;;  %v6835_v41 = vmul.f32 %v2768_v28, %v2768_v28  ;;  %v6838_v9 = vmul.f32 %v2768_v28, %v6725_v57  ;;  %3130 = vmatprep.mubr.f32.mxu0 %v8277_v59  ;;  %v8280_v28 = vld [vmem:[#allocation22_spill] sm:$0xff] }
 0x44a   :  { %v2772_v38 = vadd.f32 %v2771_v62, %v2466_v6  ;;  %v6841_v37 = vpop.f32.mrf.mxu0  ;;  %v2773_v56 = vpop.f32.mrf.mxu1 }
 0x44b   :  { %8275 = vst [vmem:[#allocation42_spill] sm:$0xff] %v6835_v41  ;;  %8276 = vst [vmem:[#allocation30_spill] sm:$0xff] %v6838_v9  ;;  %v6849_v30 = vadd.f32 %v6835_v41, %v6829_v54  ;;  %4572 = vmatmul.mubr.msk.f32.gmra.mxu1 %vm417_vm0, %v6570_v12  ;;  %v2774_v6 = vadd.f32 %v2773_v56, %v2468_v36  ;;  %v6866_v12 = vmul.f32 %v6735_v19, %v6735_v19 }
 0x44c   :  { %v6853_v40 = vmul.f32 %v2772_v38, %v2772_v38  ;;  %v6856_v57 = vmul.f32 %v2772_v38, %v6732_v1  ;;  %v6858_v35 = vpop.f32.mrf.mxu0  ;;  %v2777_v49 = vpop.f32.mrf.mxu1  ;;  %3131 = vmatmul.mubr.f32.gmra.mxu0 %v8280_v28  ;;  %4574 = vmatprep.mubr.msk.f32.mxu1 %vm417_vm0, %v6589_v24  ;;  %v6881_v24 = vmul.f32 %v6742_v17, %v6742_v17 }
 0x44d   :  { %v2778_v62 = vadd.f32 %v2777_v49, %v2472_v25  ;;  %3135 = vmatprep.mubr.f32.mxu0 %v8281_v32  ;;  %8282 = vst [vmem:[#allocation26_spill] sm:$0xff] %v6866_v12  ;;  %v6872_v36 = vmul.f32 %v2774_v6, %v2774_v6  ;;  %v6875_v59 = vmul.f32 %v2774_v6, %v6735_v19 }
 0x44e   :  { %8278 = vst [vmem:[#allocation20_spill] sm:$0xff] %v6853_v40  ;;  %8279 = vst [vmem:[#allocation28_spill] sm:$0xff] %v6856_v57  ;;  %v6870_v1 = vadd.f32 %v6853_v40, %v6845_v46  ;;  %v6877_v38 = vpop.f32.mrf.mxu0  ;;  %v2779_v56 = vpop.f32.mrf.mxu1  ;;  %v8287_v40 = vld [vmem:[#allocation62_spill] sm:$0xff]  ;;  %v6918_v41 = vmul.f32 %v6752_v13, %v6752_v13 }
 0x44f   :  { %8283 = vst [vmem:[#allocation32_spill] sm:$0xff] %v6872_v36  ;;  %8284 = vst [vmem:[#allocation45_spill] sm:$0xff] %v6875_v59  ;;  %v6883_v25 = vmul.f32 %v2778_v62, %v2778_v62  ;;  %v6886_v49 = vmul.f32 %v2778_v62, %v6742_v17  ;;  %v2780_v28 = vadd.f32 %v2779_v56, %v2474_v2  ;;  %4575 = vmatmul.mubr.msk.f32.gmra.mxu1 %vm417_vm0, %v6608_v45  ;;  %v8291_v56 = vld [vmem:[#allocation6_spill] sm:$0xff] }
 0x450   :  { %v6892_v19 = vadd.f32 %v6872_v36, %v6866_v12  ;;  %v6894_v6 = vpop.f32.mrf.mxu0  ;;  %v2783_v32 = vpop.f32.mrf.mxu1  ;;  %3136 = vmatmul.mubr.f32.gmra.mxu0 %v8287_v40  ;;  %4577 = vmatprep.mubr.msk.f32.mxu1 %vm417_vm0, %v6625_v15  ;;  %v6901_v17 = vmul.f32 %v6745_v21, %v6745_v21 }
 0x451   :  { %8285 = vst [vmem:[#allocation35_spill] sm:$0xff] %v6883_v25  ;;  %8286 = vst [vmem:[#allocation48_spill] sm:$0xff] %v6886_v49  ;;  %v6905_v2 = vadd.f32 %v6883_v25, %v6881_v24  ;;  %v6907_v45 = vmul.f32 %v2780_v28, %v2780_v28  ;;  %v6910_v62 = vmul.f32 %v2780_v28, %v6745_v21  ;;  %3140 = vmatprep.mubr.f32.mxu0 %v8291_v56  ;;  %v8295_v56 = vld [vmem:[#allocation5_spill] sm:$0xff] }
 0x452   :  { %v2784_v40 = vadd.f32 %v2783_v32, %v6789_v31  ;;  %v6914_v36 = vpop.f32.mrf.mxu0  ;;  %v2785_v15 = vpop.f32.mrf.mxu1 }
 0x453   :  { %8288 = vst [vmem:[#allocation54_spill] sm:$0xff] %v6905_v2  ;;  %8289 = vst [vmem:[#allocation51_spill] sm:$0xff] %v6907_v45  ;;  %v6922_v25 = vadd.f32 %v6907_v45, %v6901_v17  ;;  %4578 = vmatmul.mubr.msk.f32.gmra.mxu1 %vm417_vm0, %v6640_v0  ;;  %v2786_v31 = vadd.f32 %v2785_v15, %v6797_v48  ;;  %v8296_v45 = vld [vmem:[#allocation10_spill] sm:$0xff]  ;;  %v6940_v0 = vmul.f32 %v6755_v55, %v6755_v55 }
 0x454   :  { %8290 = vst [vmem:[#allocation11_spill] sm:$0xff] %v6910_v62  ;;  %v6926_v21 = vmul.f32 %v2784_v40, %v2784_v40  ;;  %v6929_v28 = vmul.f32 %v2784_v40, %v6752_v13  ;;  %v6932_v32 = vpop.f32.mrf.mxu0  ;;  %3141 = vmatmul.mubr.f32.gmra.mxu0 %v8295_v56  ;;  %4580 = vmatprep.mubr.msk.f32.mxu1 %vm417_vm0, %v6646_v50 }
 0x455   :  { %8292 = vst [vmem:[#allocation7_spill] sm:$0xff] %v6922_v25  ;;  %v2789_v39 = vpop.f32.mrf.mxu1  ;;  %3145 = vmatprep.mubr.f32.mxu0 %v8296_v45  ;;  %v6946_v40 = vmul.f32 %v2786_v31, %v2786_v31  ;;  %v6949_v48 = vmul.f32 %v2786_v31, %v6755_v55  ;;  %v6967_v55 = vmul.f32 %v6762_v61, %v6762_v61 }
 0x456   :  { %8293 = vst [vmem:[#allocation17_spill] sm:$0xff] %v6926_v21  ;;  %8294 = vst [vmem:[#allocation9_spill] sm:$0xff] %v6929_v28  ;;  %v6944_v13 = vadd.f32 %v6926_v21, %v6918_v41  ;;  %v6951_v15 = vpop.f32.mrf.mxu0  ;;  %v2790_v50 = vadd.f32 %v2789_v39, %v6803_v43  ;;  %v8301_v21 = vld [vmem:[#allocation65_spill] sm:$0xff] }
 0x457   :  { %8298 = vst [vmem:[#allocation57_spill] sm:$0xff] %v6946_v40  ;;  %8299 = vst [vmem:[#allocation29_spill] sm:$0xff] %v6949_v48  ;;  %v2791_v56 = vpop.f32.mrf.mxu1  ;;  %4581 = vmatmul.mubr.msk.f32.gmra.mxu1 %vm417_vm0, %v6653_v33  ;;  %v6958_v45 = vadd.f32 %v6946_v40, %v6940_v0  ;;  %v8304_v40 = vld [vmem:[#allocation67_spill] sm:$0xff] }
 0x458   :  { %8297 = vst [vmem:[#allocation23_spill] sm:$0xff] %v6944_v13  ;;  %v6960_v25 = vpop.f32.mrf.mxu0  ;;  %3146 = vmatmul.mubr.f32.gmra.mxu0 %v8301_v21  ;;  %4583 = vmatprep.mubr.msk.f32.mxu1 %vm417_vm0, %v6660_v52  ;;  %v6969_v43 = vmul.f32 %v2790_v50, %v2790_v50  ;;  %v6972_v39 = vmul.f32 %v2790_v50, %v6762_v61 }
 0x459   :  { %8300 = vst [vmem:[#allocation13_spill] sm:$0xff] %v6958_v45  ;;  %v2792_v33 = vadd.f32 %v2791_v56, %v6809_v58  ;;  %v2795_v31 = vpop.f32.mrf.mxu1  ;;  %3150 = vmatprep.mubr.f32.mxu0 %v8304_v40  ;;  %v6981_v52 = vmul.f32 %v6765_v7, %v6765_v7 }
 0x45a   :  { %8302 = vst [vmem:[#allocation34_spill] sm:$0xff] %v6969_v43  ;;  %8303 = vst [vmem:[#allocation15_spill] sm:$0xff] %v6972_v39  ;;  %v2796_v45 = vadd.f32 %v2795_v31, %v6822_v44  ;;  %v6977_v21 = vpop.f32.mrf.mxu0  ;;  %v6985_v13 = vadd.f32 %v6969_v43, %v6967_v55  ;;  %v6996_v44 = vmul.f32 %v6772_v42, %v6772_v42  ;;  %v8310_v43 = vld [vmem:[#allocation68_spill] sm:$0xff] }
 0x45b   :  { %v6987_v2 = vmul.f32 %v2792_v33, %v2792_v33  ;;  %v6990_v61 = vmul.f32 %v2792_v33, %v6765_v7  ;;  %v2797_v58 = vpop.f32.mrf.mxu1  ;;  %4584 = vmatmul.mubr.msk.f32.gmra.mxu1 %vm417_vm0, %v6667_v63  ;;  %v8312_v63 = vld [vmem:[#allocation71_spill] sm:$0xff] }
 0x45c   :  { %8305 = vst [vmem:[#allocation38_spill] sm:$0xff] %v6985_v13  ;;  %v6998_v40 = vmul.f32 %v2796_v45, %v2796_v45  ;;  %v7001_v50 = vmul.f32 %v2796_v45, %v6772_v42  ;;  %v2798_v56 = vadd.f32 %v2797_v58, %v6841_v37  ;;  %v2520_v31 = vpop.f32.mrf.mxu0  ;;  %3151 = vmatmul.mubr.f32.gmra.mxu0 %v8310_v43 }
 0x45d   :  { %8306 = vst [vmem:[#allocation19_spill] sm:$0xff] %v6987_v2  ;;  %8307 = vst [vmem:[#allocation43_spill] sm:$0xff] %v6990_v61  ;;  %v7007_v7 = vadd.f32 %v6987_v2, %v6981_v52  ;;  %v2801_v33 = vpop.f32.mrf.mxu1  ;;  %3155 = vmatprep.mubr.f32.mxu0 %v8312_v63  ;;  %v7012_v13 = vmul.f32 %v6775_v3, %v6775_v3 }
 0x45e   :  { %8308 = vst [vmem:[#allocation21_spill] sm:$0xff] %v6998_v40  ;;  %8309 = vst [vmem:[#allocation47_spill] sm:$0xff] %v7001_v50  ;;  %v7016_v42 = vadd.f32 %v6998_v40, %v6996_v44  ;;  %v7018_v45 = vmul.f32 %v2798_v56, %v2798_v56  ;;  %v7021_v37 = vmul.f32 %v2798_v56, %v6775_v3  ;;  %v2522_v43 = vpop.f32.mrf.mxu0  ;;  %v8317_v50 = vld [vmem:[#allocation73_spill] sm:$0xff] }
 0x45f   :  { %8311 = vst [vmem:[#allocation25_spill] sm:$0xff] %v7007_v7  ;;  %v2802_v58 = vadd.f32 %v2801_v33, %v6858_v35  ;;  %v2803_v2 = vpop.f32.mrf.mxu1  ;;  %v7031_v40 = vmul.f32 %v6782_v34, %v6782_v34  ;;  %v8320_v33 = vld [vmem:[#allocation76_spill] sm:$0xff] }
 0x460   :  { %8313 = vst [vmem:[#allocation52_spill] sm:$0xff] %v7016_v42  ;;  %8314 = vst [vmem:[#allocation27_spill] sm:$0xff] %v7018_v45  ;;  %v7026_v63 = vadd.f32 %v7018_v45, %v7012_v13  ;;  %v2526_v7 = vpop.f32.mrf.mxu0  ;;  %3156 = vmatmul.mubr.f32.gmra.mxu0 %v8317_v50  ;;  %v2804_v56 = vadd.f32 %v2803_v2, %v6877_v38  ;;  %v7043_v50 = vmul.f32 %v6785_v60, %v6785_v60 }
 0x461   :  { %8315 = vst [vmem:[#allocation56_spill] sm:$0xff] %v7021_v37  ;;  %v7033_v42 = vmul.f32 %v2802_v58, %v2802_v58  ;;  %v7036_v3 = vmul.f32 %v2802_v58, %v6782_v34  ;;  %v2807_v35 = vpop.f32.mrf.mxu1  ;;  %3160 = vmatprep.mubr.f32.mxu0 %v8320_v33  ;;  %v7056_v2 = vmul.f32 %v6794_v23, %v6794_v23 }
 0x462   :  { %8316 = vst [vmem:[#allocation31_spill] sm:$0xff] %v7026_v63  ;;  %v2808_v45 = vadd.f32 %v2807_v35, %v6894_v6  ;;  %v2528_v63 = vpop.f32.mrf.mxu0  ;;  %v7049_v61 = vmul.f32 %v2804_v56, %v2804_v56  ;;  %v7052_v34 = vmul.f32 %v2804_v56, %v6785_v60  ;;  %v8328_v56 = vld [vmem:[#allocation80_spill] sm:$0xff] }
 0x463   :  { %8318 = vst [vmem:[#allocation16_spill] sm:$0xff] %v7033_v42  ;;  %8319 = vst [vmem:[#allocation33_spill] sm:$0xff] %v7036_v3  ;;  %v7047_v37 = vadd.f32 %v7033_v42, %v7031_v40  ;;  %v2809_v38 = vpop.f32.mrf.mxu1  ;;  %v8326_v42 = vld [vmem:[#allocation77_spill] sm:$0xff] }
 0x464   :  { %8322 = vst [vmem:[#allocation36_spill] sm:$0xff] %v7049_v61  ;;  %8323 = vst [vmem:[#allocation18_spill] sm:$0xff] %v7052_v34  ;;  %v7058_v6 = vmul.f32 %v2808_v45, %v2808_v45  ;;  %v7061_v58 = vmul.f32 %v2808_v45, %v6794_v23  ;;  %v2810_v35 = vadd.f32 %v2809_v38, %v6914_v36  ;;  %v2532_v33 = vpop.f32.mrf.mxu0  ;;  %3161 = vmatmul.mubr.f32.gmra.mxu0 %v8326_v42 }
 0x465   :  { %8321 = vst [vmem:[#allocation14_spill] sm:$0xff] %v7047_v37  ;;  %v7067_v37 = vadd.f32 %v7049_v61, %v7043_v50  ;;  %v2813_v60 = vpop.f32.mrf.mxu1  ;;  %3165 = vmatprep.mubr.f32.mxu0 %v8328_v56  ;;  %v7072_v34 = vmul.f32 %v6799_v26, %v6799_v26 }
 0x466   :  { %8324 = vst [vmem:[#allocation37_spill] sm:$0xff] %v7058_v6  ;;  %8325 = vst [vmem:[#allocation64_spill] sm:$0xff] %v7061_v58  ;;  %v7076_v23 = vadd.f32 %v7058_v6, %v7056_v2  ;;  %v7078_v45 = vmul.f32 %v2810_v35, %v2810_v35  ;;  %v7081_v36 = vmul.f32 %v2810_v35, %v6799_v26  ;;  %v2534_v42 = vpop.f32.mrf.mxu0  ;;  %v8334_v58 = vld [vmem:[#allocation82_spill] sm:$0xff]  ;;  %v8335_v35 = vld [vmem:[#allocation60_spill] sm:$0xff] }
 0x467   :  { %8327 = vst [vmem:[#allocation40_spill] sm:$0xff] %v7067_v37  ;;  %8329 = vst [vmem:[#allocation8_spill] sm:$0xff] %v7072_v34  ;;  %v7084_v38 = vadd.f32 %v2813_v60, %v6932_v32  ;;  %v2815_v37 = vpop.f32.mrf.mxu1 }
 0x468   :  { %8330 = vst [vmem:[#allocation41_spill] sm:$0xff] %v7076_v23  ;;  %8331 = vst [vmem:[#allocation70_spill] sm:$0xff] %v7078_v45  ;;  %v7088_v56 = vadd.f32 %v7078_v45, %v7072_v34  ;;  %v2538_v61 = vpop.f32.mrf.mxu0  ;;  %3166 = vmatmul.mubr.f32.gmra.mxu0 %v8334_v58  ;;  %v7094_v6 = vadd.f32 %v2815_v37, %v6951_v15  ;;  %v8336_v37 = vld [vmem:[#allocation63_spill] sm:$0xff] }
 0x469   :  { %8332 = vst [vmem:[#allocation44_spill] sm:$0xff] %v7081_v36  ;;  %v2819_v26 = vpop.f32.mrf.mxu1  ;;  %3170 = vmatprep.mubr.f32.mxu0 %v8335_v35 }
 0x46a   :  { %8333 = vst [vmem:[#allocation74_spill] sm:$0xff] %v7088_v56  ;;  %v7098_v32 = vadd.f32 %v2819_v26, %v6960_v25  ;;  %v2540_v60 = vpop.f32.mrf.mxu0 }
 0x46b   :  { %v2821_v56 = vpop.f32.mrf.mxu1 }
 0x46c   :  { %v7105_v45 = vadd.f32 %v2821_v56, %v6977_v21  ;;  %v2544_v23 = vpop.f32.mrf.mxu0  ;;  %3171 = vmatmul.mubr.f32.gmra.mxu0 %v6487_v4 }
 0x46d   :  { %v2825_v15 = vpop.f32.mrf.mxu1  ;;  %3175 = vmatprep.mubr.f32.mxu0 %v8336_v37 }
 0x46e   :  { %v7111_v26 = vadd.f32 %v2825_v15, %v2520_v31  ;;  %v2546_v35 = vpop.f32.mrf.mxu0 }
 0x46f   :  { %v2827_v36 = vpop.f32.mrf.mxu1 }
 0x470   :  { %v7115_v58 = vadd.f32 %v2827_v36, %v2522_v43  ;;  %v2550_v21 = vpop.f32.mrf.mxu0  ;;  %3176 = vmatmul.mubr.f32.gmra.mxu0 %v6498_v22 }
 0x471   :  { %v2831_v56 = vpop.f32.mrf.mxu1  ;;  %3180 = vmatprep.mubr.f32.mxu0 %v6506_v10 }
 0x472   :  { %v7121_v37 = vadd.f32 %v2831_v56, %v2526_v7  ;;  %v2552_v31 = vpop.f32.mrf.mxu0 }
 0x473   :  { %v2833_v15 = vpop.f32.mrf.mxu1 }
 0x474   :  { %v7125_v12 = vadd.f32 %v2833_v15, %v2528_v63  ;;  %v2556_v43 = vpop.f32.mrf.mxu0  ;;  %3181 = vmatmul.mubr.f32.gmra.mxu0 %v6511_v53 }
 0x475   :  { %v2837_v36 = vpop.f32.mrf.mxu1  ;;  %3185 = vmatprep.mubr.f32.mxu0 %v6520_v47  ;;  %v3774_v47 = vmul.f32 2.0, %v6818_v29 }
 0x476   :  { %v7131_v10 = vadd.f32 %v2837_v36, %v2532_v33  ;;  %v2558_v7 = vpop.f32.mrf.mxu0 }
 0x477   :  { %v2839_v56 = vpop.f32.mrf.mxu1 }
 0x478   :  { %v7135_v3 = vadd.f32 %v2839_v56, %v2534_v42  ;;  %v7137_v63 = vpop.f32.mrf.mxu0  ;;  %3186 = vmatmul.mubr.f32.gmra.mxu0 %v6528_v11 }
 0x479   :  { %v2843_v53 = vpop.f32.mrf.mxu1  ;;  %3190 = vmatprep.mubr.f32.mxu0 %v6539_v18 }
 0x47a   :  { %v7143_v15 = vadd.f32 %v2843_v53, %v2538_v61  ;;  %v7145_v33 = vpop.f32.mrf.mxu0 }
 0x47b   :  { %v2845_v36 = vpop.f32.mrf.mxu1 }
 0x47c   :  { %v7149_v42 = vadd.f32 %v2845_v36, %v2540_v60  ;;  %v7151_v56 = vpop.f32.mrf.mxu0  ;;  %3191 = vmatmul.mubr.f32.gmra.mxu0 %v6547_v14  ;;  %v3775_v60 = vmul.f32 2.0, %v6838_v9 }
 0x47d   :  { %v2849_v11 = vpop.f32.mrf.mxu1  ;;  %3195 = vmatprep.mubr.f32.mxu0 %v6558_v5  ;;  %v3777_v5 = vmul.f32 2.0, %v6856_v57 }
 0x47e   :  { %v7157_v61 = vadd.f32 %v2849_v11, %v2544_v23  ;;  %v7159_v53 = vpop.f32.mrf.mxu0  ;;  %v3778_v11 = vmul.f32 2.0, %v6875_v59  ;;  %v7183_v57 = vadd.f32 0.0001, %v3775_v60  ;;  %v8341_v60 = vld [vmem:[#allocation66_spill] sm:$0xff] }
 0x47f   :  { %v2851_v22 = vpop.f32.mrf.mxu1 }
 0x480   :  { %v7165_v4 = vadd.f32 %v2851_v22, %v2546_v35  ;;  %v7167_v14 = vpop.f32.mrf.mxu0  ;;  %3196 = vmatmul.mubr.f32.gmra.mxu0 %v6566_v16  ;;  %v7179_v35 = vadd.f32 0.0001, %v3774_v47  ;;  %v3870_v22 = vadd.f32 0.0001, %v6833_v51  ;;  %v3780_v16 = vmul.f32 2.0, %v6886_v49  ;;  %8338 = vst [vmem:[#allocation79_spill] sm:$0xff] %v7183_v57 }
 0x481   :  { %v2855_v23 = vpop.f32.mrf.mxu1  ;;  %3200 = vmatprep.mubr.f32.mxu0 %v6577_v20  ;;  %v3781_v20 = vmul.f32 2.0, %v6910_v62  ;;  %v3871_v47 = vadd.f32 0.0001, %v6849_v30  ;;  %v3783_v51 = vmul.f32 2.0, %v6929_v28  ;;  %v3873_v62 = vadd.f32 0.0001, %v6870_v1 }
 0x482   :  { %v7175_v25 = vadd.f32 %v2855_v23, %v2550_v21  ;;  %v7177_v9 = vpop.f32.mrf.mxu0  ;;  %8337 = vst [vmem:[#allocation46_spill] sm:$0xff] %v7179_v35  ;;  %v7194_v23 = vadd.f32 0.0001, %v3777_v5  ;;  %v7199_v49 = vadd.f32 0.0001, %v3778_v11  ;;  %v3784_v5 = vmul.f32 2.0, %v6949_v48 }
 0x483   :  { %v2857_v36 = vpop.f32.mrf.mxu1  ;;  %v7208_v30 = vadd.f32 0.0001, %v3780_v16  ;;  %v7214_v1 = vadd.f32 0.0001, %v3781_v20  ;;  %v8346_v11 = vld [vmem:[#allocation39_spill] sm:$0xff]  ;;  %v8350_v35 = vld [vmem:[#allocation72_spill] sm:$0xff] }
 0x484   :  { %v7188_v29 = vadd.f32 %v2857_v36, %v2552_v31  ;;  %v7190_v21 = vpop.f32.mrf.mxu0  ;;  %3201 = vmatmul.mubr.f32.gmra.mxu0 %v6585_v8  ;;  %8340 = vst [vmem:[#allocation83_spill] sm:$0xff] %v7194_v23  ;;  %8342 = vst [vmem:[#allocation50_spill] sm:$0xff] %v7199_v49  ;;  %v7206_v8 = vadd.f32 0.0001, %v6892_v19  ;;  %v8344_v23 = vld [vmem:[#allocation54_spill] sm:$0xff] }
 0x485   :  { %v2861_v18 = vpop.f32.mrf.mxu1  ;;  %3205 = vmatprep.mubr.f32.mxu0 %v8341_v60  ;;  %8343 = vst [vmem:[#allocation53_spill] sm:$0xff] %v7208_v30  ;;  %v7212_v60 = vadd.f32 0.0001, %v8344_v23  ;;  %8345 = vst [vmem:[#allocation55_spill] sm:$0xff] %v7214_v1  ;;  %v7223_v16 = vadd.f32 0.0001, %v3783_v51 }
 0x486   :  { %8339 = vst [vmem:[#allocation49_spill] sm:$0xff] %v7188_v29  ;;  %v2862_v36 = vadd.f32 %v2861_v18, %v2556_v43  ;;  %v7203_v59 = vpop.f32.mrf.mxu0  ;;  %v8347_v43 = vld [vmem:[#allocation69_spill] sm:$0xff]  ;;  %v8348_v18 = vld [vmem:[#allocation7_spill] sm:$0xff]  ;;  %v3786_v30 = vmul.f32 2.0, %v6972_v39  ;;  %v8363_v29 = vld [vmem:[#allocation78_spill] sm:$0xff] }
 0x487   :  { %v2863_v28 = vpop.f32.mrf.mxu1  ;;  %v7221_v19 = vadd.f32 0.0001, %v8348_v18  ;;  %8349 = vst [vmem:[#allocation58_spill] sm:$0xff] %v7223_v16  ;;  %v8351_v23 = vld [vmem:[#allocation43_spill] sm:$0xff]  ;;  %v7238_v16 = vadd.f32 0.0001, %v3784_v5 }
 0x488   :  { %v3582_v49 = vsub.f32 %v2862_v36, %v8346_v11  ;;  %v2864_v57 = vadd.f32 %v2863_v28, %v2558_v7  ;;  %v7217_v31 = vpop.f32.mrf.mxu0  ;;  %3206 = vmatmul.mubr.f32.gmra.mxu0 %v8347_v43  ;;  %v3787_v20 = vmul.f32 2.0, %v8351_v23  ;;  %v8352_v36 = vsub.f32 %v7084_v38, %v6813_v27  ;;  %v8353_v7 = vld [vmem:[#allocation42_spill] sm:$0xff]  ;;  %v8354_v18 = vld [vmem:[#allocation23_spill] sm:$0xff]  ;;  %v8356_v39 = vld [vmem:[#allocation13_spill] sm:$0xff] }
 0x489   :  { %v2867_v48 = vpop.f32.mrf.mxu1  ;;  %3210 = vmatprep.mubr.f32.mxu0 %v8350_v35  ;;  %v7236_v51 = vadd.f32 0.0001, %v8354_v18  ;;  %8355 = vst [vmem:[#allocation59_spill] sm:$0xff] %v7238_v16  ;;  %v7241_v34 = vadd.f32 0.0001, %v8356_v39  ;;  %v8357_v27 = vsub.f32 %v7094_v6, %v6829_v54  ;;  %v8358_v38 = vld [vmem:[#allocation20_spill] sm:$0xff] }
 0x48a   :  { %v3678_v28 = vadd.f32 %v3582_v49, %v8352_v36  ;;  %v3583_v11 = vsub.f32 %v2864_v57, %v8353_v7  ;;  %v2868_v43 = vadd.f32 %v2867_v48, %v7137_v63  ;;  %v7233_v1 = vpop.f32.mrf.mxu0  ;;  %v8359_v36 = vld [vmem:[#allocation75_spill] sm:$0xff]  ;;  %v7251_v7 = vadd.f32 0.0001, %v3786_v30  ;;  %v8361_v5 = vld [vmem:[#allocation38_spill] sm:$0xff]  ;;  %v8365_v30 = vld [vmem:[#allocation25_spill] sm:$0xff] }
 0x48b   :  { %v2869_v35 = vpop.f32.mrf.mxu1  ;;  %v7254_v18 = vadd.f32 0.0001, %v8361_v5  ;;  %v8362_v39 = vld [vmem:[#allocation47_spill] sm:$0xff]  ;;  %v7258_v54 = vadd.f32 0.0001, %v3787_v20 }
 0x48c   :  { %v3702_v23 = vadd.f32 0.0009, %v3678_v28  ;;  %v3679_v49 = vadd.f32 %v3583_v11, %v8357_v27  ;;  %v3585_v57 = vsub.f32 %v2868_v43, %v8358_v38  ;;  %v2870_v48 = vadd.f32 %v2869_v35, %v7145_v33  ;;  %v7248_v63 = vpop.f32.mrf.mxu0  ;;  %3211 = vmatmul.mubr.f32.gmra.mxu0 %v8359_v36  ;;  %8360 = vst [vmem:[#allocation61_spill] sm:$0xff] %v7251_v7  ;;  %v8366_v38 = vld [vmem:[#allocation32_spill] sm:$0xff] }
 0x48d   :  { %v3789_v16 = vmul.f32 2.0, %v8362_v39  ;;  %v2873_v28 = vpop.f32.mrf.mxu1  ;;  %3215 = vmatprep.mubr.f32.mxu0 %v8363_v29  ;;  %v8364_v33 = vsub.f32 %v7098_v32, %v6845_v46  ;;  %v7266_v27 = vadd.f32 0.0001, %v8365_v30  ;;  %v8367_v46 = vld [vmem:[#allocation81_spill] sm:$0xff] }
 0x48e   :  { %v3894_v6 = vmul.f32 %v3870_v22, %v3702_v23  ;;  %v3703_v11 = vadd.f32 0.0009, %v3679_v49  ;;  %v7263_v35 = vpop.f32.mrf.mxu0  ;;  %4623 = vrcp.f32 %v3702_v23  ;;  %v3586_v36 = vsub.f32 %v2870_v48, %v8366_v38  ;;  %v8370_v48 = vld [vmem:[#allocation35_spill] sm:$0xff] }
 0x48f   :  { %v3681_v43 = vadd.f32 %v3585_v57, %v8364_v33  ;;  %v2874_v5 = vadd.f32 %v2873_v28, %v7151_v56  ;;  %v2875_v7 = vpop.f32.mrf.mxu1  ;;  %v7274_v32 = vadd.f32 0.0001, %v3789_v16  ;;  %v8368_v57 = vld [vmem:[#allocation26_spill] sm:$0xff] }
 0x490   :  { %4625 = vrcp.f32 %v3894_v6  ;;  %v3895_v29 = vmul.f32 %v3871_v47, %v3703_v11  ;;  %v2876_v22 = vadd.f32 %v2875_v7, %v7159_v53  ;;  %v7271_v49 = vpop.f32.mrf.mxu0  ;;  %3216 = vmatmul.mubr.f32.gmra.mxu0 %v8367_v46  ;;  %v8369_v23 = vsub.f32 %v7105_v45, %v8368_v57  ;;  %v8371_v47 = vld [vmem:[#allocation51_spill] sm:$0xff]  ;;  %v8376_v57 = vld [vmem:[#allocation52_spill] sm:$0xff] }
 0x491   :  { %v3705_v20 = vadd.f32 0.0009, %v3681_v43  ;;  %4627 = vrcp.f32 %v3703_v11  ;;  %v3588_v30 = vsub.f32 %v2874_v5, %v8370_v48  ;;  %v2879_v56 = vpop.f32.mrf.mxu1  ;;  %v8372_v43 = vld [vmem:[#allocation56_spill] sm:$0xff]  ;;  %v8373_v11 = vsub.f32 %v7111_v26, %v6881_v24 }
 0x492   :  { %v3682_v33 = vadd.f32 %v3586_v36, %v8369_v23  ;;  %4629 = vrcp.f32 %v3895_v29  ;;  %v3589_v6 = vsub.f32 %v2876_v22, %v8371_v47  ;;  %v2880_v53 = vadd.f32 %v2879_v56, %v7167_v14  ;;  %v7282_v7 = vpop.f32.mrf.mxu0  ;;  %v8375_v29 = vld [vmem:[#allocation17_spill] sm:$0xff] }
 0x493   :  { %v3897_v28 = vmul.f32 %v3873_v62, %v3705_v20  ;;  %v3790_v38 = vmul.f32 2.0, %v8372_v43  ;;  %4631 = vrcp.f32 %v3705_v20  ;;  %v3684_v45 = vadd.f32 %v3588_v30, %v8373_v11  ;;  %v2881_v36 = vpop.f32.mrf.mxu1  ;;  %v8379_v47 = vld [vmem:[#allocation33_spill] sm:$0xff] }
 0x494   :  { %v3706_v16 = vadd.f32 0.0009, %v3682_v33  ;;  %v8374_v5 = vsub.f32 %v7115_v58, %v6901_v17  ;;  %v3591_v22 = vsub.f32 %v2880_v53, %v8375_v29  ;;  %v2882_v14 = vadd.f32 %v2881_v36, %v7177_v9  ;;  %v7293_v46 = vpop.f32.mrf.mxu0  ;;  %v8378_v58 = vld [vmem:[#allocation57_spill] sm:$0xff] }
 0x495   :  { %4633 = vrcp.f32 %v3897_v28  ;;  %v7296_v23 = vadd.f32 0.0001, %v8376_v57  ;;  %v3708_v24 = vadd.f32 0.0009, %v3684_v45  ;;  %v2885_v26 = vpop.f32.mrf.mxu1  ;;  %v8377_v48 = vsub.f32 %v7121_v37, %v6918_v41 }
 0x496   :  { %v3685_v62 = vadd.f32 %v3589_v6, %v8374_v5  ;;  %4635 = vrcp.f32 %v3706_v16  ;;  %v3898_v20 = vmul.f32 %v7206_v8, %v3706_v16  ;;  %v3592_v30 = vsub.f32 %v2882_v14, %v8378_v58  ;;  %v7304_v9 = vpop.f32.mrf.mxu0 }
 0x497   :  { %v3687_v17 = vadd.f32 %v3591_v22, %v8377_v48  ;;  %v2886_v56 = vadd.f32 %v2885_v26, %v7190_v21  ;;  %v7306_v28 = vadd.f32 0.0001, %v3790_v38  ;;  %v3792_v6 = vmul.f32 2.0, %v8379_v47  ;;  %v2887_v53 = vpop.f32.mrf.mxu1  ;;  %v8381_v21 = vld [vmem:[#allocation31_spill] sm:$0xff]  ;;  %v8382_v38 = vld [vmem:[#allocation34_spill] sm:$0xff] }
 0x498   :  { %v3709_v33 = vadd.f32 0.0009, %v3685_v62  ;;  %4637 = vrcp.f32 %v3898_v20  ;;  %v3900_v8 = vmul.f32 %v7212_v60, %v3708_v24  ;;  %v8380_v41 = vsub.f32 %v7125_v12, %v6940_v0  ;;  %v7314_v45 = vpop.f32.mrf.mxu0  ;;  %v8385_v20 = vld [vmem:[#allocation19_spill] sm:$0xff] }
 0x499   :  { %4639 = vrcp.f32 %v3708_v24  ;;  %v3711_v11 = vadd.f32 0.0009, %v3687_v17  ;;  %v7317_v36 = vadd.f32 0.0001, %v8381_v21  ;;  %v3594_v5 = vsub.f32 %v2886_v56, %v8382_v38  ;;  %v2891_v60 = vpop.f32.mrf.mxu1  ;;  %v8391_v38 = vld [vmem:[#allocation18_spill] sm:$0xff] }
 0x49a   :  { %v3901_v16 = vmul.f32 %v7221_v19, %v3709_v33  ;;  %v3688_v37 = vadd.f32 %v3592_v30, %v8380_v41  ;;  %4641 = vrcp.f32 %v3900_v8  ;;  %v2888_v62 = vadd.f32 %v2887_v53, %v7203_v59  ;;  %v7323_v14 = vpop.f32.mrf.mxu0  ;;  %v8387_v30 = vld [vmem:[#allocation14_spill] sm:$0xff] }
 0x49b   :  { %4643 = vrcp.f32 %v3709_v33  ;;  %v3903_v29 = vmul.f32 %v7236_v51, %v3711_v11  ;;  %v2892_v22 = vadd.f32 %v2891_v60, %v7217_v31  ;;  %v7325_v12 = vadd.f32 0.0001, %v3792_v6  ;;  %v2893_v26 = vpop.f32.mrf.mxu1  ;;  %v7331_v59 = vpop.eup %4623  ;;  %v8386_v33 = vld [vmem:[#allocation21_spill] sm:$0xff] }
 0x49c   :  { %v3712_v19 = vadd.f32 0.0009, %v3688_v37  ;;  %4645 = vrcp.f32 %v3901_v16  ;;  %v8384_v0 = vsub.f32 %v7131_v10, %v6967_v55  ;;  %v3595_v24 = vsub.f32 %v2888_v62, %v8385_v20  ;;  %v7336_v17 = vpop.f32.mrf.mxu0  ;;  %v8390_v16 = vld [vmem:[#allocation27_spill] sm:$0xff] }
 0x49d   :  { %8383 = vst [vmem:[#allocation22_spill] sm:$0xff] %v7325_v12  ;;  %4647 = vrcp.f32 %v3711_v11  ;;  %v3597_v48 = vsub.f32 %v2892_v22, %v8386_v33  ;;  %v2894_v31 = vadd.f32 %v2893_v26, %v7233_v1  ;;  %v7338_v58 = vpop.eup %4625  ;;  %v3888_v56 = vadd.f32 0.0001, %v8387_v30  ;;  %v2897_v8 = vpop.f32.mrf.mxu1 }
 0x49e   :  { %v3690_v57 = vadd.f32 %v3594_v5, %v8384_v0  ;;  %v3904_v51 = vmul.f32 %v7241_v34, %v3712_v19  ;;  %4649 = vrcp.f32 %v3903_v29  ;;  %v8388_v10 = vsub.f32 %v7135_v3, %v6981_v52  ;;  %v7344_v53 = vpop.eup %4627  ;;  %v7351_v37 = vpop.f32.mrf.mxu0 }
 0x49f   :  { %4651 = vrcp.f32 %v3712_v19  ;;  %v8389_v34 = vsub.f32 %v7143_v15, %v6996_v44  ;;  %v3598_v11 = vsub.f32 %v2894_v31, %v8390_v16  ;;  %v2898_v41 = vadd.f32 %v2897_v8, %v7248_v63  ;;  %v7353_v21 = vpop.eup %4629  ;;  %v2899_v62 = vpop.f32.mrf.mxu1  ;;  %v8393_v63 = vld [vmem:[#allocation16_spill] sm:$0xff] }
 0x4a0   :  { %v3714_v55 = vadd.f32 0.0009, %v3690_v57  ;;  %v3691_v6 = vadd.f32 %v3595_v24, %v8388_v10  ;;  %v3793_v5 = vmul.f32 2.0, %v8391_v38  ;;  %4653 = vrcp.f32 %v3904_v51  ;;  %v7357_v60 = vpop.eup %4631  ;;  %v7363_v22 = vpop.f32.mrf.mxu0  ;;  %v8394_v57 = vld [vmem:[#allocation64_spill] sm:$0xff] }
 0x4a1   :  { %v3693_v1 = vadd.f32 %v3597_v48, %v8389_v34  ;;  %v8392_v15 = vsub.f32 %v7149_v42, %v7012_v13  ;;  %v3600_v19 = vsub.f32 %v2898_v41, %v8393_v63  ;;  %v3795_v20 = vmul.f32 2.0, %v8394_v57  ;;  %v2903_v26 = vpop.f32.mrf.mxu1  ;;  %v8400_v41 = vld [vmem:[#allocation37_spill] sm:$0xff] }
 0x4a2   :  { %v3906_v52 = vmul.f32 %v7254_v18, %v3714_v55  ;;  %v3715_v3 = vadd.f32 0.0009, %v3691_v6  ;;  %4655 = vrcp.f32 %v3714_v55  ;;  %v7365_v0 = vpop.eup %4633  ;;  %v2900_v24 = vadd.f32 %v2899_v62, %v7263_v35  ;;  %v7376_v31 = vpop.f32.mrf.mxu0  ;;  %v8397_v55 = vld [vmem:[#allocation36_spill] sm:$0xff]  ;;  %v8401_v62 = vld [vmem:[#allocation70_spill] sm:$0xff]  ;;  %v8402_v63 = vld [vmem:[#allocation41_spill] sm:$0xff] }
 0x4a3   :  { %v3717_v44 = vadd.f32 0.0009, %v3693_v1  ;;  %v3694_v29 = vadd.f32 %v3598_v11, %v8392_v15  ;;  %v7370_v51 = vpop.eup %4635  ;;  %v8395_v33 = vsub.f32 %v7157_v61, %v7031_v40  ;;  %v7378_v30 = vadd.f32 0.0001, %v3793_v5  ;;  %v2905_v10 = vpop.f32.mrf.mxu1  ;;  %v8398_v1 = vld [vmem:[#allocation40_spill] sm:$0xff] }
 0x4a4   :  { %4657 = vrcp.f32 %v3906_v52  ;;  %v3907_v18 = vmul.f32 %v7266_v27, %v3715_v3  ;;  %v3601_v27 = vsub.f32 %v2900_v24, %v8397_v55  ;;  %v2904_v35 = vadd.f32 %v2903_v26, %v7271_v49  ;;  %v7386_v40 = vpop.f32.mrf.mxu0 }
 0x4a5   :  { %4659 = vrcp.f32 %v3715_v3  ;;  %v3909_v13 = vmul.f32 %v7296_v23, %v3717_v44  ;;  %v3718_v42 = vadd.f32 0.0009, %v3694_v29  ;;  %v3696_v48 = vadd.f32 %v3600_v19, %v8395_v33  ;;  %8396 = vst [vmem:[#allocation12_spill] sm:$0xff] %v7378_v30  ;;  %v7382_v6 = vpop.eup %4637  ;;  %v2909_v52 = vpop.f32.mrf.mxu1  ;;  %v8407_v33 = vld [vmem:[#allocation24_spill] sm:$0xff] }
 0x4a6   :  { %4661 = vrcp.f32 %v3907_v18  ;;  %v2906_v34 = vadd.f32 %v2905_v10, %v7282_v7  ;;  %v7388_v61 = vpop.eup %4639  ;;  %v3889_v16 = vadd.f32 0.0001, %v8398_v1  ;;  %v8399_v11 = vsub.f32 %v7165_v4, %v7043_v50  ;;  %v7399_v15 = vpop.f32.mrf.mxu0  ;;  %v8408_v10 = vld [vmem:[#allocation74_spill] sm:$0xff] }
 0x4a7   :  { %4663 = vrcp.f32 %v3717_v44  ;;  %v3910_v23 = vmul.f32 %v7317_v36, %v3718_v42  ;;  %v3720_v8 = vadd.f32 0.0009, %v3696_v48  ;;  %v3603_v5 = vsub.f32 %v2904_v35, %v8400_v41  ;;  %v7395_v3 = vpop.eup %4641  ;;  %v2911_v24 = vpop.f32.mrf.mxu1 }
 0x4a8   :  { %4665 = vrcp.f32 %v3909_v13  ;;  %v3697_v49 = vadd.f32 %v3601_v27, %v8399_v11  ;;  %v3604_v7 = vsub.f32 %v2906_v34, %v8401_v62  ;;  %v2910_v44 = vadd.f32 %v2909_v52, %v7293_v46  ;;  %v7401_v29 = vpop.eup %4643  ;;  %v8405_v13 = vld [vmem:[#allocation8_spill] sm:$0xff]  ;;  %v7414_v27 = vpop.f32.mrf.mxu0 }
 0x4a9   :  { %4667 = vrcp.f32 %v3718_v42  ;;  %v3912_v36 = vmul.f32 %v3888_v56, %v3720_v8  ;;  %v3891_v19 = vadd.f32 0.0001, %v8402_v63  ;;  %v8403_v4 = vsub.f32 %v7175_v25, %v7056_v2  ;;  %v7407_v26 = vpop.eup %4645  ;;  %v8404_v56 = vld [vmem:[#allocation49_spill] sm:$0xff]  ;;  %v2915_v34 = vpop.f32.mrf.mxu1 }
 0x4aa   :  { %4669 = vrcp.f32 %v3910_v23  ;;  %v3721_v50 = vadd.f32 0.0009, %v3697_v49  ;;  %v8406_v42 = vsub.f32 %v8404_v56, %v8405_v13  ;;  %v3606_v48 = vsub.f32 %v2910_v44, %v8407_v33  ;;  %v7416_v35 = vpop.eup %4647  ;;  %v8409_v49 = vld [vmem:[#allocation30_spill] sm:$0xff]  ;;  %v8413_v13 = vld [vmem:[#allocation28_spill] sm:$0xff] }
 0x4ab   :  { %v3699_v18 = vadd.f32 %v3603_v5, %v8403_v4  ;;  %4671 = vrcp.f32 %v3720_v8  ;;  %v2912_v55 = vadd.f32 %v2911_v24, %v7304_v9  ;;  %v3892_v23 = vadd.f32 0.0001, %v8408_v10  ;;  %v7419_v1 = vpop.eup %4649  ;;  %v7422_v5 = vpop.f32.mrf.mxu0  ;;  %v8411_v24 = vld [vmem:[#allocation44_spill] sm:$0xff] }
 0x4ac   :  { %v3700_v46 = vadd.f32 %v3604_v7, %v8406_v42  ;;  %4673 = vrcp.f32 %v3912_v36  ;;  %v3913_v2 = vmul.f32 %v3889_v16, %v3721_v50  ;;  %v3630_v11 = vmul.f32 2.0, %v3606_v48  ;;  %v7424_v9 = vpop.eup %4651  ;;  %v2917_v16 = vpop.f32.mrf.mxu1  ;;  %v8414_v48 = vld [vmem:[#allocation46_spill] sm:$0xff] }
 0x4ad   :  { %v3723_v25 = vadd.f32 0.0009, %v3699_v18  ;;  %4675 = vrcp.f32 %v3721_v50  ;;  %v3607_v41 = vsub.f32 %v2912_v55, %v8409_v49  ;;  %v7426_v52 = vadd.f32 0.0001, %v3795_v20  ;;  %v7429_v7 = vpop.eup %4653  ;;  %v7431_v4 = vpop.f32.mrf.mxu0  ;;  %v377_v20 = vld [vmem:[#allocation2 + $0xc00] sm:$0xff] }
 0x4ae   :  { %v3724_v8 = vadd.f32 0.0009, %v3700_v46  ;;  %4677 = vrcp.f32 %v3913_v2  ;;  %v2916_v36 = vadd.f32 %v2915_v34, %v7314_v45  ;;  %v3654_v63 = vadd.f32 0.0009, %v3630_v11  ;;  %v2921_v42 = vpop.f32.mrf.mxu1  ;;  %v8415_v11 = vld [vmem:[#allocation45_spill] sm:$0xff] }
 0x4af   :  { %8410 = vst [vmem:[#allocation62_spill] sm:$0xff] %v7426_v52  ;;  %v3915_v62 = vmul.f32 %v3891_v19, %v3723_v25  ;;  %4679 = vrcp.f32 %v3723_v25  ;;  %v3631_v50 = vmul.f32 2.0, %v3607_v41  ;;  %v7433_v18 = vpop.eup %4655  ;;  %v7436_v56 = vmul.f32 2.0, %v8411_v24  ;;  %v378_v25 = vld [vmem:[#allocation2 + $0xc08] sm:$0xff] }
 0x4b0   :  { %v3916_v44 = vmul.f32 %v3892_v23, %v3724_v8  ;;  %v3609_v19 = vsub.f32 %v2916_v36, %v8413_v13  ;;  %v2918_v45 = vadd.f32 %v2917_v16, %v7323_v14  ;;  %v3727_v33 = vmul.f32 %v7331_v59, %v3654_v63  ;;  %v7444_v23 = vpop.f32.mrf.mxu0  ;;  %v2923_v41 = vpop.f32.mrf.mxu1  ;;  %v8416_v16 = vld [vmem:[#allocation79_spill] sm:$0xff] }
 0x4b1   :  { %8412 = vst [vmem:[#allocation6_spill] sm:$0xff] %v7436_v56  ;;  %4681 = vrcp.f32 %v3915_v62  ;;  %v7440_v46 = vpop.eup %4657  ;;  %v3822_v55 = vmul.f32 %v8414_v48, %v3654_v63  ;;  %v3655_v10 = vadd.f32 0.0009, %v3631_v50  ;;  %v2922_v14 = vadd.f32 %v2921_v42, %v7336_v17  ;;  %v8417_v48 = vld [vmem:[#allocation48_spill] sm:$0xff] }
 0x4b2   :  { %4683 = vrcp.f32 %v3724_v8  ;;  %v7446_v2 = vpop.eup %4659  ;;  %v3633_v34 = vmul.f32 2.0, %v3609_v19  ;;  %v3610_v49 = vsub.f32 %v2918_v45, %v8415_v11  ;;  %v4029_v59 = vmul.f32 %v3727_v33, %v377_v20  ;;  %v7455_v50 = vpop.f32.mrf.mxu0 }
 0x4b3   :  { %4685 = vrcp.f32 %v3916_v44  ;;  %v7450_v62 = vpop.eup %4661  ;;  %v3919_v8 = vmul.f32 %v7338_v58, %v3822_v55  ;;  %v3729_v36 = vmul.f32 %v7344_v53, %v3655_v10  ;;  %v3823_v63 = vmul.f32 %v8416_v16, %v3655_v10  ;;  %v2927_v42 = vpop.f32.mrf.mxu1  ;;  %v380_v53 = vld [vmem:[#allocation2 + $0xc18] sm:$0xff] }
 0x4b4   :  { %v7457_v13 = vpop.eup %4663  ;;  %v3657_v44 = vadd.f32 0.0009, %v3633_v34  ;;  %v3634_v19 = vmul.f32 2.0, %v3610_v49  ;;  %v3612_v45 = vsub.f32 %v2922_v14, %v8417_v48  ;;  %v2924_v17 = vadd.f32 %v2923_v41, %v7351_v37  ;;  %v7465_v10 = vpop.f32.mrf.mxu0  ;;  %v8418_v49 = vld [vmem:[#allocation83_spill] sm:$0xff] }
 0x4b5   :  { %v7461_v11 = vpop.eup %4665  ;;  %v3966_v56 = vmul.f32 %v3919_v8, %v377_v20  ;;  %v3921_v58 = vmul.f32 %v7353_v21, %v3823_v63  ;;  %v4030_v33 = vmul.f32 %v3729_v36, %v378_v25  ;;  %v2928_v55 = vadd.f32 %v2927_v42, %v7363_v22  ;;  %v2929_v41 = vpop.f32.mrf.mxu1  ;;  %v381_v8 = vld [vmem:[#allocation2 + $0xc20] sm:$0xff]  ;;  %v8420_v21 = vld [vmem:[#allocation11_spill] sm:$0xff] }
 0x4b6   :  { %v7467_v16 = vpop.eup %4667  ;;  %v3733_v34 = vmul.f32 %v7357_v60, %v3657_v44  ;;  %v3825_v14 = vmul.f32 %v8418_v49, %v3657_v44  ;;  %v3658_v48 = vadd.f32 0.0009, %v3634_v19  ;;  %v3636_v37 = vmul.f32 2.0, %v3612_v45  ;;  %v8421_v63 = vld [vmem:[#allocation9_spill] sm:$0xff]  ;;  %v7476_v42 = vpop.f32.mrf.mxu0  ;;  %v8424_v45 = vld [vmem:[#allocation50_spill] sm:$0xff] }
 0x4b7   :  { %v7471_v52 = vpop.eup %4669  ;;  %v3967_v20 = vmul.f32 %v3921_v58, %v378_v25  ;;  %v3613_v36 = vsub.f32 %v2924_v17, %v8420_v21  ;;  %v3615_v24 = vsub.f32 %v2928_v55, %v8421_v63  ;;  %v2930_v22 = vadd.f32 %v2929_v41, %v7376_v31  ;;  %8422 = vst [vmem:[#allocation10_spill] sm:$0xff] %v7476_v42  ;;  %v2933_v12 = vpop.f32.mrf.mxu1  ;;  %v8426_v55 = vld [vmem:[#allocation29_spill] sm:$0xff] }
 0x4b8   :  { %8419 = vst [vmem:[#allocation5_spill] sm:$0xff] %v7471_v52  ;;  %v7478_v30 = vpop.eup %4671  ;;  %v3925_v60 = vmul.f32 %v7365_v0, %v3825_v14  ;;  %v4032_v44 = vmul.f32 %v3733_v34, %v380_v53  ;;  %v3735_v19 = vmul.f32 %v7370_v51, %v3658_v48  ;;  %v3826_v49 = vmul.f32 %v8424_v45, %v3658_v48  ;;  %v3024_v31 = vpop.f32.mrf.mxu0  ;;  %v383_v14 = vld [vmem:[#allocation2 + $0xc30] sm:$0xff]  ;;  %v8427_v45 = vld [vmem:[#allocation53_spill] sm:$0xff] }
 0x4b9   :  { %8423 = vst [vmem:[#allocation65_spill] sm:$0xff] %v7478_v30  ;;  %v7483_v25 = vpop.eup %4673  ;;  %v3660_v58 = vadd.f32 0.0009, %v3636_v37  ;;  %v3637_v17 = vmul.f32 2.0, %v3613_v36  ;;  %v3639_v21 = vmul.f32 2.0, %v3615_v24  ;;  %v3616_v63 = vsub.f32 %v2930_v22, %v8426_v55  ;;  %v2935_v51 = vpop.f32.mrf.mxu1 }
 0x4ba   :  { %8425 = vst [vmem:[#allocation67_spill] sm:$0xff] %v7483_v25  ;;  %v7486_v41 = vpop.eup %4675  ;;  %v3969_v42 = vmul.f32 %v3925_v60, %v380_v53  ;;  %v4053_v30 = vadd.f32 %v4032_v44, %v4029_v59  ;;  %v3927_v0 = vmul.f32 %v7382_v6, %v3826_v49  ;;  %v4033_v34 = vmul.f32 %v3735_v19, %v381_v8  ;;  %v7493_v25 = vpop.f32.mrf.mxu0  ;;  %v384_v60 = vld [vmem:[#allocation2 + $0xc38] sm:$0xff] }
 0x4bb   :  { %v7489_v52 = vpop.eup %4677  ;;  %v3739_v48 = vmul.f32 %v7388_v61, %v3660_v58  ;;  %v3828_v37 = vmul.f32 %v8427_v45, %v3660_v58  ;;  %v3661_v36 = vadd.f32 0.0009, %v3637_v17  ;;  %v3663_v24 = vadd.f32 0.0009, %v3639_v21  ;;  %8428 = vst [vmem:[#allocation68_spill] sm:$0xff] %v7493_v25  ;;  %v2939_v44 = vpop.f32.mrf.mxu1  ;;  %v8430_v58 = vld [vmem:[#allocation55_spill] sm:$0xff] }
 0x4bc   :  { %v7495_v22 = vpop.eup %4679  ;;  %v3990_v55 = vadd.f32 %v3969_v42, %v3966_v56  ;;  %v3970_v53 = vmul.f32 %v3927_v0, %v381_v8  ;;  %v4066_v59 = vadd.f32 %v4033_v34, %v4030_v33  ;;  %v3640_v6 = vmul.f32 2.0, %v3616_v63  ;;  %v386_v21 = vld [vmem:[#allocation2 + $0xc48] sm:$0xff]  ;;  %v3029_v45 = vpop.f32.mrf.mxu0 }
 0x4bd   :  { %8429 = vst [vmem:[#allocation71_spill] sm:$0xff] %v7495_v22  ;;  %v3931_v49 = vmul.f32 %v7395_v3, %v3828_v37  ;;  %v4035_v31 = vmul.f32 %v3739_v48, %v383_v14  ;;  %v3741_v61 = vmul.f32 %v7401_v29, %v3661_v36  ;;  %v3829_v17 = vmul.f32 %v8430_v58, %v3661_v36  ;;  %v8432_v33 = vld [vmem:[#allocation58_spill] sm:$0xff]  ;;  %v2941_v63 = vpop.f32.mrf.mxu1  ;;  %v387_v37 = vld [vmem:[#allocation2 + $0xc50] sm:$0xff] }
 0x4be   :  { %v7497_v19 = vpop.eup %4681  ;;  %v4003_v22 = vadd.f32 %v3970_v53, %v3967_v20  ;;  %v3745_v56 = vmul.f32 %v7416_v35, %v3663_v24  ;;  %v3831_v8 = vmul.f32 %v8432_v33, %v3663_v24  ;;  %v3664_v42 = vadd.f32 0.0009, %v3640_v6  ;;  %v7509_v36 = vpop.f32.mrf.mxu0  ;;  %v8434_v35 = vld [vmem:[#allocation59_spill] sm:$0xff] }
 0x4bf   :  { %v7502_v25 = vpop.eup %4683  ;;  %v3972_v34 = vmul.f32 %v3931_v49, %v383_v14  ;;  %v4054_v3 = vadd.f32 %v4053_v30, %v4035_v31  ;;  %v3933_v48 = vmul.f32 %v7407_v26, %v3829_v17  ;;  %v4036_v29 = vmul.f32 %v3741_v61, %v384_v60  ;;  %8433 = vst [vmem:[#allocation76_spill] sm:$0xff] %v7509_v36  ;;  %v2945_v24 = vpop.f32.mrf.mxu1 }
 0x4c0   :  { %8431 = vst [vmem:[#allocation73_spill] sm:$0xff] %v7502_v25  ;;  %v7506_v0 = vpop.eup %4685  ;;  %v3937_v58 = vmul.f32 %v7419_v1, %v3831_v8  ;;  %v4038_v45 = vmul.f32 %v3745_v56, %v386_v21  ;;  %v3747_v20 = vmul.f32 %v7424_v9, %v3664_v42  ;;  %v3832_v53 = vmul.f32 %v8434_v35, %v3664_v42  ;;  %v3034_v30 = vpop.f32.mrf.mxu0  ;;  %v8435_v1 = vld [vmem:[#allocation15_spill] sm:$0xff] }
 0x4c1   :  { %v3991_v6 = vadd.f32 %v3990_v55, %v3972_v34  ;;  %v3973_v33 = vmul.f32 %v3933_v48, %v384_v60  ;;  %v4067_v25 = vadd.f32 %v4066_v59, %v4036_v29  ;;  %v2934_v14 = vadd.f32 %v2933_v12, %v7386_v40  ;;  %v2947_v17 = vpop.f32.mrf.mxu1  ;;  %v8436_v34 = vld [vmem:[#allocation43_spill] sm:$0xff] }
 0x4c2   :  { %v3975_v49 = vmul.f32 %v3937_v58, %v386_v21  ;;  %v4055_v26 = vadd.f32 %v4054_v3, %v4038_v45  ;;  %v3939_v31 = vmul.f32 %v7429_v7, %v3832_v53  ;;  %v4039_v61 = vmul.f32 %v3747_v20, %v387_v37  ;;  %v7519_v42 = vpop.f32.mrf.mxu0  ;;  %v389_v45 = vld [vmem:[#allocation2 + $0xc60] sm:$0xff] }
 0x4c3   :  { %v4004_v36 = vadd.f32 %v4003_v22, %v3973_v33  ;;  %v3618_v56 = vsub.f32 %v2934_v14, %v8435_v1  ;;  %v2936_v9 = vadd.f32 %v2935_v51, %v7399_v15  ;;  %v2940_v8 = vadd.f32 %v2939_v44, %v7414_v27  ;;  %v2951_v40 = vpop.f32.mrf.mxu1 }
 0x4c4   :  { %v3992_v55 = vadd.f32 %v3991_v6, %v3975_v49  ;;  %v3976_v59 = vmul.f32 %v3939_v31, %v387_v37  ;;  %v4068_v60 = vadd.f32 %v4067_v25, %v4039_v61  ;;  %v2942_v12 = vadd.f32 %v2941_v63, %v7422_v5  ;;  %v3039_v48 = vpop.f32.mrf.mxu0  ;;  %v390_v6 = vld [vmem:[#allocation2 + $0xc68] sm:$0xff]  ;;  %v392_v31 = vld [vmem:[#allocation2 + $0xc78] sm:$0xff]  ;;  %v393_v61 = vld [vmem:[#allocation2 + $0xc80] sm:$0xff] }
 0x4c5   :  { %v3642_v21 = vmul.f32 2.0, %v3618_v56  ;;  %v3619_v7 = vsub.f32 %v2936_v9, %v8436_v34  ;;  %v3621_v3 = vsub.f32 %v2940_v8, %v8362_v39  ;;  %v2946_v22 = vadd.f32 %v2945_v24, %v7431_v4  ;;  %v2953_v44 = vpop.f32.mrf.mxu1 }
 0x4c6   :  { %v4005_v29 = vadd.f32 %v4004_v36, %v3976_v59  ;;  %v3622_v15 = vsub.f32 %v2942_v12, %v8372_v43  ;;  %v2948_v27 = vadd.f32 %v2947_v17, %v7444_v23  ;;  %v2952_v51 = vadd.f32 %v2951_v40, %v7455_v50  ;;  %v7529_v58 = vpop.f32.mrf.mxu0  ;;  %v8437_v50 = vld [vmem:[#allocation61_spill] sm:$0xff] }
 0x4c7   :  { %v3666_v25 = vadd.f32 0.0009, %v3642_v21  ;;  %v3643_v37 = vmul.f32 2.0, %v3619_v7  ;;  %v3645_v5 = vmul.f32 2.0, %v3621_v3  ;;  %v3624_v63 = vsub.f32 %v2946_v22, %v8379_v47  ;;  %v8438_v21 = vld [vmem:[#allocation5_spill] sm:$0xff] }
 0x4c8   :  { %v3646_v39 = vmul.f32 2.0, %v3622_v15  ;;  %v3625_v4 = vsub.f32 %v2948_v27, %v8391_v38  ;;  %v3627_v36 = vsub.f32 %v2952_v51, %v8394_v57  ;;  %v7534_v43 = vadd.f32 %v2953_v44, %v7465_v10  ;;  %v3044_v24 = vpop.f32.mrf.mxu0  ;;  %v8439_v44 = vld [vmem:[#allocation65_spill] sm:$0xff] }
 0x4c9   :  { %v3751_v23 = vmul.f32 %v7433_v18, %v3666_v25  ;;  %v3834_v20 = vmul.f32 %v8437_v50, %v3666_v25  ;;  %v3667_v35 = vadd.f32 0.0009, %v3643_v37  ;;  %v3669_v53 = vadd.f32 0.0009, %v3645_v5  ;;  %v396_v5 = vld [vmem:[#allocation2 + $0xc98] sm:$0xff]  ;;  %v8442_v50 = vld [vmem:[#allocation67_spill] sm:$0xff] }
 0x4ca   :  { %v3670_v47 = vadd.f32 0.0009, %v3646_v39  ;;  %v3648_v33 = vmul.f32 2.0, %v3624_v63  ;;  %v3649_v14 = vmul.f32 2.0, %v3625_v4  ;;  %v3651_v30 = vmul.f32 2.0, %v3627_v36  ;;  %v7541_v18 = vpop.f32.mrf.mxu0 }
 0x4cb   :  { %v3943_v49 = vmul.f32 %v7440_v46, %v3834_v20  ;;  %v4041_v38 = vmul.f32 %v3751_v23, %v389_v45  ;;  %v3753_v57 = vmul.f32 %v7446_v2, %v3667_v35  ;;  %v3835_v10 = vmul.f32 %v7258_v54, %v3667_v35 }
 0x4cc   :  { %v3757_v17 = vmul.f32 %v7457_v13, %v3669_v53  ;;  %v3837_v1 = vmul.f32 %v7274_v32, %v3669_v53  ;;  %v3759_v56 = vmul.f32 %v7467_v16, %v3670_v47  ;;  %v3838_v9 = vmul.f32 %v7306_v28, %v3670_v47  ;;  %v3049_v2 = vpop.f32.mrf.mxu0  ;;  %v398_v53 = vld [vmem:[#allocation2 + $0xca8] sm:$0xff] }
 0x4cd   :  { %v3978_v8 = vmul.f32 %v3943_v49, %v389_v45  ;;  %v4056_v59 = vadd.f32 %v4055_v26, %v4041_v38  ;;  %v3945_v46 = vmul.f32 %v7450_v62, %v3835_v10  ;;  %v4042_v12 = vmul.f32 %v3753_v57, %v390_v6  ;;  %v395_v26 = vld [vmem:[#allocation2 + $0xc90] sm:$0xff] }
 0x4ce   :  { %v3949_v54 = vmul.f32 %v7461_v11, %v3837_v1  ;;  %v4044_v40 = vmul.f32 %v3757_v17, %v392_v31  ;;  %v3951_v34 = vmul.f32 %v8438_v21, %v3838_v9  ;;  %v4045_v7 = vmul.f32 %v3759_v56, %v393_v61  ;;  %v7550_v48 = vpop.f32.mrf.mxu0  ;;  %v8440_v11 = vld [vmem:[#allocation22_spill] sm:$0xff]  ;;  %v399_v21 = vld [vmem:[#allocation2 + $0xcb0] sm:$0xff] }
 0x4cf   :  { %v3993_v3 = vadd.f32 %v3992_v55, %v3978_v8  ;;  %v3979_v13 = vmul.f32 %v3945_v46, %v390_v6  ;;  %v4069_v22 = vadd.f32 %v4068_v60, %v4042_v12  ;;  %v3672_v32 = vadd.f32 0.0009, %v3648_v33  ;;  %v8441_v60 = vld [vmem:[#allocation12_spill] sm:$0xff]  ;;  %v4528_v36 = vpop.f32.mrf.mxu1  ;;  %v8446_v8 = vld [vmem:[#allocation6_spill] sm:$0xff] }
 0x4d0   :  { %v3981_v16 = vmul.f32 %v3949_v54, %v392_v31  ;;  %v4057_v28 = vadd.f32 %v4056_v59, %v4044_v40  ;;  %v3982_v15 = vmul.f32 %v3951_v34, %v393_v61  ;;  %v3673_v27 = vadd.f32 0.0009, %v3649_v14  ;;  %v3054_v63 = vpop.f32.mrf.mxu0  ;;  %v8444_v14 = vld [vmem:[#allocation71_spill] sm:$0xff] }
 0x4d1   :  { %v4006_v62 = vadd.f32 %v4005_v29, %v3979_v13  ;;  %v4070_v51 = vadd.f32 %v4069_v22, %v4045_v7  ;;  %v3763_v25 = vmul.f32 %v8439_v44, %v3672_v32  ;;  %v3840_v37 = vmul.f32 %v8440_v11, %v3672_v32  ;;  %v8443_v29 = vld [vmem:[#allocation44_spill] sm:$0xff]  ;;  %v3287_v57 = vpop.f32.mrf.mxu1  ;;  %v8447_v7 = vld [vmem:[#allocation73_spill] sm:$0xff] }
 0x4d2   :  { %v3994_v45 = vadd.f32 %v3993_v3, %v3981_v16  ;;  %v3765_v55 = vmul.f32 %v7486_v41, %v3673_v27  ;;  %v3841_v39 = vmul.f32 %v8441_v60, %v3673_v27  ;;  %v3675_v4 = vadd.f32 0.0009, %v3651_v30  ;;  %v7559_v6 = vpop.f32.mrf.mxu0  ;;  %v8445_v41 = vld [vmem:[#allocation62_spill] sm:$0xff] }
 0x4d3   :  { %v4007_v23 = vadd.f32 %v4006_v62, %v3982_v15  ;;  %v3955_v20 = vmul.f32 %v8442_v50, %v3840_v37  ;;  %v4047_v35 = vmul.f32 %v3763_v25, %v395_v26  ;;  %v3628_v24 = vsub.f32 %v7534_v43, %v8443_v29  ;;  %v4531_v43 = vpop.f32.mrf.mxu1 }
 0x4d4   :  { %v3957_v47 = vmul.f32 %v7489_v52, %v3841_v39  ;;  %v4048_v33 = vmul.f32 %v3765_v55, %v396_v5  ;;  %v3769_v49 = vmul.f32 %v8444_v14, %v3675_v4  ;;  %v3843_v38 = vmul.f32 %v8445_v41, %v3675_v4  ;;  %v3059_v61 = vpop.f32.mrf.mxu0 }
 0x4d5   :  { %v3984_v30 = vmul.f32 %v3955_v20, %v395_v26  ;;  %v4058_v10 = vadd.f32 %v4057_v28, %v4047_v35  ;;  %v3652_v31 = vmul.f32 2.0, %v3628_v24  ;;  %v3820_v59 = vadd.f32 0.0001, %v8446_v8  ;;  %v3297_v34 = vpop.f32.mrf.mxu1 }
 0x4d6   :  { %v3985_v17 = vmul.f32 %v3957_v47, %v396_v5  ;;  %v4071_v1 = vadd.f32 %v4070_v51, %v4048_v33  ;;  %v3961_v56 = vmul.f32 %v7497_v19, %v3843_v38  ;;  %v4050_v9 = vmul.f32 %v3769_v49, %v398_v53  ;;  %v3062_v12 = vpop.f32.mrf.mxu0  ;;  %v8449_v47 = vld [vmem:[#allocation10_spill] sm:$0xff] }
 0x4d7   :  { %v3995_v46 = vadd.f32 %v3994_v45, %v3984_v30  ;;  %v3676_v52 = vadd.f32 0.0009, %v3652_v31  ;;  %v7567_v28 = vpop.f32.mrf.mxu1  ;;  %v3288_v33 = vadd.f32 %v3287_v57, %v8449_v47 }
 0x4d8   :  { %v4008_v2 = vadd.f32 %v4007_v23, %v3985_v17  ;;  %v3987_v54 = vmul.f32 %v3961_v56, %v398_v53  ;;  %v4059_v40 = vadd.f32 %v4058_v10, %v4050_v9  ;;  %v3064_v22 = vpop.f32.mrf.mxu0  ;;  %v8448_v23 = vld [vmem:[#allocation68_spill] sm:$0xff] }
 0x4d9   :  { %v3771_v3 = vmul.f32 %v8447_v7, %v3676_v52  ;;  %v3844_v13 = vmul.f32 %v3820_v59, %v3676_v52  ;;  %v7570_v51 = vpop.f32.mrf.mxu1  ;;  %v8450_v7 = vld [vmem:[#allocation76_spill] sm:$0xff] }
 0x4da   :  { %v3996_v32 = vadd.f32 %v3995_v46, %v3987_v54  ;;  %v4060_v16 = vrot.slane %v4059_v40, 4  ;;  %v3067_v26 = vpop.f32.mrf.mxu0  ;;  %v7585_v46 = vmul.f32 %v3288_v33, %v3288_v33 }
 0x4db   :  { %v3963_v19 = vmul.f32 %v7506_v0, %v3844_v13  ;;  %v4051_v15 = vmul.f32 %v3771_v3, %v399_v21  ;;  %v7572_v63 = vpop.f32.mrf.mxu1  ;;  %v3293_v0 = vadd.f32 %v4528_v36, %v8448_v23  ;;  %v3303_v36 = vadd.f32 %v4531_v43, %v7519_v42 }
 0x4dc   :  { %v3997_v27 = vrot.slane %v3996_v32, 4  ;;  %v4061_v62 = vadd.f32 %v4060_v16, %v4059_v40  ;;  %v3069_v11 = vpop.f32.mrf.mxu0  ;;  %v3298_v3 = vadd.f32 %v3297_v34, %v8450_v7 }
 0x4dd   :  { %v3988_v44 = vmul.f32 %v3963_v19, %v399_v21  ;;  %v4072_v25 = vadd.f32 %v4071_v1, %v4051_v15  ;;  %v7575_v50 = vpop.f32.mrf.mxu1  ;;  %v7578_v31 = vmul.f32 %v3293_v0, %v3293_v0  ;;  %v7599_v15 = vmul.f32 %v3303_v36, %v3303_v36 }
 0x4de   :  { %v3998_v37 = vadd.f32 %v3997_v27, %v3996_v32  ;;  %v4062_v5 = vrot.slane %v4061_v62, 2  ;;  %v3072_v60 = vpop.f32.mrf.mxu0 }
 0x4df   :  { %v4009_v45 = vadd.f32 %v4008_v2, %v3988_v44  ;;  %v4073_v55 = vrot.slane %v4072_v25, 4  ;;  %v4540_v14 = vpop.f32.mrf.mxu1 }
 0x4e0   :  { %v3999_v39 = vrot.slane %v3998_v37, 2  ;;  %v4063_v4 = vadd.f32 %v4062_v5, %v4061_v62  ;;  %v3074_v53 = vpop.f32.mrf.mxu0  ;;  %v3333_v30 = vadd.f32 %v4540_v14, %v3067_v26  ;;  %v3318_v14 = vadd.f32 %v7575_v50, %v7550_v48 }
 0x4e1   :  { %v4010_v20 = vrot.slane %v4009_v45, 4  ;;  %v4074_v35 = vadd.f32 %v4073_v55, %v4072_v25  ;;  %v3327_v61 = vpop.f32.mrf.mxu1  ;;  %v3308_v55 = vadd.f32 %v7570_v51, %v7529_v58 }
 0x4e2   :  { %v4000_v29 = vadd.f32 %v3999_v39, %v3998_v37  ;;  %v4064_v24 = vrot.slane %v4063_v4, 1  ;;  %v3077_v38 = vpop.f32.mrf.mxu0  ;;  %v7581_v9 = vmul.f32 %v3333_v30, %v3333_v30  ;;  %v7583_v8 = vmul.f32 %v3333_v30, %v3293_v0 }
 0x4e3   :  { %v4011_v49 = vadd.f32 %v4010_v20, %v4009_v45  ;;  %v4075_v41 = vrot.slane %v4074_v35, 2  ;;  %v3328_v52 = vadd.f32 %v3327_v61, %v3062_v12  ;;  %v4543_v2 = vpop.f32.mrf.mxu1  ;;  %v3313_v37 = vadd.f32 %v7567_v28, %v7541_v18 }
 0x4e4   :  { %v4001_v10 = vrot.slane %v4000_v29, 1  ;;  %v3079_v56 = vpop.f32.mrf.mxu0  ;;  %v4065_v59 = vadd.f32 %v4064_v24, %v4063_v4  ;;  %v7590_v42 = vadd.f32 %v7581_v9, %v7578_v31  ;;  %v3343_v32 = vadd.f32 %v4543_v2, %v3077_v38 }
 0x4e5   :  { %v4012_v17 = vrot.slane %v4011_v49, 2  ;;  %v4076_v1 = vadd.f32 %v4075_v41, %v4074_v35  ;;  %v7595_v13 = vmul.f32 %v3328_v52, %v3328_v52  ;;  %v7597_v22 = vmul.f32 %v3328_v52, %v3288_v33  ;;  %v3337_v16 = vpop.f32.mrf.mxu1 }
 0x4e6   :  { %v4002_v57 = vadd.f32 %v4001_v10, %v4000_v29  ;;  %v3082_v21 = vpop.f32.mrf.mxu0  ;;  %v7605_v26 = vmul.f32 %v3343_v32, %v3343_v32  ;;  %v7607_v27 = vmul.f32 %v3343_v32, %v3303_v36  ;;  %v3338_v5 = vadd.f32 %v3337_v16, %v3072_v60 }
 0x4e7   :  { %v4013_v54 = vadd.f32 %v4012_v17, %v4011_v49  ;;  %v4077_v40 = vrot.slane %v4076_v1, 1  ;;  %v7603_v34 = vadd.f32 %v7595_v13, %v7585_v46  ;;  %v4546_v62 = vpop.f32.mrf.mxu1  ;;  %v7611_v45 = vmul.f32 %v3298_v3, %v3298_v3 }
 0x4e8   :  { %v7593_v43 = vsel %vm4092_vm1, %v4002_v57, %v4065_v59  ;;  %v3084_v19 = vpop.f32.mrf.mxu0  ;;  %v7617_v39 = vadd.f32 %v7605_v26, %v7599_v15  ;;  %v7622_v20 = vmul.f32 %v3338_v5, %v3338_v5  ;;  %v7624_v35 = vmul.f32 %v3338_v5, %v3298_v3 }
 0x4e9   :  { %8451 = vst [vmem:[#allocation77_spill] sm:$0xff] %v7593_v43  ;;  %v4014_v12 = vrot.slane %v4013_v54, 1  ;;  %v4078_v25 = vadd.f32 %v4077_v40, %v4076_v1  ;;  %v3347_v4 = vpop.f32.mrf.mxu1  ;;  %v7628_v58 = vmul.f32 %v3313_v37, %v3313_v37  ;;  %v7638_v33 = vmul.f32 %v3308_v55, %v3308_v55 }
 0x4ea   :  { %v3087_v11 = vpop.f32.mrf.mxu0  ;;  %v3348_v60 = vadd.f32 %v3347_v4, %v3082_v21  ;;  %v7632_v29 = vadd.f32 %v7622_v20, %v7611_v45  ;;  %v3323_v36 = vadd.f32 %v7572_v63, %v7559_v6  ;;  %v7656_v50 = vmul.f32 %v3318_v14, %v3318_v14 }
 0x4eb   :  { %v4015_v44 = vadd.f32 %v4014_v12, %v4013_v54  ;;  %v3353_v18 = vadd.f32 %v4546_v62, %v3087_v11  ;;  %v4549_v53 = vpop.f32.mrf.mxu1 }
 0x4ec   :  { %v3089_v0 = vpop.f32.mrf.mxu0  ;;  %v7642_v49 = vmul.f32 %v3348_v60, %v3348_v60  ;;  %v7644_v41 = vmul.f32 %v3348_v60, %v3308_v55  ;;  %v7662_v54 = vmul.f32 %v3323_v36, %v3323_v36 }
 0x4ed   :  { %v7620_v23 = vsel %vm4092_vm1, %v4015_v44, %v4078_v25  ;;  %v7634_v24 = vmul.f32 %v3353_v18, %v3353_v18  ;;  %v7636_v47 = vmul.f32 %v3353_v18, %v3313_v37  ;;  %v3357_v38 = vpop.f32.mrf.mxu1 }
 0x4ee   :  { %8452 = vst [vmem:[#allocation80_spill] sm:$0xff] %v7620_v23  ;;  %v3092_v51 = vpop.f32.mrf.mxu0  ;;  %v7654_v61 = vadd.f32 %v7642_v49, %v7638_v33 }
 0x4ef   :  { %v7648_v10 = vadd.f32 %v7634_v24, %v7628_v58  ;;  %v3358_v17 = vadd.f32 %v3357_v38, %v3092_v51  ;;  %v4552_v1 = vpop.f32.mrf.mxu1 }
 0x4f0   :  { %v3094_v30 = vpop.f32.mrf.mxu0 }
 0x4f1   :  { %v7658_v57 = vmul.f32 %v3358_v17, %v3358_v17  ;;  %v7660_v52 = vmul.f32 %v3358_v17, %v3318_v14  ;;  %v3367_v2 = vpop.f32.mrf.mxu1 }
 0x4f2   :  { %v3097_v48 = vpop.f32.mrf.mxu0 }
 0x4f3   :  { %v3363_v56 = vadd.f32 %v4549_v53, %v3097_v48  ;;  %v7670_v63 = vadd.f32 %v7658_v57, %v7656_v50  ;;  %v4555_v44 = vpop.f32.mrf.mxu1 }
 0x4f4   :  { %v3099_v59 = vpop.f32.mrf.mxu0 }
 0x4f5   :  { %v7664_v40 = vmul.f32 %v3363_v56, %v3363_v56  ;;  %v7666_v6 = vmul.f32 %v3363_v56, %v3323_v36  ;;  %v3377_v37 = vpop.f32.mrf.mxu1 }
 0x4f6   :  { %v3102_v21 = vpop.f32.mrf.mxu0 }
 0x4f7   :  { %8453 = vst [vmem:[#allocation82_spill] sm:$0xff] %v7666_v6  ;;  %v7674_v7 = vadd.f32 %v7664_v40, %v7662_v54  ;;  %v3368_v3 = vadd.f32 %v3367_v2, %v3102_v21  ;;  %v4558_v55 = vpop.f32.mrf.mxu1 }
 0x4f8   :  { %v3104_v32 = vpop.f32.mrf.mxu0 }
 0x4f9   :  { %v3560_v16 = vsub.f32 %v3368_v3, %v7585_v46  ;;  %v3387_v18 = vpop.f32.mrf.mxu1 }
 0x4fa   :  { %v3107_v12 = vpop.f32.mrf.mxu0 }
 0x4fb   :  { %v7677_v53 = vpop.f32.mrf.mxu1  ;;  %v3373_v3 = vadd.f32 %v4552_v1, %v3107_v12  ;;  %v3875_v1 = vadd.f32 0.0001, %v7590_v42 }
 0x4fc   :  { %v3109_v19 = vpop.f32.mrf.mxu0 }
 0x4fd   :  { %v3397_v38 = vpop.f32.mrf.mxu1 }
 0x4fe   :  { %v3112_v62 = vpop.f32.mrf.mxu0 }
 0x4ff   :  { %v4564_v46 = vpop.f32.mrf.mxu1  ;;  %v3378_v23 = vadd.f32 %v3377_v37, %v3112_v62 }
 0x500   :  { %v3114_v25 = vpop.f32.mrf.mxu0 }
 0x501   :  { %v3407_v48 = vpop.f32.mrf.mxu1 }
 0x502   :  { %v3117_v11 = vpop.f32.mrf.mxu0 }
 0x503   :  { %v4567_v21 = vpop.f32.mrf.mxu1 }
 0x504   :  { %v3119_v5 = vpop.f32.mrf.mxu0 }
 0x505   :  { %v3417_v28 = vpop.f32.mrf.mxu1 }
 0x506   :  { %v3122_v4 = vpop.f32.mrf.mxu0 }
 0x507   :  { %v4570_v12 = vpop.f32.mrf.mxu1 }
 0x508   :  { %v3124_v0 = vpop.f32.mrf.mxu0 }
 0x509   :  { %v3872_v0 = vadd.f32 0.0001, %v7603_v34 }
 0x50a   :  { %v3127_v60 = vpop.f32.mrf.mxu0 }
 0x50c   :  { %v3129_v51 = vpop.f32.mrf.mxu0 }
 0x50e   :  { %v3132_v14 = vpop.f32.mrf.mxu0 }
 0x510   :  { %v3134_v30 = vpop.f32.mrf.mxu0 }
 0x511   :  { %v3563_v30 = vsub.f32 %v3373_v3, %v7578_v31 }
 0x512   :  { %v7679_v36 = vpop.f32.mrf.mxu0 }
 0x514   :  { %v3139_v17 = vpop.f32.mrf.mxu0 }
 0x516   :  { %v3142_v56 = vpop.f32.mrf.mxu0 }
 0x517   :  { %v3408_v59 = vadd.f32 %v3407_v48, %v3142_v56 }
 0x518   :  { %v3144_v2 = vpop.f32.mrf.mxu0 }
 0x519   :  { %v3584_v32 = vsub.f32 %v3408_v59, %v7595_v13 }
 0x51a   :  { %v3147_v19 = vpop.f32.mrf.mxu0 }
 0x51b   :  { %v3680_v25 = vadd.f32 %v3584_v32, %v3560_v16  ;;  %v3413_v5 = vadd.f32 %v4564_v46, %v3147_v19  ;;  %v3383_v16 = vadd.f32 %v4555_v44, %v3117_v11  ;;  %v3566_v46 = vsub.f32 %v3378_v23, %v7611_v45  ;;  %v3427_v19 = vpop.f32.mrf.mxu1 }
 0x51c   :  { %v3149_v51 = vpop.f32.mrf.mxu0 }
 0x51d   :  { %v3704_v43 = vadd.f32 0.0009, %v3680_v25  ;;  %v3587_v17 = vsub.f32 %v3413_v5, %v7581_v9  ;;  %v3878_v9 = vadd.f32 0.0001, %v7632_v29  ;;  %v3393_v51 = vadd.f32 %v4558_v55, %v3127_v60 }
 0x51e   :  { %v3152_v6 = vpop.f32.mrf.mxu0 }
 0x51f   :  { %v3896_v48 = vmul.f32 %v3872_v0, %v3704_v43  ;;  %v3683_v56 = vadd.f32 %v3587_v17, %v3563_v30  ;;  %v3418_v2 = vadd.f32 %v3417_v28, %v3152_v6  ;;  %v3569_v28 = vsub.f32 %v3383_v16, %v7599_v15  ;;  %v4573_v0 = vpop.f32.mrf.mxu1 }
 0x520   :  { %v3154_v13 = vpop.f32.mrf.mxu0  ;;  %v3388_v6 = vadd.f32 %v3387_v18, %v3122_v4  ;;  %4687 = vrcp.f32 %v3704_v43 }
 0x521   :  { %v3707_v34 = vadd.f32 0.0009, %v3683_v56  ;;  %v3590_v59 = vsub.f32 %v3418_v2, %v7622_v20  ;;  %v3881_v20 = vadd.f32 0.0001, %v7617_v39  ;;  %v3437_v2 = vpop.f32.mrf.mxu1  ;;  %v3575_v39 = vsub.f32 %v3393_v51, %v7628_v58 }
 0x522   :  { %v3157_v32 = vpop.f32.mrf.mxu0  ;;  %4689 = vrcp.f32 %v3896_v48 }
 0x523   :  { %v3899_v31 = vmul.f32 %v3875_v1, %v3707_v34  ;;  %v3686_v62 = vadd.f32 %v3590_v59, %v3566_v46  ;;  %v3423_v37 = vadd.f32 %v4567_v21, %v3157_v32  ;;  %v3572_v21 = vsub.f32 %v3388_v6, %v7638_v33 }
 0x524   :  { %v3159_v3 = vpop.f32.mrf.mxu0  ;;  %v3884_v1 = vadd.f32 0.0001, %v7654_v61  ;;  %v3887_v46 = vadd.f32 0.0001, %v7648_v10  ;;  %v3403_v61 = vadd.f32 %v7677_v53, %v7679_v36  ;;  %v3890_v10 = vadd.f32 0.0001, %v7670_v63 }
 0x525   :  { %v3710_v42 = vadd.f32 0.0009, %v3686_v62  ;;  %v3593_v25 = vsub.f32 %v3423_v37, %v7605_v26  ;;  %v3398_v26 = vadd.f32 %v3397_v38, %v3132_v14  ;;  %4691 = vrcp.f32 %v3707_v34 }
 0x526   :  { %v3162_v44 = vpop.f32.mrf.mxu0  ;;  %v3581_v3 = vsub.f32 %v3403_v61, %v7662_v54  ;;  %4693 = vrcp.f32 %v3899_v31 }
 0x527   :  { %v3902_v11 = vmul.f32 %v3878_v9, %v3710_v42  ;;  %v3689_v45 = vadd.f32 %v3593_v25, %v3569_v28  ;;  %v3428_v23 = vadd.f32 %v3427_v19, %v3162_v44  ;;  %v3578_v14 = vsub.f32 %v3398_v26, %v7656_v50 }
 0x528   :  { %v3164_v5 = vpop.f32.mrf.mxu0  ;;  %v3776_v28 = vmul.f32 2.0, %v7597_v22  ;;  %v3893_v25 = vadd.f32 0.0001, %v7674_v7  ;;  %4695 = vrcp.f32 %v3710_v42 }
 0x529   :  { %v3713_v29 = vadd.f32 0.0009, %v3689_v45  ;;  %v3596_v30 = vsub.f32 %v3428_v23, %v7642_v49  ;;  %4697 = vrcp.f32 %v3902_v11  ;;  %v3779_v5 = vmul.f32 2.0, %v7583_v8 }
 0x52a   :  { %v3167_v17 = vpop.f32.mrf.mxu0 }
 0x52b   :  { %v7694_v15 = vmul.f32 %v3881_v20, %v3713_v29  ;;  %v3692_v4 = vadd.f32 %v3596_v30, %v3572_v21  ;;  %v3433_v18 = vadd.f32 %v4570_v12, %v3167_v17  ;;  %v4576_v12 = vpop.f32.mrf.mxu1  ;;  %4699 = vrcp.f32 %v3713_v29  ;;  %v379_v29 = vld [vmem:[#allocation2 + $0xc10] sm:$0xff] }
 0x52c   :  { %v3169_v56 = vpop.f32.mrf.mxu0 }
 0x52d   :  { %v7698_v13 = vadd.f32 0.0009, %v3692_v4  ;;  %v3599_v55 = vsub.f32 %v3433_v18, %v7634_v24  ;;  %v3447_v9 = vpop.f32.mrf.mxu1  ;;  %v4688_v42 = vpop.eup %4687  ;;  %v3782_v18 = vmul.f32 2.0, %v7624_v35  ;;  %4701 = vrcp.f32 %v7694_v15 }
 0x52e   :  { %v3172_v33 = vpop.f32.mrf.mxu0  ;;  %v3803_v56 = vadd.f32 0.0001, %v3779_v5 }
 0x52f   :  { %v7702_v60 = vmul.f32 %v3884_v1, %v7698_v13  ;;  %v3695_v49 = vadd.f32 %v3599_v55, %v3575_v39  ;;  %v3438_v16 = vadd.f32 %v3437_v2, %v3172_v33  ;;  %v4579_v63 = vpop.f32.mrf.mxu1  ;;  %v4690_v4 = vpop.eup %4689  ;;  %4703 = vrcp.f32 %v7698_v13  ;;  %v382_v33 = vld [vmem:[#allocation2 + $0xc28] sm:$0xff] }
 0x530   :  { %v3174_v38 = vpop.f32.mrf.mxu0  ;;  %v3806_v15 = vadd.f32 0.0001, %v3782_v18 }
 0x531   :  { %v7708_v58 = vadd.f32 0.0009, %v3695_v49  ;;  %v3602_v24 = vsub.f32 %v3438_v16, %v7658_v57  ;;  %v3457_v20 = vpop.f32.mrf.mxu1  ;;  %4705 = vrcp.f32 %v7702_v60 }
 0x532   :  { %v3177_v59 = vpop.f32.mrf.mxu0 }
 0x533   :  { %v7712_v32 = vmul.f32 %v3887_v46, %v7708_v58  ;;  %v3698_v62 = vadd.f32 %v3602_v24, %v3578_v14  ;;  %v3443_v37 = vadd.f32 %v4573_v0, %v3177_v59  ;;  %v3800_v0 = vadd.f32 0.0001, %v3776_v28  ;;  %v4582_v55 = vpop.f32.mrf.mxu1 }
 0x534   :  { %v3179_v50 = vpop.f32.mrf.mxu0  ;;  %4707 = vrcp.f32 %v7708_v58  ;;  %v3788_v28 = vmul.f32 2.0, %v7644_v41 }
 0x535   :  { %v7716_v53 = vadd.f32 0.0009, %v3698_v62  ;;  %v3605_v43 = vsub.f32 %v3443_v37, %v7664_v40  ;;  %v3467_v37 = vpop.f32.mrf.mxu1  ;;  %4709 = vrcp.f32 %v7712_v32  ;;  %v385_v50 = vld [vmem:[#allocation2 + $0xc40] sm:$0xff] }
 0x536   :  { %v3182_v36 = vpop.f32.mrf.mxu0  ;;  %v3812_v18 = vadd.f32 0.0001, %v3788_v28  ;;  %v8454_v28 = vld [vmem:[#allocation82_spill] sm:$0xff] }
 0x537   :  { %v7720_v57 = vmul.f32 %v3890_v10, %v7716_v53  ;;  %v3701_v48 = vadd.f32 %v3605_v43, %v3581_v3  ;;  %v3448_v19 = vadd.f32 %v3447_v9, %v3182_v36  ;;  %v3785_v10 = vmul.f32 2.0, %v7607_v27 }
 0x538   :  { %v3184_v6 = vpop.f32.mrf.mxu0  ;;  %4711 = vrcp.f32 %v7716_v53 }
 0x539   :  { %v7724_v54 = vadd.f32 0.0009, %v3701_v48  ;;  %v3608_v34 = vsub.f32 %v3448_v19, %v7597_v22  ;;  %4713 = vrcp.f32 %v7720_v57 }
 0x53a   :  { %v3187_v44 = vpop.f32.mrf.mxu0 }
 0x53b   :  { %v7728_v40 = vmul.f32 %v3893_v25, %v7724_v54  ;;  %v3632_v31 = vmul.f32 2.0, %v3608_v34  ;;  %v3453_v45 = vadd.f32 %v4576_v12, %v3187_v44  ;;  %v4585_v34 = vpop.f32.mrf.mxu1  ;;  %4715 = vrcp.f32 %v7724_v54 }
 0x53c   :  { %v3189_v23 = vpop.f32.mrf.mxu0 }
 0x53d   :  { %v3656_v51 = vadd.f32 0.0009, %v3632_v31  ;;  %v3611_v7 = vsub.f32 %v3453_v45, %v7583_v8  ;;  %v4692_v8 = vpop.eup %4691  ;;  %v3809_v45 = vadd.f32 0.0001, %v3785_v10  ;;  %v3477_v53 = vpop.f32.mrf.mxu1  ;;  %4717 = vrcp.f32 %v7728_v40 }
 0x53e   :  { %v3192_v21 = vpop.f32.mrf.mxu0  ;;  %v4694_v38 = vpop.eup %4693 }
 0x53f   :  { %v3731_v30 = vmul.f32 %v4688_v42, %v3656_v51  ;;  %v3824_v22 = vmul.f32 %v3800_v0, %v3656_v51  ;;  %v3635_v17 = vmul.f32 2.0, %v3611_v7  ;;  %v3458_v11 = vadd.f32 %v3457_v20, %v3192_v21  ;;  %v4696_v13 = vpop.eup %4695  ;;  %v388_v7 = vld [vmem:[#allocation2 + $0xc58] sm:$0xff] }
 0x540   :  { %v3194_v26 = vpop.f32.mrf.mxu0  ;;  %v4698_v19 = vpop.eup %4697 }
 0x541   :  { %v3923_v2 = vmul.f32 %v4690_v4, %v3824_v22  ;;  %v3659_v1 = vadd.f32 0.0009, %v3635_v17  ;;  %v3614_v39 = vsub.f32 %v3458_v11, %v7624_v35  ;;  %v4031_v24 = vmul.f32 %v3731_v30, %v379_v29  ;;  %v4700_v5 = vpop.eup %4699 }
 0x542   :  { %v3197_v49 = vpop.f32.mrf.mxu0  ;;  %v4702_v11 = vpop.eup %4701  ;;  %v3791_v4 = vmul.f32 2.0, %v7636_v47 }
 0x543   :  { %v3737_v16 = vmul.f32 %v4692_v8, %v3659_v1  ;;  %v3827_v46 = vmul.f32 %v3803_v56, %v3659_v1  ;;  %v3638_v14 = vmul.f32 2.0, %v3614_v39  ;;  %v3463_v12 = vadd.f32 %v4579_v63, %v3197_v49  ;;  %v4704_v39 = vpop.eup %4703  ;;  %v391_v8 = vld [vmem:[#allocation2 + $0xc70] sm:$0xff] }
 0x544   :  { %v3199_v61 = vpop.f32.mrf.mxu0  ;;  %v3968_v60 = vmul.f32 %v3923_v2, %v379_v29  ;;  %v4706_v49 = vpop.eup %4705  ;;  %v3815_v54 = vadd.f32 0.0001, %v3791_v4 }
 0x545   :  { %v3929_v35 = vmul.f32 %v4694_v38, %v3827_v46  ;;  %v4034_v59 = vmul.f32 %v3737_v16, %v382_v33  ;;  %v3662_v62 = vadd.f32 0.0009, %v3638_v14  ;;  %v3617_v9 = vsub.f32 %v3463_v12, %v7607_v27 }
 0x546   :  { %v3202_v3 = vpop.f32.mrf.mxu0 }
 0x547   :  { %v3971_v43 = vmul.f32 %v3929_v35, %v382_v33  ;;  %v4079_v36 = vadd.f32 %v4034_v59, %v4031_v24  ;;  %v3743_v58 = vmul.f32 %v4696_v13, %v3662_v62  ;;  %v3830_v48 = vmul.f32 %v3806_v15, %v3662_v62  ;;  %v4708_v15 = vpop.eup %4707  ;;  %v394_v62 = vld [vmem:[#allocation2 + $0xc88] sm:$0xff] }
 0x548   :  { %v3641_v6 = vmul.f32 2.0, %v3617_v9  ;;  %v3468_v63 = vadd.f32 %v3467_v37, %v3202_v3  ;;  %v3204_v25 = vpop.f32.mrf.mxu0  ;;  %v4710_v40 = vpop.eup %4709 }
 0x549   :  { %v4016_v44 = vadd.f32 %v3971_v43, %v3968_v60  ;;  %v3935_v32 = vmul.f32 %v4698_v19, %v3830_v48  ;;  %v4037_v31 = vmul.f32 %v3743_v58, %v385_v50 }
 0x54a   :  { %v3665_v23 = vadd.f32 0.0009, %v3641_v6  ;;  %v3620_v27 = vsub.f32 %v3468_v63, %v7644_v41  ;;  %v3207_v20 = vpop.f32.mrf.mxu0  ;;  %v3797_v63 = vmul.f32 2.0, %v8454_v28 }
 0x54b   :  { %v3974_v0 = vmul.f32 %v3935_v32, %v385_v50  ;;  %v4080_v51 = vadd.f32 %v4079_v36, %v4037_v31  ;;  %v3473_v42 = vadd.f32 %v4582_v55, %v3207_v20  ;;  %v3794_v55 = vmul.f32 2.0, %v7660_v52 }
 0x54c   :  { %v3749_v21 = vmul.f32 %v4700_v5, %v3665_v23  ;;  %v3833_v30 = vmul.f32 %v3809_v45, %v3665_v23  ;;  %v3644_v22 = vmul.f32 2.0, %v3620_v27  ;;  %v3209_v17 = vpop.f32.mrf.mxu0 }
 0x54d   :  { %v4017_v26 = vadd.f32 %v4016_v44, %v3974_v0  ;;  %v3623_v41 = vsub.f32 %v3473_v42, %v7636_v47  ;;  %v3818_v9 = vadd.f32 0.0001, %v3794_v55  ;;  %v397_v44 = vld [vmem:[#allocation2 + $0xca0] sm:$0xff]  ;;  %v4746_v55 = vmov 1983009808  }
 0x54e   :  { %v3941_v56 = vmul.f32 %v4702_v11, %v3833_v30  ;;  %v4040_v57 = vmul.f32 %v3749_v21, %v388_v7  ;;  %v3668_v2 = vadd.f32 0.0009, %v3644_v22  ;;  %v3212_v1 = vpop.f32.mrf.mxu0  ;;  %v400_v22 = vld [vmem:[#allocation2 + $0xcb8] sm:$0xff] }
 0x54f   :  { %v3647_v29 = vmul.f32 2.0, %v3623_v41  ;;  %v3478_v33 = vadd.f32 %v3477_v53, %v3212_v1 }
 0x550   :  { %v3977_v16 = vmul.f32 %v3941_v56, %v388_v7  ;;  %v4081_v46 = vadd.f32 %v4080_v51, %v4040_v57  ;;  %v3755_v14 = vmul.f32 %v4704_v39, %v3668_v2  ;;  %v3836_v38 = vmul.f32 %v3812_v18, %v3668_v2  ;;  %v3214_v47 = vpop.f32.mrf.mxu0 }
 0x551   :  { %v3671_v12 = vadd.f32 0.0009, %v3647_v29  ;;  %v3626_v61 = vsub.f32 %v3478_v33, %v7660_v52  ;;  %v4712_v52 = vpop.eup %4711  ;;  %v3821_v51 = vadd.f32 0.0001, %v3797_v63  ;;  %v4103_v29 = vlaneseq }
 0x552   :  { %v4018_v24 = vadd.f32 %v4017_v26, %v3977_v16  ;;  %v3947_v35 = vmul.f32 %v4706_v49, %v3836_v38  ;;  %v4043_v59 = vmul.f32 %v3755_v14, %v391_v8  ;;  %v3217_v37 = vpop.f32.mrf.mxu0  ;;  %v4714_v27 = vpop.eup %4713 }
 0x553   :  { %v3761_v13 = vmul.f32 %v4708_v15, %v3671_v12  ;;  %v3839_v10 = vmul.f32 %v3815_v54, %v3671_v12  ;;  %v3650_v60 = vmul.f32 2.0, %v3626_v61  ;;  %v3483_v50 = vadd.f32 %v4585_v34, %v3217_v37  ;;  %v4716_v42 = vpop.eup %4715 }
 0x554   :  { %v3980_v3 = vmul.f32 %v3947_v35, %v391_v8  ;;  %v4082_v43 = vadd.f32 %v4081_v46, %v4043_v59  ;;  %v3219_v36 = vpop.f32.mrf.mxu0  ;;  %v4718_v17 = vpop.eup %4717  ;;  %v4101_v8 = vunpack.c.l.s4 %v4746_v55  ;;  %v4104_v38 = vshrl.u32 %v4103_v29, 7  ;;  %v8455_v59 = vld [vmem:[#allocation77_spill] sm:$0xff] }
 0x555   :  { %v3953_v58 = vmul.f32 %v4710_v40, %v3839_v10  ;;  %v4046_v48 = vmul.f32 %v3761_v13, %v394_v62  ;;  %v3674_v19 = vadd.f32 0.0009, %v3650_v60  ;;  %v3629_v6 = vsub.f32 %v3483_v50, %v8454_v28 }
 0x556   :  { %v4019_v25 = vadd.f32 %v4018_v24, %v3980_v3  ;;  %v4102_v14 = vunpack.c.0.s8 %v4101_v8 }
 0x557   :  { %v3983_v32 = vmul.f32 %v3953_v58, %v394_v62  ;;  %v4083_v31 = vadd.f32 %v4082_v43, %v4046_v48  ;;  %v3767_v45 = vmul.f32 %v4712_v52, %v3674_v19  ;;  %v3842_v23 = vmul.f32 %v3818_v9, %v3674_v19  ;;  %v8456_v62 = vld [vmem:[#allocation80_spill] sm:$0xff] }
 0x558   :  { %v3653_v34 = vmul.f32 2.0, %v3629_v6  ;;  %v4105_v12 = vsub.s32 %v4102_v14, %v4104_v38  ;;  %v8457_v37 = vcombine.low %v8455_v59, %v8456_v62 }
 0x559   :  { %v4020_v20 = vadd.f32 %v4019_v25, %v3983_v32  ;;  %v3959_v5 = vmul.f32 %v4714_v27, %v3842_v23  ;;  %v4049_v0 = vmul.f32 %v3767_v45, %v397_v44 }
 0x55a   :  { %v3677_v7 = vadd.f32 0.0009, %v3653_v34  ;;  %v4106_v40 = vrot.slane %v8457_v37, %v4105_v12 }
 0x55b   :  { %v3986_v21 = vmul.f32 %v3959_v5, %v397_v44  ;;  %v4084_v30 = vadd.f32 %v4083_v31, %v4049_v0 }
 0x55c   :  { %v3773_v53 = vmul.f32 %v4716_v42, %v3677_v7  ;;  %v3845_v11 = vmul.f32 %v3821_v51, %v3677_v7 }
 0x55d   :  { %v4021_v4 = vadd.f32 %v4020_v20, %v3986_v21 }
 0x55e   :  { %v3965_v18 = vmul.f32 %v4718_v17, %v3845_v11  ;;  %v4052_v26 = vmul.f32 %v3773_v53, %v400_v22 }
 0x560   :  { %v3989_v41 = vmul.f32 %v3965_v18, %v400_v22  ;;  %v4085_v56 = vadd.f32 %v4084_v30, %v4052_v26 }
 0x562   :  { %v4022_v57 = vadd.f32 %v4021_v4, %v3989_v41  ;;  %v4086_v2 = vrot.slane %v4085_v56, 4 }
 0x564   :  { %v4023_v1 = vrot.slane %v4022_v57, 4  ;;  %v4087_v39 = vadd.f32 %v4086_v2, %v4085_v56 }
 0x566   :  { %v4024_v33 = vadd.f32 %v4023_v1, %v4022_v57  ;;  %v4088_v49 = vrot.slane %v4087_v39, 2 }
 0x568   :  { %v4025_v16 = vrot.slane %v4024_v33, 2  ;;  %v4089_v46 = vadd.f32 %v4088_v49, %v4087_v39 }
 0x56a   :  { %v4026_v47 = vadd.f32 %v4025_v16, %v4024_v33  ;;  %v4090_v15 = vrot.slane %v4089_v46, 1 }
 0x56c   :  { %v4027_v54 = vrot.slane %v4026_v47, 1  ;;  %v4091_v24 = vadd.f32 %v4090_v15, %v4089_v46 }
 0x56e   :  { %v4028_v61 = vadd.f32 %v4027_v54, %v4026_v47 }
 0x570   :  { %v4095_v35 = vsel %vm4092_vm1, %v4028_v61, %v4091_v24 }
 0x571   :  { %v4113_v13 = vrot.slane %v4095_v35, %v4105_v12 }
 0x573   :  { %v4114_v10 = vcombine.low %v4106_v40, %v4113_v13 }
 0x575   :  { %4116 = vst [vmem:[%s7762_s2] sm:$0x3f] %v4114_v10 }
 0x576   :  { %4121 = vsyncpa [#allocation3], 1 }

</bundles_post_ra>
